<compile_context>
chip_gen: v5e
topology: v5e:2x2
jax: 0.10.0
libtpu: 0.0.40
codegen_flags: <defaults>
</compile_context>

<pallas_src>
import jax
import jax.numpy as jnp
from jax import lax
from jax.experimental import pallas as pl
from jax.experimental.pallas import tpu as pltpu

EPS = 1e-5
TN = 336  # Cout block (672 / 2); multiple of 8 -> satisfies sublane constraint


def bn_relu_conv_kernel(x_ref, gamma_ref, beta_ref, w_ref, o_ref):
    # x_ref: [C, P] f32   gamma_ref/beta_ref: [C, 1] f32
    # w_ref: [TN, C] bf16   o_ref: [TN, P] f32
    x = x_ref[...].astype(jnp.float32)
    p = x.shape[1]
    inv_p = 1.0 / p

    # BatchNorm2d training-mode batch statistics over P = N*H*W (lane axis).
    # Reductions are on the logical [C, 49] shape, so the 49->128 lane padding
    # is excluded by the compiler.  Two-pass (x - mean)^2 variance, biased 1/P.
    mean = jnp.sum(x, axis=1, keepdims=True) * inv_p          # [C, 1]
    xm = x - mean                                             # [C, P]
    var = jnp.sum(xm * xm, axis=1, keepdims=True) * inv_p     # [C, 1]
    a = gamma_ref[...] * lax.rsqrt(var + EPS)                 # folded scale [C, 1]

    # BN affine + ReLU (recomputed per Cout block; cheap, keeps grid parallel).
    xr = jnp.maximum(xm * a + beta_ref[...], 0.0)             # [C, P]

    # 1x1 conv, no bias: canonical [M, K] x [K, N] MXU matmul, no transposes.
    # bf16 operands, f32 accumulation.
    out = jnp.dot(
        w_ref[...],
        xr.astype(jnp.bfloat16),
        preferred_element_type=jnp.float32,
    )                                                         # [TN, P]
    o_ref[...] = out.astype(o_ref.dtype)


def prepare_weight(w):
    """One-time parameter prep (hoisted out of the per-call path):
    [Cout, Cin, 1, 1] (or [Cout, Cin]) f32 -> [Cout, Cin] bf16."""
    cout, cin = w.shape[0], w.shape[1]
    return jnp.asarray(w).reshape(cout, cin).astype(jnp.bfloat16)


def bn_relu_conv1x1(x_nchw, gamma, beta, w2d):
    """x_nchw: [N, C, H, W] f32; gamma/beta: [C] f32; w2d: [Cout, Cin] bf16
    (produced once by prepare_weight, not per call)."""
    # TODO(synk): running_mean/running_var EMA update (track_running_stats) is a
    # module side effect, not part of the forward output; not modeled here.
    N, C, H, W = x_nchw.shape
    Cout = w2d.shape[0]
    P = N * H * W

    # NCHW -> [C, P].  Free reshape for the module's N=1; only a batched call
    # would need the transpose branch.
    if N == 1:
        x2d = x_nchw.reshape(C, P)
    else:
        x2d = jnp.transpose(x_nchw, (1, 0, 2, 3)).reshape(C, P)

    grid = (Cout // TN,)

    cost = pl.CostEstimate(
        flops=2 * P * C * Cout + grid[0] * 6 * P * C,
        transcendentals=grid[0] * C,
        bytes_accessed=(P * C + P * Cout) * 4 + Cout * C * 2 + 2 * C * 4,
    )

    out2d = pl.pallas_call(
        bn_relu_conv_kernel,
        out_shape=jax.ShapeDtypeStruct((Cout, P), x_nchw.dtype),
        grid=grid,
        in_specs=[
            pl.BlockSpec((C, P), lambda j: (0, 0)),    # x: same block each step -> fetched once
            pl.BlockSpec((C, 1), lambda j: (0, 0)),    # gamma
            pl.BlockSpec((C, 1), lambda j: (0, 0)),    # beta
            pl.BlockSpec((TN, C), lambda j: (j, 0)),   # weight block [336, 672]
        ],
        out_specs=pl.BlockSpec((TN, P), lambda j: (j, 0)),
        compiler_params=pltpu.CompilerParams(
            dimension_semantics=("parallel",),         # 2 Cout blocks -> both v7x TCs
        ),
        cost_estimate=cost,
    )(x2d, gamma.reshape(C, 1), beta.reshape(C, 1), w2d)

    # [Cout, P] -> NCHW (free reshape for N=1).
    if N == 1:
        return out2d.reshape(1, Cout, H, W)
    return jnp.transpose(out2d.reshape(Cout, N, H, W), (1, 0, 2, 3))


def reference(x_nchw, gamma, beta, w):
    # pure-JAX reference: BatchNorm2d(train) -> ReLU -> Conv2d 1x1 (no bias)
    mean = jnp.mean(x_nchw, axis=(0, 2, 3), keepdims=True)
    var = jnp.mean((x_nchw - mean) ** 2, axis=(0, 2, 3), keepdims=True)  # biased
    xn = (x_nchw - mean) / jnp.sqrt(var + EPS)
    xn = xn * gamma.reshape(1, -1, 1, 1) + beta.reshape(1, -1, 1, 1)
    xr = jnp.maximum(xn, 0.0)
    w2d = w.reshape(w.shape[0], w.shape[1])
    return jnp.einsum("oc,nchw->nohw", w2d, xr)


if __name__ == "__main__":
    key = jax.random.PRNGKey(0)
    k_x, k_g, k_b, k_w = jax.random.split(key, 4)

    N, C, H, W = 1, 672, 7, 7  # fixed by the module's BatchNorm2d(672)/Conv2d(672, 672)
    Cout = 672

    x = jax.random.normal(k_x, (N, C, H, W), dtype=jnp.float32)
    gamma = 1.0 + 0.1 * jax.random.normal(k_g, (C,), dtype=jnp.float32)
    beta = 0.1 * jax.random.normal(k_b, (C,), dtype=jnp.float32)
    w = jax.random.normal(k_w, (Cout, C, 1, 1), dtype=jnp.float32) * (1.0 / C) ** 0.5

    w2d = prepare_weight(w)          # one-time parameter prep (not per call)
    fwd = jax.jit(bn_relu_conv1x1)   # per-call path: free reshapes + one pallas_call

    out = jax.block_until_ready(fwd(x, gamma, beta, w2d))
    ref = jax.block_until_ready(reference(x, gamma, beta, w))

    assert out.shape == (N, Cout, H, W), out.shape
    assert jnp.allclose(out, ref, rtol=2e-2, atol=2e-2), float(
        jnp.max(jnp.abs(out - ref))
    )

    print("KERNEL_OK")
</pallas_src>

<mosaic_0001>
module attributes {stable_mosaic.version = 11 : i64} {
  func.func @bn_relu_conv_kernel(%arg0: i32, %arg1: memref<672x49xf32, #tpu.memory_space<vmem>>, %arg2: memref<672x1xf32, #tpu.memory_space<vmem>>, %arg3: memref<672x1xf32, #tpu.memory_space<vmem>>, %arg4: memref<336x672xbf16, #tpu.memory_space<vmem>>, %arg5: memref<336x49xf32, #tpu.memory_space<vmem>>) attributes {dimension_semantics = [#tpu.dimension_semantics<parallel>], iteration_bounds = array<i64: 2>, scalar_prefetch = 0 : i64, scratch_operands = 0 : i64, tpu.core_type = #tpu.core_type<tc>, window_params = [{pipeline_mode = #tpu.pipeline_mode<synchronous>, transform_indices = @transform_0, window_bounds = array<i64: 672, 49>}, {pipeline_mode = #tpu.pipeline_mode<synchronous>, transform_indices = @transform_1, window_bounds = array<i64: 672, 1>}, {pipeline_mode = #tpu.pipeline_mode<synchronous>, transform_indices = @transform_2, window_bounds = array<i64: 672, 1>}, {transform_indices = @transform_3, window_bounds = array<i64: 336, 672>}, {transform_indices = @transform_4, window_bounds = array<i64: 336, 49>}]} {
    %c0 = arith.constant 0 : index
    %c0_0 = arith.constant 0 : index
    %0 = vector.load %arg1[%c0, %c0_0] : memref<672x49xf32, #tpu.memory_space<vmem>>, vector<672x49xf32>
    %cst = arith.constant dense<0.000000e+00> : vector<672xf32>
    %1 = vector.multi_reduction <add>, %0, %cst [1] : vector<672x49xf32> to vector<672xf32>
    %2 = vector.shape_cast %1 : vector<672xf32> to vector<672x1xf32>
    %cst_1 = arith.constant 0.0204081628 : f32
    %3 = vector.broadcast %cst_1 : f32 to vector<672x1xf32>
    %4 = arith.mulf %2, %3 : vector<672x1xf32>
    %5 = vector.broadcast %4 : vector<672x1xf32> to vector<672x49xf32>
    %6 = arith.subf %0, %5 : vector<672x49xf32>
    %7 = arith.mulf %6, %6 : vector<672x49xf32>
    %cst_2 = arith.constant dense<0.000000e+00> : vector<672xf32>
    %8 = vector.multi_reduction <add>, %7, %cst_2 [1] : vector<672x49xf32> to vector<672xf32>
    %9 = vector.shape_cast %8 : vector<672xf32> to vector<672x1xf32>
    %cst_3 = arith.constant 0.0204081628 : f32
    %10 = vector.broadcast %cst_3 : f32 to vector<672x1xf32>
    %11 = arith.mulf %9, %10 : vector<672x1xf32>
    %c0_4 = arith.constant 0 : index
    %c0_5 = arith.constant 0 : index
    %12 = vector.load %arg2[%c0_4, %c0_5] : memref<672x1xf32, #tpu.memory_space<vmem>>, vector<672x1xf32>
    %cst_6 = arith.constant 9.99999974E-6 : f32
    %13 = vector.broadcast %cst_6 : f32 to vector<672x1xf32>
    %14 = arith.addf %11, %13 : vector<672x1xf32>
    %15 = math.rsqrt %14 : vector<672x1xf32>
    %16 = arith.mulf %12, %15 : vector<672x1xf32>
    %17 = vector.broadcast %16 : vector<672x1xf32> to vector<672x49xf32>
    %18 = arith.mulf %6, %17 : vector<672x49xf32>
    %c0_7 = arith.constant 0 : index
    %c0_8 = arith.constant 0 : index
    %19 = vector.load %arg3[%c0_7, %c0_8] : memref<672x1xf32, #tpu.memory_space<vmem>>, vector<672x1xf32>
    %20 = vector.broadcast %19 : vector<672x1xf32> to vector<672x49xf32>
    %21 = arith.addf %18, %20 : vector<672x49xf32>
    %cst_9 = arith.constant 0.000000e+00 : f32
    %22 = vector.broadcast %cst_9 : f32 to vector<672x49xf32>
    %23 = arith.maximumf %21, %22 : vector<672x49xf32>
    %c0_10 = arith.constant 0 : index
    %c0_11 = arith.constant 0 : index
    %24 = vector.load %arg4[%c0_10, %c0_11] : memref<336x672xbf16, #tpu.memory_space<vmem>>, vector<336x672xbf16>
    %25 = arith.truncf %23 : vector<672x49xf32> to vector<672x49xbf16>
    %cst_12 = arith.constant dense<0.000000e+00> : vector<336x49xf32>
    %26 = tpu.matmul %24, %25, %cst_12 {dimension_numbers = #tpu.dot_dimension_numbers<[1], [0], [0], [1], [0, 0, 1, 1], [], []>} : vector<336x672xbf16>, vector<672x49xbf16>, vector<336x49xf32> -> vector<336x49xf32>
    %c0_13 = arith.constant 0 : index
    %c0_14 = arith.constant 0 : index
    %27 = vector.load %arg5[%c0_13, %c0_14] : memref<336x49xf32, #tpu.memory_space<vmem>>, vector<336x49xf32>
    tpu.vector_store %arg5[%c0_13, %c0_14], %26 {strides = array<i32>} : memref<336x49xf32, #tpu.memory_space<vmem>>, vector<336x49xf32>,
    return
  }
  func.func @transform_0(%arg0: i32) -> (i32, i32) {
    %c0_i32 = arith.constant 0 : i32
    %c0_i32_0 = arith.constant 0 : i32
    %c0_i32_1 = arith.constant 0 : i32
    return %c0_i32, %c0_i32_0 : i32, i32
  }
  func.func @transform_1(%arg0: i32) -> (i32, i32) {
    %c0_i32 = arith.constant 0 : i32
    %c0_i32_0 = arith.constant 0 : i32
    %c0_i32_1 = arith.constant 0 : i32
    return %c0_i32, %c0_i32_0 : i32, i32
  }
  func.func @transform_2(%arg0: i32) -> (i32, i32) {
    %c0_i32 = arith.constant 0 : i32
    %c0_i32_0 = arith.constant 0 : i32
    %c0_i32_1 = arith.constant 0 : i32
    return %c0_i32, %c0_i32_0 : i32, i32
  }
  func.func @transform_3(%arg0: i32) -> (i32, i32) {
    %c0_i32 = arith.constant 0 : i32
    %c0_i32_0 = arith.constant 0 : i32
    return %arg0, %c0_i32 : i32, i32
  }
  func.func @transform_4(%arg0: i32) -> (i32, i32) {
    %c0_i32 = arith.constant 0 : i32
    %c0_i32_0 = arith.constant 0 : i32
    return %arg0, %c0_i32 : i32, i32
  }
}

</mosaic_0001>

<bundles_post_ra>
// kernel: bn_relu_conv1x1.1
= control target key start
LH: loop header
LB: loop body
LE: loop exit
PB: predicated region body
PF: predicated region fallthrough
CT: control target
= control target key end

     0   :  { %s5912_s15 = smov 0   ;;  %s10610_s0 = inlined_call_operand.vmem [shape: f32[672,49], index: 0, kind: input, shape index: {}]   ;;  %s10611_s1 = inlined_call_operand.vmem [shape: f32[672,1], index: 1, kind: input, shape index: {}]   ;;  %s10612_s2 = inlined_call_operand.vmem [shape: f32[672,1], index: 2, kind: input, shape index: {}]   ;;  %s10613_s3 = inlined_call_operand.vmem [shape: bf16[672,672], index: 3, kind: input, shape index: {}]   ;;  %s10614_s4 = inlined_call_operand.vmem [shape: f32[672,49], index: 4, kind: output, shape index: {}]  }
   0x1 LB: > { %s5021_s16 = sadd.s32 4294967295, %s5884_s15   ;;  %p5025_p0 = scmp.ge.s32.totalorder %s5884_s15, 1  ;;  %s5884_s15 = sphi %s5912_s15, %s14_s15  }
   0x2   : > { %p164_p1 = scmp.lt.s32.totalorder %s5884_s15, 3 }
   0x4   : > { %p165_p2 = pnand %p5025_p0, %p164_p1 }
   0x6   : > { %168 = sbr.rel (%p165_p2) target bundleno = 1502 (0x5de), region = 36 }
   0xb   : > { %v5923_v0 = vld [vmem:[%s10610_s0 + $0x20] sm:$0xff]  ;;  %vm289_vm0 = vcmask 400384   ;;  %v5928_v1 = vld [vmem:[%s10610_s0 + $0x10] sm:$0xff]  ;;  %v5944_v6 = vld [vmem:[%s10610_s0 + $0x28] sm:$0xff]  ;;  %s9289_s17 = smul.u32 42, %s5021_s16 }
   0xc   : > { %v5933_v2 = vld [vmem:[%s10610_s0] sm:$0xff]  ;;  %v302_v3 = vsel %vm289_vm0, %v5923_v0, 0.0  ;;  %v296_v4 = vsel %vm289_vm0, %v5928_v1, 0.0  ;;  %v5949_v7 = vld [vmem:[%s10610_s0 + $0x18] sm:$0xff]  ;;  %v5954_v8 = vld [vmem:[%s10610_s0 + $0x8] sm:$0xff]  ;;  %v305_v9 = vsel %vm289_vm0, %v5944_v6, 0.0 }
   0xd   : > { %v290_v5 = vsel %vm289_vm0, %v5933_v2, 0.0  ;;  %303 = vadd.xlane.f32.xlu2 %v302_v3  ;;  %297 = vadd.xlane.f32.xlu1 %v296_v4  ;;  %v299_v10 = vsel %vm289_vm0, %v5949_v7, 0.0  ;;  %v293_v11 = vsel %vm289_vm0, %v5954_v8, 0.0  ;;  %v5965_v12 = vld [vmem:[%s10610_s0 + $0x40] sm:$0xff]  ;;  %v5970_v13 = vld [vmem:[%s10610_s0 + $0x38] sm:$0xff]  ;;  %v5975_v14 = vld [vmem:[%s10610_s0 + $0x30] sm:$0xff] }
   0xe   : > { %291 = vadd.xlane.f32.xlu0 %v290_v5  ;;  %v314_v15 = vsel %vm289_vm0, %v5965_v12, 0.0  ;;  %v311_v16 = vsel %vm289_vm0, %v5970_v13, 0.0  ;;  %v308_v17 = vsel %vm289_vm0, %v5975_v14, 0.0  ;;  %v5986_v18 = vld [vmem:[%s10610_s0 + $0x58] sm:$0xff]  ;;  %v5991_v19 = vld [vmem:[%s10610_s0 + $0x50] sm:$0xff]  ;;  %v5996_v20 = vld [vmem:[%s10610_s0 + $0x48] sm:$0xff] }
   0xf   : > { %v323_v21 = vsel %vm289_vm0, %v5986_v18, 0.0  ;;  %v320_v22 = vsel %vm289_vm0, %v5991_v19, 0.0  ;;  %v317_v23 = vsel %vm289_vm0, %v5996_v20, 0.0  ;;  %v6007_v24 = vld [vmem:[%s10610_s0 + $0x70] sm:$0xff]  ;;  %v6012_v25 = vld [vmem:[%s10610_s0 + $0x68] sm:$0xff]  ;;  %v6017_v26 = vld [vmem:[%s10610_s0 + $0x60] sm:$0xff] }
  0x10   : > { %v332_v27 = vsel %vm289_vm0, %v6007_v24, 0.0  ;;  %v329_v28 = vsel %vm289_vm0, %v6012_v25, 0.0  ;;  %v326_v29 = vsel %vm289_vm0, %v6017_v26, 0.0  ;;  %v6028_v30 = vld [vmem:[%s10610_s0 + $0x88] sm:$0xff]  ;;  %v6033_v31 = vld [vmem:[%s10610_s0 + $0x80] sm:$0xff]  ;;  %v6038_v32 = vld [vmem:[%s10610_s0 + $0x78] sm:$0xff] }
  0x11   : > { %v341_v33 = vsel %vm289_vm0, %v6028_v30, 0.0  ;;  %v338_v34 = vsel %vm289_vm0, %v6033_v31, 0.0  ;;  %v335_v35 = vsel %vm289_vm0, %v6038_v32, 0.0  ;;  %v6049_v36 = vld [vmem:[%s10610_s0 + $0xa0] sm:$0xff]  ;;  %v6054_v37 = vld [vmem:[%s10610_s0 + $0x98] sm:$0xff]  ;;  %v6059_v38 = vld [vmem:[%s10610_s0 + $0x90] sm:$0xff] }
  0x12   : > { %v350_v39 = vsel %vm289_vm0, %v6049_v36, 0.0  ;;  %v347_v40 = vsel %vm289_vm0, %v6054_v37, 0.0  ;;  %v344_v41 = vsel %vm289_vm0, %v6059_v38, 0.0  ;;  %v6070_v42 = vld [vmem:[%s10610_s0 + $0xb8] sm:$0xff]  ;;  %v6075_v43 = vld [vmem:[%s10610_s0 + $0xb0] sm:$0xff]  ;;  %v6080_v44 = vld [vmem:[%s10610_s0 + $0xa8] sm:$0xff] }
  0x13   : > { %v359_v45 = vsel %vm289_vm0, %v6070_v42, 0.0  ;;  %v356_v46 = vsel %vm289_vm0, %v6075_v43, 0.0  ;;  %v353_v47 = vsel %vm289_vm0, %v6080_v44, 0.0  ;;  %v6091_v48 = vld [vmem:[%s10610_s0 + $0xd0] sm:$0xff]  ;;  %v6096_v49 = vld [vmem:[%s10610_s0 + $0xc8] sm:$0xff]  ;;  %v6101_v50 = vld [vmem:[%s10610_s0 + $0xc0] sm:$0xff] }
  0x14   : > { %10756 = vst [vmem:[#allocation2_spill] sm:$0xff] %v6101_v50  ;;  %v368_v51 = vsel %vm289_vm0, %v6091_v48, 0.0  ;;  %v365_v52 = vsel %vm289_vm0, %v6096_v49, 0.0  ;;  %v362_v53 = vsel %vm289_vm0, %v6101_v50, 0.0  ;;  %v6112_v54 = vld [vmem:[%s10610_s0 + $0xe8] sm:$0xff]  ;;  %v6117_v55 = vld [vmem:[%s10610_s0 + $0xe0] sm:$0xff] }
  0x15   : > { %306 = vadd.xlane.f32.xlu2 %v305_v9  ;;  %300 = vadd.xlane.f32.xlu1 %v299_v10  ;;  %10757 = vst [vmem:[#allocation3_spill] sm:$0xff] %v6112_v54  ;;  %v6122_v56 = vld [vmem:[%s10610_s0 + $0xd8] sm:$0xff]  ;;  %v377_v57 = vsel %vm289_vm0, %v6112_v54, 0.0  ;;  %v374_v58 = vsel %vm289_vm0, %v6117_v55, 0.0  ;;  %v6133_v60 = vld [vmem:[%s10610_s0 + $0x100] sm:$0xff]  ;;  %v6143_v62 = vld [vmem:[%s10610_s0 + $0xf0] sm:$0xff] }
  0x16   : > { %294 = vadd.xlane.f32.xlu0 %v293_v11  ;;  %10758 = vst [vmem:[#allocation4_spill] sm:$0xff] %v6117_v55  ;;  %v371_v59 = vsel %vm289_vm0, %v6122_v56, 0.0  ;;  %v6138_v61 = vld [vmem:[%s10610_s0 + $0xf8] sm:$0xff]  ;;  %v386_v63 = vsel %vm289_vm0, %v6133_v60, 0.0  ;;  %v380_v4 = vsel %vm289_vm0, %v6143_v62, 0.0  ;;  %v6159_v9 = vld [vmem:[%s10610_s0 + $0x110] sm:$0xff] }
  0x17   : > { %10759 = vst [vmem:[#allocation5_spill] sm:$0xff] %v6122_v56  ;;  %v383_v3 = vsel %vm289_vm0, %v6138_v61, 0.0  ;;  %v6154_v5 = vld [vmem:[%s10610_s0 + $0x118] sm:$0xff]  ;;  %v6164_v10 = vld [vmem:[%s10610_s0 + $0x108] sm:$0xff]  ;;  %p192_p3 = scmp.lt.s32.totalorder %s9289_s17, 83 }
  0x18   : > { %10760 = vst [vmem:[#allocation6_spill] sm:$0xff] %v6133_v60  ;;  %v395_v11 = vsel %vm289_vm0, %v6154_v5, 0.0  ;;  %v6481_v60 = vld [vmem:[%s10610_s0 + $0x250] sm:$0xff]  ;;  %v6486_v56 = vld [vmem:[%s10610_s0 + $0x248] sm:$0xff] }
  0x19   : > { %10761 = vst [vmem:[#allocation7_spill] sm:$0xff] %v6138_v61  ;;  %v6508_v54 = vld [vmem:[%s10610_s0 + $0x268] sm:$0xff]  ;;  %s11349_s17 = smov (!%p192_p3, %s9289_s17), 83 }
  0x1a   : > { %10762 = vst [vmem:[#allocation8_spill] sm:$0xff] %v6143_v62  ;;  %v6459_v62 = vld [vmem:[%s10610_s0 + $0x230] sm:$0xff]  ;;  %s5697_s23 = smul.u32 24, %s11349_s17  ;;  %s5027_s24 = sshll.u32 %s11349_s17, 3 }
  0x1b   : > { %10763 = vst [vmem:[#allocation9_spill] sm:$0xff] %v6154_v5  ;;  %v6454_v5 = vld [vmem:[%s10610_s0 + $0x238] sm:$0xff]  ;;  %s10253_s27 = scalar_lea.vmem %s10614_s4, %s5027_s24 }
  0x1c   : > { %10764 = vst [vmem:[#allocation10_spill] sm:$0xff] %v6159_v9  ;;  %s9366_s28 = scalar_lea.vmem %s10613_s3, %s5697_s23 }
  0x1d   : > { %315 = vadd.xlane.f32.xlu2 %v314_v15  ;;  %312 = vadd.xlane.f32.xlu1 %v311_v16  ;;  %10765 = vst [vmem:[#allocation11_spill] sm:$0xff] %v6164_v10  ;;  %v392_v15 = vsel %vm289_vm0, %v6159_v9, 0.0  ;;  %v389_v16 = vsel %vm289_vm0, %v6164_v10, 0.0  ;;  %v6432_v10 = vld [vmem:[%s10610_s0 + $0x218] sm:$0xff] }
  0x1e   : > { %309 = vadd.xlane.f32.xlu0 %v308_v17  ;;  %v6175_v17 = vld [vmem:[%s10610_s0 + $0x130] sm:$0xff]  ;;  %10797 = vst [vmem:[#allocation43_spill] sm:$0xff] %v6432_v10 }
  0x1f   : > { %10766 = vst [vmem:[#allocation12_spill] sm:$0xff] %v6175_v17 }
  0x20   : > { %10799 = vst [vmem:[#allocation45_spill] sm:$0xff] %v6454_v5 }
  0x21   : > { %10800 = vst [vmem:[#allocation46_spill] sm:$0xff] %v6459_v62 }
  0x22   : > { %10802 = vst [vmem:[#allocation48_spill] sm:$0xff] %v6481_v60 }
  0x23   : > { %10803 = vst [vmem:[#allocation49_spill] sm:$0xff] %v6486_v56 }
  0x24   : > { %10808 = vst [vmem:[#allocation54_spill] sm:$0xff] %v6508_v54 }
  0x25   : > { %324 = vadd.xlane.f32.xlu2 %v323_v21  ;;  %321 = vadd.xlane.f32.xlu1 %v320_v22  ;;  %v6180_v21 = vld [vmem:[%s10610_s0 + $0x128] sm:$0xff]  ;;  %v6185_v22 = vld [vmem:[%s10610_s0 + $0x120] sm:$0xff] }
  0x26   : > { %318 = vadd.xlane.f32.xlu0 %v317_v23  ;;  %10767 = vst [vmem:[#allocation13_spill] sm:$0xff] %v6180_v21  ;;  %v404_v23 = vsel %vm289_vm0, %v6175_v17, 0.0  ;;  %v6427_v17 = vld [vmem:[%s10610_s0 + $0x220] sm:$0xff] }
  0x27   : > { %10768 = vst [vmem:[#allocation14_spill] sm:$0xff] %v6185_v22 }
  0x28   : > { %10796 = vst [vmem:[#allocation42_spill] sm:$0xff] %v6427_v17 }
  0x2d   : > { %333 = vadd.xlane.f32.xlu2 %v332_v27  ;;  %330 = vadd.xlane.f32.xlu1 %v329_v28  ;;  %v401_v27 = vsel %vm289_vm0, %v6180_v21, 0.0  ;;  %v398_v28 = vsel %vm289_vm0, %v6185_v22, 0.0  ;;  %v6405_v22 = vld [vmem:[%s10610_s0 + $0x200] sm:$0xff] }
  0x2e   : > { %327 = vadd.xlane.f32.xlu0 %v326_v29  ;;  %v6196_v29 = vld [vmem:[%s10610_s0 + $0x148] sm:$0xff]  ;;  %10794 = vst [vmem:[#allocation40_spill] sm:$0xff] %v6405_v22 }
  0x2f   : > { %10769 = vst [vmem:[#allocation15_spill] sm:$0xff] %v6196_v29 }
  0x35   : > { %342 = vadd.xlane.f32.xlu2 %v341_v33  ;;  %339 = vadd.xlane.f32.xlu1 %v338_v34  ;;  %v6201_v33 = vld [vmem:[%s10610_s0 + $0x140] sm:$0xff]  ;;  %v6206_v34 = vld [vmem:[%s10610_s0 + $0x138] sm:$0xff] }
  0x36   : > { %336 = vadd.xlane.f32.xlu0 %v335_v35  ;;  %10770 = vst [vmem:[#allocation16_spill] sm:$0xff] %v6201_v33  ;;  %v413_v35 = vsel %vm289_vm0, %v6196_v29, 0.0  ;;  %v6400_v29 = vld [vmem:[%s10610_s0 + $0x208] sm:$0xff] }
  0x37   : > { %10771 = vst [vmem:[#allocation17_spill] sm:$0xff] %v6206_v34 }
  0x38   : > { %10793 = vst [vmem:[#allocation39_spill] sm:$0xff] %v6400_v29 }
  0x3d   : > { %351 = vadd.xlane.f32.xlu2 %v350_v39  ;;  %348 = vadd.xlane.f32.xlu1 %v347_v40  ;;  %v410_v39 = vsel %vm289_vm0, %v6201_v33, 0.0  ;;  %v407_v40 = vsel %vm289_vm0, %v6206_v34, 0.0  ;;  %v6378_v34 = vld [vmem:[%s10610_s0 + $0x1e8] sm:$0xff] }
  0x3e   : > { %345 = vadd.xlane.f32.xlu0 %v344_v41  ;;  %v6217_v41 = vld [vmem:[%s10610_s0 + $0x160] sm:$0xff]  ;;  %10791 = vst [vmem:[#allocation37_spill] sm:$0xff] %v6378_v34 }
  0x3f   : > { %10772 = vst [vmem:[#allocation18_spill] sm:$0xff] %v6217_v41 }
  0x45   : > { %360 = vadd.xlane.f32.xlu2 %v359_v45  ;;  %357 = vadd.xlane.f32.xlu1 %v356_v46  ;;  %v6222_v45 = vld [vmem:[%s10610_s0 + $0x158] sm:$0xff]  ;;  %v6227_v46 = vld [vmem:[%s10610_s0 + $0x150] sm:$0xff] }
  0x46   : > { %354 = vadd.xlane.f32.xlu0 %v353_v47  ;;  %10773 = vst [vmem:[#allocation19_spill] sm:$0xff] %v6222_v45  ;;  %v422_v47 = vsel %vm289_vm0, %v6217_v41, 0.0  ;;  %v6373_v41 = vld [vmem:[%s10610_s0 + $0x1f0] sm:$0xff] }
  0x47   : > { %10774 = vst [vmem:[#allocation20_spill] sm:$0xff] %v6227_v46 }
  0x48   : > { %10790 = vst [vmem:[#allocation36_spill] sm:$0xff] %v6373_v41 }
  0x4d   : > { %369 = vadd.xlane.f32.xlu2 %v368_v51  ;;  %366 = vadd.xlane.f32.xlu1 %v365_v52  ;;  %v419_v51 = vsel %vm289_vm0, %v6222_v45, 0.0  ;;  %v416_v52 = vsel %vm289_vm0, %v6227_v46, 0.0  ;;  %v6351_v46 = vld [vmem:[%s10610_s0 + $0x1d0] sm:$0xff] }
  0x4e   : > { %363 = vadd.xlane.f32.xlu0 %v362_v53  ;;  %v6238_v53 = vld [vmem:[%s10610_s0 + $0x178] sm:$0xff]  ;;  %10788 = vst [vmem:[#allocation34_spill] sm:$0xff] %v6351_v46 }
  0x4f   : > { %10775 = vst [vmem:[#allocation21_spill] sm:$0xff] %v6238_v53 }
  0x55   : > { %378 = vadd.xlane.f32.xlu2 %v377_v57  ;;  %375 = vadd.xlane.f32.xlu1 %v374_v58  ;;  %v6243_v57 = vld [vmem:[%s10610_s0 + $0x170] sm:$0xff] }
  0x56   : > { %372 = vadd.xlane.f32.xlu0 %v371_v59  ;;  %10776 = vst [vmem:[#allocation22_spill] sm:$0xff] %v6243_v57 }
  0x5d   : > { %387 = vadd.xlane.f32.xlu2 %v386_v63  ;;  %384 = vadd.xlane.f32.xlu1 %v383_v3  ;;  %v6252_v63 = vld [vmem:[%s10610_s0 + $0x168] sm:$0xff] }
  0x5e   : > { %381 = vadd.xlane.f32.xlu0 %v380_v4  ;;  %10777 = vst [vmem:[#allocation23_spill] sm:$0xff] %v6252_v63  ;;  %v431_v4 = vsel %vm289_vm0, %v6238_v53, 0.0  ;;  %v6346_v53 = vld [vmem:[%s10610_s0 + $0x1d8] sm:$0xff] }
  0x5f   : > { %10787 = vst [vmem:[#allocation33_spill] sm:$0xff] %v6346_v53 }
  0x65   : > { %396 = vadd.xlane.f32.xlu2 %v395_v11  ;;  %393 = vadd.xlane.f32.xlu1 %v392_v15  ;;  %v428_v11 = vsel %vm289_vm0, %v6243_v57, 0.0  ;;  %v425_v15 = vsel %vm289_vm0, %v6252_v63, 0.0  ;;  %v6324_v63 = vld [vmem:[%s10610_s0 + $0x1b8] sm:$0xff] }
  0x66   : > { %390 = vadd.xlane.f32.xlu0 %v389_v16  ;;  %v6265_v16 = vld [vmem:[%s10610_s0 + $0x190] sm:$0xff]  ;;  %10785 = vst [vmem:[#allocation31_spill] sm:$0xff] %v6324_v63 }
  0x67   : > { %10778 = vst [vmem:[#allocation24_spill] sm:$0xff] %v6265_v16 }
  0x6d   : > { %405 = vadd.xlane.f32.xlu2 %v404_v23  ;;  %402 = vadd.xlane.f32.xlu1 %v401_v27  ;;  %v6270_v23 = vld [vmem:[%s10610_s0 + $0x188] sm:$0xff] }
  0x6e   : > { %399 = vadd.xlane.f32.xlu0 %v398_v28  ;;  %10779 = vst [vmem:[#allocation25_spill] sm:$0xff] %v6270_v23 }
  0x75   : > { %414 = vadd.xlane.f32.xlu2 %v413_v35  ;;  %411 = vadd.xlane.f32.xlu1 %v410_v39  ;;  %v6279_v35 = vld [vmem:[%s10610_s0 + $0x180] sm:$0xff] }
  0x76   : > { %408 = vadd.xlane.f32.xlu0 %v407_v40  ;;  %10780 = vst [vmem:[#allocation26_spill] sm:$0xff] %v6279_v35  ;;  %v440_v40 = vsel %vm289_vm0, %v6265_v16, 0.0  ;;  %v6319_v16 = vld [vmem:[%s10610_s0 + $0x1c0] sm:$0xff] }
  0x77   : > { %10784 = vst [vmem:[#allocation30_spill] sm:$0xff] %v6319_v16 }
  0x7d   : > { %423 = vadd.xlane.f32.xlu2 %v422_v47  ;;  %420 = vadd.xlane.f32.xlu1 %v419_v51  ;;  %v437_v47 = vsel %vm289_vm0, %v6270_v23, 0.0  ;;  %v434_v51 = vsel %vm289_vm0, %v6279_v35, 0.0 }
  0x7e   : > { %417 = vadd.xlane.f32.xlu0 %v416_v52  ;;  %v6292_v52 = vld [vmem:[%s10610_s0 + $0x1a8] sm:$0xff] }
  0x7f   : > { %10781 = vst [vmem:[#allocation27_spill] sm:$0xff] %v6292_v52 }
  0x80   : > { %v6245_v58 = vpop.xlane.xlu2 %303  ;;  %v6247_v59 = vpop.xlane.xlu1 %297 }
  0x81   : > { %v6254_v3 = vpop.xlane.xlu0 %291 }
  0x85   : > { %432 = vadd.xlane.f32.xlu2 %v431_v4  ;;  %429 = vadd.xlane.f32.xlu1 %v428_v11  ;;  %v6297_v4 = vld [vmem:[%s10610_s0 + $0x1a0] sm:$0xff] }
  0x86   : > { %426 = vadd.xlane.f32.xlu0 %v425_v15  ;;  %10782 = vst [vmem:[#allocation28_spill] sm:$0xff] %v6297_v4  ;;  %v446_v35 = vsel %vm289_vm0, %v6297_v4, 0.0 }
  0x88   : > { %v6272_v27 = vpop.xlane.xlu2 %306  ;;  %v6274_v28 = vpop.xlane.xlu1 %300 }
  0x89   : > { %v6281_v39 = vpop.xlane.xlu0 %294 }
  0x8d   : > { %441 = vadd.xlane.f32.xlu2 %v440_v40  ;;  %438 = vadd.xlane.f32.xlu1 %v437_v47  ;;  %v6306_v40 = vld [vmem:[%s10610_s0 + $0x198] sm:$0xff] }
  0x8e   : > { %435 = vadd.xlane.f32.xlu0 %v434_v51  ;;  %10783 = vst [vmem:[#allocation29_spill] sm:$0xff] %v6306_v40  ;;  %v449_v51 = vsel %vm289_vm0, %v6292_v52, 0.0  ;;  %v443_v23 = vsel %vm289_vm0, %v6306_v40, 0.0  ;;  %v455_v40 = vsel %vm289_vm0, %v6324_v63, 0.0 }
  0x90   : > { %v6299_v11 = vpop.xlane.xlu2 %315  ;;  %v6301_v15 = vpop.xlane.xlu1 %312 }
  0x91   : > { %v6308_v47 = vpop.xlane.xlu0 %309 }
  0x95   : > { %450 = vadd.xlane.f32.xlu2 %v449_v51  ;;  %447 = vadd.xlane.f32.xlu1 %v446_v35  ;;  %v6333_v51 = vld [vmem:[%s10610_s0 + $0x1b0] sm:$0xff]  ;;  %v458_v35 = vsel %vm289_vm0, %v6319_v16, 0.0 }
  0x96   : > { %444 = vadd.xlane.f32.xlu0 %v443_v23  ;;  %10786 = vst [vmem:[#allocation32_spill] sm:$0xff] %v6333_v51  ;;  %v452_v4 = vsel %vm289_vm0, %v6333_v51, 0.0  ;;  %v464_v51 = vsel %vm289_vm0, %v6351_v46, 0.0 }
  0x98   : > { %v6326_v52 = vpop.xlane.xlu2 %324  ;;  %v6328_v57 = vpop.xlane.xlu1 %321 }
  0x99   : > { %v6335_v23 = vpop.xlane.xlu0 %318 }
  0x9d   : > { %459 = vadd.xlane.f32.xlu2 %v458_v35  ;;  %456 = vadd.xlane.f32.xlu1 %v455_v40  ;;  %v6360_v35 = vld [vmem:[%s10610_s0 + $0x1c8] sm:$0xff]  ;;  %v467_v40 = vsel %vm289_vm0, %v6346_v53, 0.0 }
  0x9e   : > { %453 = vadd.xlane.f32.xlu0 %v452_v4  ;;  %10789 = vst [vmem:[#allocation35_spill] sm:$0xff] %v6360_v35  ;;  %v461_v63 = vsel %vm289_vm0, %v6360_v35, 0.0  ;;  %v473_v35 = vsel %vm289_vm0, %v6378_v34, 0.0 }
  0xa0   : > { %v6353_v16 = vpop.xlane.xlu2 %333  ;;  %v6355_v45 = vpop.xlane.xlu1 %330 }
  0xa1   : > { %v6362_v4 = vpop.xlane.xlu0 %327 }
  0xa5   : > { %468 = vadd.xlane.f32.xlu2 %v467_v40  ;;  %465 = vadd.xlane.f32.xlu1 %v464_v51  ;;  %v6387_v40 = vld [vmem:[%s10610_s0 + $0x1e0] sm:$0xff]  ;;  %v476_v51 = vsel %vm289_vm0, %v6373_v41, 0.0 }
  0xa6   : > { %462 = vadd.xlane.f32.xlu0 %v461_v63  ;;  %10792 = vst [vmem:[#allocation38_spill] sm:$0xff] %v6387_v40  ;;  %v470_v46 = vsel %vm289_vm0, %v6387_v40, 0.0  ;;  %v482_v40 = vsel %vm289_vm0, %v6405_v22, 0.0 }
  0xa8   : > { %v6380_v53 = vpop.xlane.xlu2 %342  ;;  %v6382_v33 = vpop.xlane.xlu1 %339 }
  0xa9   : > { %v6389_v63 = vpop.xlane.xlu0 %336 }
  0xad   : > { %477 = vadd.xlane.f32.xlu2 %v476_v51  ;;  %474 = vadd.xlane.f32.xlu1 %v473_v35  ;;  %v6414_v51 = vld [vmem:[%s10610_s0 + $0x1f8] sm:$0xff]  ;;  %v485_v35 = vsel %vm289_vm0, %v6400_v29, 0.0 }
  0xae   : > { %471 = vadd.xlane.f32.xlu0 %v470_v46  ;;  %10795 = vst [vmem:[#allocation41_spill] sm:$0xff] %v6414_v51  ;;  %v479_v34 = vsel %vm289_vm0, %v6414_v51, 0.0  ;;  %v491_v51 = vsel %vm289_vm0, %v6432_v10, 0.0 }
  0xb0   : > { %v6407_v41 = vpop.xlane.xlu2 %351  ;;  %v6409_v21 = vpop.xlane.xlu1 %348 }
  0xb1   : > { %v6416_v46 = vpop.xlane.xlu0 %345 }
  0xb5   : > { %486 = vadd.xlane.f32.xlu2 %v485_v35  ;;  %483 = vadd.xlane.f32.xlu1 %v482_v40  ;;  %v6441_v35 = vld [vmem:[%s10610_s0 + $0x210] sm:$0xff]  ;;  %v494_v40 = vsel %vm289_vm0, %v6427_v17, 0.0 }
  0xb6   : > { %480 = vadd.xlane.f32.xlu0 %v479_v34  ;;  %10798 = vst [vmem:[#allocation44_spill] sm:$0xff] %v6441_v35  ;;  %v488_v22 = vsel %vm289_vm0, %v6441_v35, 0.0  ;;  %v500_v35 = vsel %vm289_vm0, %v6459_v62, 0.0 }
  0xb8   : > { %v6434_v29 = vpop.xlane.xlu2 %360  ;;  %v6436_v9 = vpop.xlane.xlu1 %357 }
  0xb9   : > { %v6443_v34 = vpop.xlane.xlu0 %354 }
  0xbd   : > { %495 = vadd.xlane.f32.xlu2 %v494_v40  ;;  %492 = vadd.xlane.f32.xlu1 %v491_v51  ;;  %v6468_v40 = vld [vmem:[%s10610_s0 + $0x228] sm:$0xff]  ;;  %v503_v51 = vsel %vm289_vm0, %v6454_v5, 0.0 }
  0xbe   : > { %489 = vadd.xlane.f32.xlu0 %v488_v22  ;;  %10801 = vst [vmem:[#allocation47_spill] sm:$0xff] %v6468_v40  ;;  %v497_v10 = vsel %vm289_vm0, %v6468_v40, 0.0  ;;  %v509_v40 = vsel %vm289_vm0, %v6486_v56, 0.0 }
  0xc0   : > { %v6461_v17 = vpop.xlane.xlu2 %369  ;;  %v6463_v61 = vpop.xlane.xlu1 %366 }
  0xc1   : > { %v6470_v22 = vpop.xlane.xlu0 %363 }
  0xc5   : > { %504 = vadd.xlane.f32.xlu2 %v503_v51  ;;  %501 = vadd.xlane.f32.xlu1 %v500_v35  ;;  %v6495_v51 = vld [vmem:[%s10610_s0 + $0x240] sm:$0xff]  ;;  %v512_v35 = vsel %vm289_vm0, %v6481_v60, 0.0 }
  0xc6   : > { %498 = vadd.xlane.f32.xlu0 %v497_v10  ;;  %10806 = vst [vmem:[#allocation52_spill] sm:$0xff] %v6495_v51  ;;  %v506_v62 = vsel %vm289_vm0, %v6495_v51, 0.0 }
  0xc8   : > { %v6488_v5 = vpop.xlane.xlu2 %378  ;;  %v6490_v55 = vpop.xlane.xlu1 %375 }
  0xc9   : > { %10804 = vst [vmem:[#allocation50_spill] sm:$0xff] %v6488_v5  ;;  %v6497_v10 = vpop.xlane.xlu0 %372 }
  0xca   : > { %10805 = vst [vmem:[#allocation51_spill] sm:$0xff] %v6490_v55 }
  0xcb   : > { %10807 = vst [vmem:[#allocation53_spill] sm:$0xff] %v6497_v10  ;;  %v6513_v10 = vld [vmem:[%s10610_s0 + $0x260] sm:$0xff] }
  0xcc   : > { %10809 = vst [vmem:[#allocation55_spill] sm:$0xff] %v6513_v10  ;;  %v518_v51 = vsel %vm289_vm0, %v6513_v10, 0.0 }
  0xcd   : > { %513 = vadd.xlane.f32.xlu2 %v512_v35  ;;  %510 = vadd.xlane.f32.xlu1 %v509_v40  ;;  %v6522_v35 = vld [vmem:[%s10610_s0 + $0x258] sm:$0xff]  ;;  %v521_v40 = vsel %vm289_vm0, %v6508_v54, 0.0 }
  0xce   : > { %507 = vadd.xlane.f32.xlu0 %v506_v62  ;;  %10812 = vst [vmem:[#allocation58_spill] sm:$0xff] %v6522_v35  ;;  %v515_v56 = vsel %vm289_vm0, %v6522_v35, 0.0 }
  0xd0   : > { %v6515_v60 = vpop.xlane.xlu2 %387  ;;  %v6517_v55 = vpop.xlane.xlu1 %384 }
  0xd1   : > { %10810 = vst [vmem:[#allocation56_spill] sm:$0xff] %v6515_v60  ;;  %v6524_v62 = vpop.xlane.xlu0 %381 }
  0xd2   : > { %10811 = vst [vmem:[#allocation57_spill] sm:$0xff] %v6517_v55  ;;  %v6535_v55 = vld [vmem:[%s10610_s0 + $0x280] sm:$0xff] }
  0xd3   : > { %10813 = vst [vmem:[#allocation59_spill] sm:$0xff] %v6524_v62  ;;  %v6540_v62 = vld [vmem:[%s10610_s0 + $0x278] sm:$0xff] }
  0xd4   : > { %10814 = vst [vmem:[#allocation60_spill] sm:$0xff] %v6535_v55  ;;  %v527_v35 = vsel %vm289_vm0, %v6540_v62, 0.0 }
  0xd5   : > { %522 = vadd.xlane.f32.xlu2 %v521_v40  ;;  %519 = vadd.xlane.f32.xlu1 %v518_v51  ;;  %10815 = vst [vmem:[#allocation61_spill] sm:$0xff] %v6540_v62  ;;  %v6549_v40 = vld [vmem:[%s10610_s0 + $0x270] sm:$0xff]  ;;  %v530_v51 = vsel %vm289_vm0, %v6535_v55, 0.0  ;;  %v544_v55 = vmul.f32 0.020408163, %v6247_v59 }
  0xd6   : > { %516 = vadd.xlane.f32.xlu0 %v515_v56  ;;  %10818 = vst [vmem:[#allocation64_spill] sm:$0xff] %v6549_v40  ;;  %v524_v10 = vsel %vm289_vm0, %v6549_v40, 0.0  ;;  %v543_v62 = vmul.f32 0.020408163, %v6281_v39 }
  0xd8   : > { %v6542_v54 = vpop.xlane.xlu2 %396  ;;  %v6544_v60 = vpop.xlane.xlu1 %393 }
  0xd9   : > { %10816 = vst [vmem:[#allocation62_spill] sm:$0xff] %v6542_v54  ;;  %v6551_v56 = vpop.xlane.xlu0 %390 }
  0xda   : > { %10817 = vst [vmem:[#allocation63_spill] sm:$0xff] %v6544_v60  ;;  %v6562_v60 = vld [vmem:[%s10610_s0 + $0x298] sm:$0xff] }
  0xdb   : > { %10819 = vst [vmem:[#allocation65_spill] sm:$0xff] %v6551_v56  ;;  %v6567_v56 = vld [vmem:[%s10610_s0 + $0x290] sm:$0xff]  ;;  %v539_v5 = vsel %vm289_vm0, %v6562_v60, 0.0 }
  0xdc   : > { %10820 = vst [vmem:[#allocation66_spill] sm:$0xff] %v6562_v60  ;;  %v536_v59 = vsel %vm289_vm0, %v6567_v56, 0.0  ;;  %v547_v60 = vmul.f32 0.020408163, %v6272_v27 }
  0xdd   : > { %531 = vadd.xlane.f32.xlu2 %v530_v51  ;;  %528 = vadd.xlane.f32.xlu1 %v527_v35  ;;  %10821 = vst [vmem:[#allocation67_spill] sm:$0xff] %v6567_v56  ;;  %v542_v35 = vmul.f32 0.020408163, %v6254_v3  ;;  %v546_v3 = vmul.f32 0.020408163, %v6245_v58 }
  0xde   : > { %525 = vadd.xlane.f32.xlu0 %v524_v10  ;;  %v6578_v10 = vld [vmem:[%s10610_s0 + $0x288] sm:$0xff]  ;;  %v6617_v27 = vsub.f32 %v5944_v6, %v547_v60 }
  0xdf   : > { %v533_v39 = vsel %vm289_vm0, %v6578_v10, 0.0  ;;  %v6596_v50 = vsub.f32 %v5933_v2, %v542_v35  ;;  %v545_v2 = vmul.f32 0.020408163, %v6274_v28  ;;  %v6614_v58 = vsub.f32 %v5923_v0, %v546_v3 }
  0xe0   : > { %v6571_v54 = vpop.xlane.xlu2 %405  ;;  %v6573_v40 = vpop.xlane.xlu1 %402  ;;  %10829 = vst [vmem:[#allocation75_spill] sm:$0xff] %v6617_v27  ;;  %v549_v0 = vmul.f32 0.020408163, %v6301_v15  ;;  %v715_v60 = vmul.f32 %v6617_v27, %v6617_v27 }
  0xe1   : > { %10822 = vst [vmem:[#allocation68_spill] sm:$0xff] %v6571_v54  ;;  %v6581_v51 = vpop.xlane.xlu0 %399  ;;  %v6593_v54 = vsub.f32 %v5954_v8, %v543_v62  ;;  %v10872_v27 = vld [vmem:[#allocation63_spill] sm:$0xff] }
  0xe2   : > { %10823 = vst [vmem:[#allocation69_spill] sm:$0xff] %v6573_v40  ;;  %v6590_v40 = vsub.f32 %v5928_v1, %v544_v55  ;;  %v6644_v15 = vsub.f32 %v5970_v13, %v549_v0 }
  0xe3   : > { %10824 = vst [vmem:[#allocation70_spill] sm:$0xff] %v6581_v51  ;;  %v711_v8 = vmul.f32 %v6593_v54, %v6593_v54 }
  0xe4   : > { %10825 = vst [vmem:[#allocation71_spill] sm:$0xff] %v6590_v40  ;;  %v712_v1 = vmul.f32 %v6590_v40, %v6590_v40 }
  0xe5   : > { %10826 = vst [vmem:[#allocation72_spill] sm:$0xff] %v6593_v54  ;;  %540 = vadd.xlane.f32.xlu2 %v539_v5  ;;  %537 = vadd.xlane.f32.xlu1 %v536_v59  ;;  %v710_v5 = vmul.f32 %v6596_v50, %v6596_v50  ;;  %v797_v35 = vsel %vm289_vm0, %v711_v8, 0.0  ;;  %v6622_v59 = vsub.f32 %v5949_v7, %v545_v2 }
  0xe6   : > { %10827 = vst [vmem:[#allocation73_spill] sm:$0xff] %v6596_v50  ;;  %534 = vadd.xlane.f32.xlu0 %v533_v39  ;;  %v800_v62 = vsel %vm289_vm0, %v712_v1, 0.0  ;;  %v550_v39 = vmul.f32 0.020408163, %v6299_v11  ;;  %v714_v7 = vmul.f32 %v6614_v58, %v6614_v58  ;;  %v548_v1 = vmul.f32 0.020408163, %v6308_v47 }
  0xe7   : > { %10828 = vst [vmem:[#allocation74_spill] sm:$0xff] %v6614_v58  ;;  %v794_v28 = vsel %vm289_vm0, %v710_v5, 0.0  ;;  %v713_v2 = vmul.f32 %v6622_v59, %v6622_v59  ;;  %v809_v5 = vsel %vm289_vm0, %v715_v60, 0.0  ;;  %v551_v60 = vmul.f32 0.020408163, %v6335_v23  ;;  %v10854_v50 = vld [vmem:[#allocation51_spill] sm:$0xff] }
  0xe8   : > { %v6600_v56 = vpop.xlane.xlu2 %414  ;;  %v6602_v51 = vpop.xlane.xlu1 %411  ;;  %10830 = vst [vmem:[#allocation76_spill] sm:$0xff] %v6622_v59  ;;  %v6641_v11 = vsub.f32 %v5965_v12, %v550_v39  ;;  %v552_v12 = vmul.f32 0.020408163, %v6328_v57  ;;  %v10860_v59 = vld [vmem:[#allocation5_spill] sm:$0xff]  ;;  %v10871_v58 = vld [vmem:[#allocation62_spill] sm:$0xff] }
  0xe9   : > { %v6609_v55 = vpop.xlane.xlu0 %408  ;;  %10832 = vst [vmem:[#allocation78_spill] sm:$0xff] %v6644_v15  ;;  %v803_v47 = vsel %vm289_vm0, %v713_v2, 0.0 }
  0xea   : > { %10831 = vst [vmem:[#allocation77_spill] sm:$0xff] %v6641_v11  ;;  %v718_v0 = vmul.f32 %v6641_v11, %v6641_v11  ;;  %v6671_v57 = vsub.f32 %v5991_v19, %v552_v12  ;;  %v10880_v11 = vld [vmem:[#allocation68_spill] sm:$0xff] }
  0xec   : > { %10835 = vst [vmem:[#allocation81_spill] sm:$0xff] %v6671_v57  ;;  %v818_v2 = vsel %vm289_vm0, %v718_v0, 0.0  ;;  %v554_v0 = vmul.f32 0.020408163, %v6362_v4 }
  0xed   : > { %801 = vadd.xlane.f32.xlu2 %v800_v62  ;;  %798 = vadd.xlane.f32.xlu1 %v797_v35  ;;  %v806_v62 = vsel %vm289_vm0, %v714_v7, 0.0  ;;  %v6649_v35 = vsub.f32 %v5975_v14, %v548_v1  ;;  %v717_v14 = vmul.f32 %v6644_v15, %v6644_v15  ;;  %v10878_v15 = vld [vmem:[#allocation11_spill] sm:$0xff] }
  0xee   : > { %795 = vadd.xlane.f32.xlu0 %v794_v28  ;;  %v553_v28 = vmul.f32 0.020408163, %v6326_v52 }
  0xef   : > { %10833 = vst [vmem:[#allocation79_spill] sm:$0xff] %v6649_v35  ;;  %v716_v1 = vmul.f32 %v6649_v35, %v6649_v35  ;;  %v577_v35 = vmul.f32 0.020408163, %v10871_v58  ;;  %v10874_v58 = vld [vmem:[#allocation9_spill] sm:$0xff] }
  0xf0   : > { %v6627_v3 = vpop.xlane.xlu2 %423  ;;  %v6629_v6 = vpop.xlane.xlu1 %420  ;;  %v6668_v52 = vsub.f32 %v5986_v18, %v553_v28  ;;  %v555_v18 = vmul.f32 0.020408163, %v6355_v45 }
  0xf1   : > { %v6636_v8 = vpop.xlane.xlu0 %417  ;;  %v812_v23 = vsel %vm289_vm0, %v716_v1, 0.0 }
  0xf2   : > { %10834 = vst [vmem:[#allocation80_spill] sm:$0xff] %v6668_v52  ;;  %v721_v12 = vmul.f32 %v6668_v52, %v6668_v52  ;;  %v6698_v45 = vsub.f32 %v6012_v25, %v555_v18 }
  0xf4   : > { %10838 = vst [vmem:[#allocation84_spill] sm:$0xff] %v6698_v45  ;;  %v827_v1 = vsel %vm289_vm0, %v721_v12, 0.0  ;;  %v557_v12 = vmul.f32 0.020408163, %v6389_v63 }
  0xf5   : > { %810 = vadd.xlane.f32.xlu2 %v809_v5  ;;  %807 = vadd.xlane.f32.xlu1 %v806_v62  ;;  %v815_v5 = vsel %vm289_vm0, %v717_v14, 0.0  ;;  %v6676_v62 = vsub.f32 %v5996_v20, %v551_v60  ;;  %v720_v20 = vmul.f32 %v6671_v57, %v6671_v57 }
  0xf6   : > { %804 = vadd.xlane.f32.xlu0 %v803_v47  ;;  %v556_v47 = vmul.f32 0.020408163, %v6353_v16 }
  0xf7   : > { %10836 = vst [vmem:[#allocation82_spill] sm:$0xff] %v6676_v62  ;;  %v719_v60 = vmul.f32 %v6676_v62, %v6676_v62 }
  0xf8   : > { %v6654_v39 = vpop.xlane.xlu2 %432  ;;  %v6656_v13 = vpop.xlane.xlu1 %429  ;;  %v6695_v16 = vsub.f32 %v6007_v24, %v556_v47  ;;  %v558_v24 = vmul.f32 0.020408163, %v6382_v33 }
  0xf9   : > { %v6663_v7 = vpop.xlane.xlu0 %426  ;;  %v821_v4 = vsel %vm289_vm0, %v719_v60, 0.0 }
  0xfa   : > { %10837 = vst [vmem:[#allocation83_spill] sm:$0xff] %v6695_v16  ;;  %v724_v18 = vmul.f32 %v6695_v16, %v6695_v16  ;;  %v6725_v33 = vsub.f32 %v6033_v31, %v558_v24 }
  0xfc   : > { %10841 = vst [vmem:[#allocation87_spill] sm:$0xff] %v6725_v33  ;;  %v836_v60 = vsel %vm289_vm0, %v724_v18, 0.0  ;;  %v560_v18 = vmul.f32 0.020408163, %v6416_v46 }
  0xfd   : > { %819 = vadd.xlane.f32.xlu2 %v818_v2  ;;  %816 = vadd.xlane.f32.xlu1 %v815_v5  ;;  %v824_v2 = vsel %vm289_vm0, %v720_v20, 0.0  ;;  %v6703_v5 = vsub.f32 %v6017_v26, %v554_v0  ;;  %v723_v26 = vmul.f32 %v6698_v45, %v6698_v45 }
  0xfe   : > { %813 = vadd.xlane.f32.xlu0 %v812_v23  ;;  %v559_v23 = vmul.f32 0.020408163, %v6380_v53 }
  0xff   : > { %10839 = vst [vmem:[#allocation85_spill] sm:$0xff] %v6703_v5  ;;  %v722_v0 = vmul.f32 %v6703_v5, %v6703_v5 }
 0x100   : > { %v6681_v28 = vpop.xlane.xlu2 %441  ;;  %v6683_v19 = vpop.xlane.xlu1 %438  ;;  %v6722_v53 = vsub.f32 %v6028_v30, %v559_v23  ;;  %v561_v30 = vmul.f32 0.020408163, %v6409_v21 }
 0x101   : > { %v6690_v14 = vpop.xlane.xlu0 %435  ;;  %v830_v63 = vsel %vm289_vm0, %v722_v0, 0.0 }
 0x102   : > { %10840 = vst [vmem:[#allocation86_spill] sm:$0xff] %v6722_v53  ;;  %v727_v24 = vmul.f32 %v6722_v53, %v6722_v53  ;;  %v6752_v21 = vsub.f32 %v6054_v37, %v561_v30  ;;  %v10853_v53 = vld [vmem:[#allocation50_spill] sm:$0xff] }
 0x104   : > { %10844 = vst [vmem:[#allocation90_spill] sm:$0xff] %v6752_v21  ;;  %v845_v0 = vsel %vm289_vm0, %v727_v24, 0.0  ;;  %v563_v24 = vmul.f32 0.020408163, %v6443_v34 }
 0x105   : > { %828 = vadd.xlane.f32.xlu2 %v827_v1  ;;  %825 = vadd.xlane.f32.xlu1 %v824_v2  ;;  %v833_v1 = vsel %vm289_vm0, %v723_v26, 0.0  ;;  %v6730_v2 = vsub.f32 %v6038_v32, %v557_v12  ;;  %v726_v32 = vmul.f32 %v6725_v33, %v6725_v33  ;;  %v571_v33 = vmul.f32 0.020408163, %v10853_v53  ;;  %v10856_v53 = vld [vmem:[#allocation3_spill] sm:$0xff] }
 0x106   : > { %822 = vadd.xlane.f32.xlu0 %v821_v4  ;;  %v562_v4 = vmul.f32 0.020408163, %v6407_v41 }
 0x107   : > { %10842 = vst [vmem:[#allocation88_spill] sm:$0xff] %v6730_v2  ;;  %v725_v12 = vmul.f32 %v6730_v2, %v6730_v2 }
 0x108   : > { %v6708_v47 = vpop.xlane.xlu2 %450  ;;  %v6710_v25 = vpop.xlane.xlu1 %447  ;;  %v6749_v41 = vsub.f32 %v6049_v36, %v562_v4  ;;  %v564_v36 = vmul.f32 0.020408163, %v6436_v9 }
 0x109   : > { %v6717_v20 = vpop.xlane.xlu0 %444  ;;  %v839_v46 = vsel %vm289_vm0, %v725_v12, 0.0 }
 0x10a   : > { %10843 = vst [vmem:[#allocation89_spill] sm:$0xff] %v6749_v41  ;;  %v730_v30 = vmul.f32 %v6749_v41, %v6749_v41  ;;  %v6779_v9 = vsub.f32 %v6075_v43, %v564_v36 }
 0x10c   : > { %10847 = vst [vmem:[#allocation93_spill] sm:$0xff] %v6779_v9  ;;  %v854_v12 = vsel %vm289_vm0, %v730_v30, 0.0  ;;  %v566_v30 = vmul.f32 0.020408163, %v6470_v22 }
 0x10d   : > { %837 = vadd.xlane.f32.xlu2 %v836_v60  ;;  %834 = vadd.xlane.f32.xlu1 %v833_v1  ;;  %v842_v60 = vsel %vm289_vm0, %v726_v32, 0.0  ;;  %v6757_v1 = vsub.f32 %v6059_v38, %v560_v18  ;;  %v729_v38 = vmul.f32 %v6752_v21, %v6752_v21  ;;  %v10863_v21 = vld [vmem:[#allocation57_spill] sm:$0xff] }
 0x10e   : > { %831 = vadd.xlane.f32.xlu0 %v830_v63  ;;  %v565_v63 = vmul.f32 0.020408163, %v6434_v29 }
 0x10f   : > { %10845 = vst [vmem:[#allocation91_spill] sm:$0xff] %v6757_v1  ;;  %v728_v18 = vmul.f32 %v6757_v1, %v6757_v1  ;;  %v10862_v1 = vld [vmem:[#allocation56_spill] sm:$0xff] }
 0x110   : > { %v6735_v23 = vpop.xlane.xlu2 %459  ;;  %v6737_v31 = vpop.xlane.xlu1 %456  ;;  %v6776_v29 = vsub.f32 %v6070_v42, %v565_v63  ;;  %v567_v42 = vmul.f32 0.020408163, %v6463_v61  ;;  %v574_v41 = vmul.f32 0.020408163, %v10862_v1  ;;  %v10865_v1 = vld [vmem:[#allocation6_spill] sm:$0xff] }
 0x111   : > { %v6744_v26 = vpop.xlane.xlu0 %453  ;;  %v848_v34 = vsel %vm289_vm0, %v728_v18, 0.0 }
 0x112   : > { %10846 = vst [vmem:[#allocation92_spill] sm:$0xff] %v6776_v29  ;;  %v733_v36 = vmul.f32 %v6776_v29, %v6776_v29  ;;  %v6806_v61 = vsub.f32 %v6096_v49, %v567_v42  ;;  %v10869_v29 = vld [vmem:[#allocation8_spill] sm:$0xff] }
 0x114   : > { %10850 = vst [vmem:[#allocation96_spill] sm:$0xff] %v6806_v61  ;;  %v863_v18 = vsel %vm289_vm0, %v733_v36, 0.0  ;;  %v735_v36 = vmul.f32 %v6806_v61, %v6806_v61 }
 0x115   : > { %846 = vadd.xlane.f32.xlu2 %v845_v0  ;;  %843 = vadd.xlane.f32.xlu1 %v842_v60  ;;  %v851_v0 = vsel %vm289_vm0, %v729_v38, 0.0  ;;  %v6784_v60 = vsub.f32 %v6080_v44, %v563_v24  ;;  %v732_v44 = vmul.f32 %v6779_v9, %v6779_v9 }
 0x116   : > { %840 = vadd.xlane.f32.xlu0 %v839_v46  ;;  %v568_v46 = vmul.f32 0.020408163, %v6461_v17  ;;  %v869_v54 = vsel %vm289_vm0, %v735_v36, 0.0  ;;  %v10864_v36 = vld [vmem:[#allocation59_spill] sm:$0xff] }
 0x117   : > { %10848 = vst [vmem:[#allocation94_spill] sm:$0xff] %v6784_v60  ;;  %v731_v24 = vmul.f32 %v6784_v60, %v6784_v60 }
 0x118   : > { %v6762_v4 = vpop.xlane.xlu2 %468  ;;  %v6764_v37 = vpop.xlane.xlu1 %465  ;;  %v6803_v17 = vsub.f32 %v6091_v48, %v568_v46  ;;  %v570_v48 = vmul.f32 0.020408163, %v10854_v50  ;;  %v10858_v50 = vld [vmem:[#allocation4_spill] sm:$0xff] }
 0x119   : > { %v6771_v32 = vpop.xlane.xlu0 %462  ;;  %v857_v22 = vsel %vm289_vm0, %v731_v24, 0.0 }
 0x11a   : > { %10849 = vst [vmem:[#allocation95_spill] sm:$0xff] %v6803_v17  ;;  %v736_v42 = vmul.f32 %v6803_v17, %v6803_v17  ;;  %v580_v17 = vmul.f32 0.020408163, %v10880_v11  ;;  %v10883_v11 = vld [vmem:[#allocation12_spill] sm:$0xff] }
 0x11d   : > { %855 = vadd.xlane.f32.xlu2 %v854_v12  ;;  %852 = vadd.xlane.f32.xlu1 %v851_v0  ;;  %v860_v12 = vsel %vm289_vm0, %v732_v44, 0.0  ;;  %v10851_v0 = vld [vmem:[#allocation2_spill] sm:$0xff]  ;;  %v10855_v44 = vld [vmem:[#allocation53_spill] sm:$0xff] }
 0x11e   : > { %849 = vadd.xlane.f32.xlu0 %v848_v34  ;;  %v6811_v34 = vsub.f32 %v10851_v0, %v566_v30  ;;  %v569_v30 = vmul.f32 0.020408163, %v10855_v44  ;;  %v6833_v0 = vsub.f32 %v10858_v50, %v570_v48  ;;  %v6857_v50 = vsub.f32 %v10865_v1, %v574_v41 }
 0x11f   : > { %v576_v41 = vmul.f32 0.020408163, %v10872_v27  ;;  %v10876_v27 = vld [vmem:[#allocation10_spill] sm:$0xff] }
 0x120   : > { %v6789_v63 = vpop.xlane.xlu2 %477  ;;  %v6791_v43 = vpop.xlane.xlu1 %474  ;;  %10852 = vst [vmem:[#allocation2_spill] sm:$0xff] %v6811_v34  ;;  %v734_v24 = vmul.f32 %v6811_v34, %v6811_v34  ;;  %v6838_v40 = vsub.f32 %v10860_v59, %v569_v30  ;;  %v738_v59 = vmul.f32 %v6833_v0, %v6833_v0  ;;  %v572_v30 = vmul.f32 0.020408163, %v10864_v36  ;;  %v10881_v34 = vld [vmem:[#allocation69_spill] sm:$0xff] }
 0x121   : > { %v6798_v38 = vpop.xlane.xlu0 %471  ;;  %10859 = vst [vmem:[#allocation51_spill] sm:$0xff] %v6833_v0 }
 0x122   : > { %10861 = vst [vmem:[#allocation53_spill] sm:$0xff] %v6838_v40  ;;  %v866_v44 = vsel %vm289_vm0, %v734_v24, 0.0  ;;  %v737_v24 = vmul.f32 %v6838_v40, %v6838_v40  ;;  %v878_v60 = vsel %vm289_vm0, %v738_v59, 0.0  ;;  %v6865_v9 = vsub.f32 %v10869_v29, %v572_v30  ;;  %v10873_v59 = vld [vmem:[#allocation65_spill] sm:$0xff]  ;;  %v10887_v40 = vld [vmem:[#allocation14_spill] sm:$0xff] }
 0x123   : > { %10866 = vst [vmem:[#allocation3_spill] sm:$0xff] %v6857_v50  ;;  %v575_v30 = vmul.f32 0.020408163, %v10873_v59 }
 0x124   : > { %10870 = vst [vmem:[#allocation5_spill] sm:$0xff] %v6865_v9  ;;  %v875_v36 = vsel %vm289_vm0, %v737_v24, 0.0  ;;  %v740_v24 = vmul.f32 %v6865_v9, %v6865_v9 }
 0x125   : > { %864 = vadd.xlane.f32.xlu2 %v863_v18  ;;  %861 = vadd.xlane.f32.xlu1 %v860_v12  ;;  %v6830_v12 = vsub.f32 %v10856_v53, %v571_v33  ;;  %v573_v33 = vmul.f32 0.020408163, %v10863_v21  ;;  %v10867_v21 = vld [vmem:[#allocation7_spill] sm:$0xff]  ;;  %v6892_v62 = vsub.f32 %v10878_v15, %v575_v30 }
 0x126   : > { %858 = vadd.xlane.f32.xlu0 %v857_v22  ;;  %v872_v22 = vsel %vm289_vm0, %v736_v42, 0.0  ;;  %v884_v59 = vsel %vm289_vm0, %v740_v24, 0.0 }
 0x127   : > { %10857 = vst [vmem:[#allocation50_spill] sm:$0xff] %v6830_v12  ;;  %v739_v42 = vmul.f32 %v6830_v12, %v6830_v12  ;;  %v743_v24 = vmul.f32 %v6892_v62, %v6892_v62  ;;  %v5886_v12 = vmov 0  }
 0x128   : > { %v6816_v46 = vpop.xlane.xlu2 %486  ;;  %v6818_v49 = vpop.xlane.xlu1 %483  ;;  %10879 = vst [vmem:[#allocation59_spill] sm:$0xff] %v6892_v62  ;;  %v583_v62 = vmul.f32 0.020408163, %v6600_v56  ;;  %v10889_v56 = vld [vmem:[#allocation15_spill] sm:$0xff]  ;;  %5707 = vset.pattern.permute.xlu0 %v5886_v12  ;;  %5709 = vset.pattern.permute.xlu2 %v5886_v12 }
 0x129   : > { %v6825_v18 = vpop.xlane.xlu0 %480  ;;  %5708 = vset.pattern.permute.xlu1 %v5886_v12 }
 0x12d   : > { %873 = vadd.xlane.f32.xlu2 %v872_v22  ;;  %870 = vadd.xlane.f32.xlu1 %v869_v54  ;;  %v6860_v22 = vsub.f32 %v10867_v21, %v573_v33  ;;  %v6884_v21 = vsub.f32 %v10874_v58, %v577_v35  ;;  %v579_v35 = vmul.f32 0.020408163, %v10881_v34  ;;  %v10885_v34 = vld [vmem:[#allocation13_spill] sm:$0xff] }
 0x12e   : > { %867 = vadd.xlane.f32.xlu0 %v866_v44  ;;  %v881_v44 = vsel %vm289_vm0, %v739_v42, 0.0  ;;  %v742_v42 = vmul.f32 %v6857_v50, %v6857_v50 }
 0x12f   : > { %10868 = vst [vmem:[#allocation4_spill] sm:$0xff] %v6860_v22  ;;  %v741_v29 = vmul.f32 %v6860_v22, %v6860_v22 }
 0x130   : > { %v6843_v53 = vpop.xlane.xlu2 %495  ;;  %v6845_v48 = vpop.xlane.xlu1 %492  ;;  %10875 = vst [vmem:[#allocation56_spill] sm:$0xff] %v6884_v21 }
 0x131   : > { %v6852_v54 = vpop.xlane.xlu0 %489  ;;  %v887_v50 = vsel %vm289_vm0, %v741_v29, 0.0  ;;  %v10882_v29 = vld [vmem:[#allocation70_spill] sm:$0xff] }
 0x132   : > { %v578_v30 = vmul.f32 0.020408163, %v10882_v29  ;;  %v893_v29 = vsel %vm289_vm0, %v743_v24, 0.0  ;;  %v6938_v24 = vsub.f32 %v10889_v56, %v583_v62  ;;  %v585_v62 = vmul.f32 0.020408163, %v6629_v6  ;;  %v10897_v6 = vld [vmem:[#allocation19_spill] sm:$0xff] }
 0x134   : > { %v6919_v61 = vsub.f32 %v10887_v40, %v578_v30  ;;  %10890 = vst [vmem:[#allocation62_spill] sm:$0xff] %v6938_v24 }
 0x135   : > { %882 = vadd.xlane.f32.xlu2 %v881_v44  ;;  %879 = vadd.xlane.f32.xlu1 %v878_v60  ;;  %v6887_v44 = vsub.f32 %v10876_v27, %v576_v41  ;;  %v6911_v27 = vsub.f32 %v10883_v11, %v580_v17  ;;  %v582_v17 = vmul.f32 0.020408163, %v6602_v51  ;;  %v10891_v51 = vld [vmem:[#allocation16_spill] sm:$0xff] }
 0x136   : > { %876 = vadd.xlane.f32.xlu0 %v875_v36  ;;  %v890_v36 = vsel %vm289_vm0, %v742_v42, 0.0  ;;  %v745_v42 = vmul.f32 %v6884_v21, %v6884_v21  ;;  %10888 = vst [vmem:[#allocation8_spill] sm:$0xff] %v6919_v61  ;;  %v746_v30 = vmul.f32 %v6919_v61, %v6919_v61  ;;  %v10899_v61 = vld [vmem:[#allocation20_spill] sm:$0xff] }
 0x137   : > { %10877 = vst [vmem:[#allocation57_spill] sm:$0xff] %v6887_v44  ;;  %v744_v15 = vmul.f32 %v6887_v44, %v6887_v44  ;;  %v10893_v44 = vld [vmem:[#allocation17_spill] sm:$0xff] }
 0x138   : > { %v6870_v1 = vpop.xlane.xlu2 %504  ;;  %v6872_v33 = vpop.xlane.xlu1 %501  ;;  %10884 = vst [vmem:[#allocation6_spill] sm:$0xff] %v6911_v27 }
 0x139   : > { %v6879_v60 = vpop.xlane.xlu0 %498  ;;  %v896_v21 = vsel %vm289_vm0, %v744_v15, 0.0  ;;  %v581_v15 = vmul.f32 0.020408163, %v6609_v55  ;;  %v902_v55 = vsel %vm289_vm0, %v746_v30, 0.0 }
 0x13d   : > { %891 = vadd.xlane.f32.xlu2 %v890_v36  ;;  %888 = vadd.xlane.f32.xlu1 %v887_v50  ;;  %v6914_v36 = vsub.f32 %v10885_v34, %v579_v35  ;;  %v6941_v34 = vsub.f32 %v10891_v51, %v582_v17 }
 0x13e   : > { %885 = vadd.xlane.f32.xlu0 %v884_v59  ;;  %v899_v59 = vsel %vm289_vm0, %v745_v42, 0.0  ;;  %v748_v42 = vmul.f32 %v6911_v27, %v6911_v27  ;;  %v6946_v27 = vsub.f32 %v10893_v44, %v581_v15 }
 0x13f   : > { %10886 = vst [vmem:[#allocation7_spill] sm:$0xff] %v6914_v36  ;;  %v747_v40 = vmul.f32 %v6914_v36, %v6914_v36  ;;  %v586_v36 = vmul.f32 0.020408163, %v6627_v3  ;;  %v750_v44 = vmul.f32 %v6941_v34, %v6941_v34  ;;  %v10895_v3 = vld [vmem:[#allocation18_spill] sm:$0xff] }
 0x140   : > { %v6897_v58 = vpop.xlane.xlu2 %513  ;;  %v6899_v41 = vpop.xlane.xlu1 %510  ;;  %10892 = vst [vmem:[#allocation63_spill] sm:$0xff] %v6941_v34  ;;  %v749_v30 = vmul.f32 %v6946_v27, %v6946_v27  ;;  %v10905_v34 = vld [vmem:[#allocation23_spill] sm:$0xff] }
 0x141   : > { %v6906_v50 = vpop.xlane.xlu0 %507  ;;  %10894 = vst [vmem:[#allocation65_spill] sm:$0xff] %v6946_v27  ;;  %v6965_v51 = vsub.f32 %v10895_v3, %v586_v36  ;;  %v589_v27 = vmul.f32 0.020408163, %v6654_v39  ;;  %v588_v36 = vmul.f32 0.020408163, %v6656_v13  ;;  %v10901_v39 = vld [vmem:[#allocation21_spill] sm:$0xff] }
 0x142   : > { %v10903_v13 = vld [vmem:[#allocation22_spill] sm:$0xff] }
 0x143   : > { %10896 = vst [vmem:[#allocation9_spill] sm:$0xff] %v6965_v51 }
 0x145   : > { %900 = vadd.xlane.f32.xlu2 %v899_v59  ;;  %897 = vadd.xlane.f32.xlu1 %v896_v21  ;;  %v908_v59 = vsel %vm289_vm0, %v748_v42, 0.0  ;;  %v751_v42 = vmul.f32 %v6938_v24, %v6938_v24 }
 0x146   : > { %894 = vadd.xlane.f32.xlu0 %v893_v29  ;;  %v905_v29 = vsel %vm289_vm0, %v747_v40, 0.0  ;;  %v584_v40 = vmul.f32 0.020408163, %v6636_v8  ;;  %v911_v8 = vsel %vm289_vm0, %v749_v30, 0.0 }
 0x148   : > { %v6924_v11 = vpop.xlane.xlu2 %522  ;;  %v6926_v35 = vpop.xlane.xlu1 %519  ;;  %v6973_v24 = vsub.f32 %v10899_v61, %v584_v40 }
 0x149   : > { %v6933_v21 = vpop.xlane.xlu0 %516 }
 0x14a   : > { %10900 = vst [vmem:[#allocation11_spill] sm:$0xff] %v6973_v24  ;;  %v752_v30 = vmul.f32 %v6973_v24, %v6973_v24  ;;  %v10911_v24 = vld [vmem:[#allocation26_spill] sm:$0xff] }
 0x14d   : > { %909 = vadd.xlane.f32.xlu2 %v908_v59  ;;  %906 = vadd.xlane.f32.xlu1 %v905_v29  ;;  %v6968_v59 = vsub.f32 %v10897_v6, %v585_v62  ;;  %v917_v29 = vsel %vm289_vm0, %v751_v42, 0.0  ;;  %v754_v42 = vmul.f32 %v6965_v51, %v6965_v51  ;;  %v6992_v6 = vsub.f32 %v10901_v39, %v589_v27 }
 0x14e   : > { %903 = vadd.xlane.f32.xlu0 %v902_v55  ;;  %v914_v55 = vsel %vm289_vm0, %v750_v44, 0.0  ;;  %v587_v44 = vmul.f32 0.020408163, %v6663_v7  ;;  %v920_v7 = vsel %vm289_vm0, %v752_v30, 0.0  ;;  %v591_v27 = vmul.f32 0.020408163, %v6683_v19 }
 0x14f   : > { %10898 = vst [vmem:[#allocation10_spill] sm:$0xff] %v6968_v59  ;;  %v753_v61 = vmul.f32 %v6968_v59, %v6968_v59  ;;  %v592_v59 = vmul.f32 0.020408163, %v6681_v28  ;;  %v10907_v28 = vld [vmem:[#allocation24_spill] sm:$0xff]  ;;  %v10909_v19 = vld [vmem:[#allocation25_spill] sm:$0xff] }
 0x150   : > { %v6951_v56 = vpop.xlane.xlu2 %531  ;;  %v6953_v17 = vpop.xlane.xlu1 %528  ;;  %10902 = vst [vmem:[#allocation68_spill] sm:$0xff] %v6992_v6  ;;  %v7000_v51 = vsub.f32 %v10905_v34, %v587_v44 }
 0x151   : > { %v6960_v15 = vpop.xlane.xlu0 %525 }
 0x152   : > { %10906 = vst [vmem:[#allocation70_spill] sm:$0xff] %v7000_v51  ;;  %v755_v30 = vmul.f32 %v7000_v51, %v7000_v51  ;;  %v595_v51 = vmul.f32 0.020408163, %v6708_v47  ;;  %v10913_v47 = vld [vmem:[#allocation27_spill] sm:$0xff] }
 0x155   : > { %918 = vadd.xlane.f32.xlu2 %v917_v29  ;;  %915 = vadd.xlane.f32.xlu1 %v914_v55  ;;  %v6995_v29 = vsub.f32 %v10903_v13, %v588_v36  ;;  %v926_v55 = vsel %vm289_vm0, %v754_v42, 0.0  ;;  %v757_v42 = vmul.f32 %v6992_v6, %v6992_v6  ;;  %v7019_v13 = vsub.f32 %v10907_v28, %v592_v59 }
 0x156   : > { %912 = vadd.xlane.f32.xlu0 %v911_v8  ;;  %v923_v8 = vsel %vm289_vm0, %v753_v61, 0.0  ;;  %v590_v61 = vmul.f32 0.020408163, %v6690_v14  ;;  %v929_v14 = vsel %vm289_vm0, %v755_v30, 0.0  ;;  %v594_v59 = vmul.f32 0.020408163, %v6710_v25 }
 0x157   : > { %10904 = vst [vmem:[#allocation69_spill] sm:$0xff] %v6995_v29  ;;  %v756_v34 = vmul.f32 %v6995_v29, %v6995_v29  ;;  %v10915_v25 = vld [vmem:[#allocation28_spill] sm:$0xff] }
 0x158   : > { %v6978_v3 = vpop.xlane.xlu2 %540  ;;  %v6980_v62 = vpop.xlane.xlu1 %537  ;;  %10908 = vst [vmem:[#allocation12_spill] sm:$0xff] %v7019_v13  ;;  %v7027_v6 = vsub.f32 %v10911_v24, %v590_v61 }
 0x159   : > { %v6987_v40 = vpop.xlane.xlu0 %534 }
 0x15a   : > { %10912 = vst [vmem:[#allocation14_spill] sm:$0xff] %v7027_v6  ;;  %v758_v30 = vmul.f32 %v7027_v6, %v7027_v6  ;;  %v598_v6 = vmul.f32 0.020408163, %v6735_v23  ;;  %v10919_v23 = vld [vmem:[#allocation30_spill] sm:$0xff] }
 0x15d   : > { %927 = vadd.xlane.f32.xlu2 %v926_v55  ;;  %924 = vadd.xlane.f32.xlu1 %v923_v8  ;;  %v7022_v55 = vsub.f32 %v10909_v19, %v591_v27  ;;  %v935_v8 = vsel %vm289_vm0, %v757_v42, 0.0  ;;  %v760_v42 = vmul.f32 %v7019_v13, %v7019_v13  ;;  %v7046_v19 = vsub.f32 %v10913_v47, %v595_v51  ;;  %v10917_v13 = vld [vmem:[#allocation29_spill] sm:$0xff] }
 0x15e   : > { %921 = vadd.xlane.f32.xlu0 %v920_v7  ;;  %v932_v7 = vsel %vm289_vm0, %v756_v34, 0.0  ;;  %v593_v34 = vmul.f32 0.020408163, %v6717_v20  ;;  %v938_v20 = vsel %vm289_vm0, %v758_v30, 0.0  ;;  %v597_v51 = vmul.f32 0.020408163, %v6737_v31 }
 0x15f   : > { %10910 = vst [vmem:[#allocation13_spill] sm:$0xff] %v7022_v55  ;;  %v759_v24 = vmul.f32 %v7022_v55, %v7022_v55  ;;  %v10921_v31 = vld [vmem:[#allocation31_spill] sm:$0xff]  ;;  %v10923_v55 = vld [vmem:[#allocation32_spill] sm:$0xff] }
 0x160   : > { %v7005_v39 = vpop.xlane.xlu2 %801  ;;  %v7007_v36 = vpop.xlane.xlu1 %798  ;;  %10914 = vst [vmem:[#allocation15_spill] sm:$0xff] %v7046_v19  ;;  %v7054_v29 = vsub.f32 %v10917_v13, %v593_v34 }
 0x161   : > { %v7014_v44 = vpop.xlane.xlu0 %795 }
 0x162   : > { %10918 = vst [vmem:[#allocation17_spill] sm:$0xff] %v7054_v29  ;;  %v761_v30 = vmul.f32 %v7054_v29, %v7054_v29  ;;  %v601_v29 = vmul.f32 0.020408163, %v6762_v4  ;;  %v10925_v4 = vld [vmem:[#allocation33_spill] sm:$0xff] }
 0x165   : > { %936 = vadd.xlane.f32.xlu2 %v935_v8  ;;  %933 = vadd.xlane.f32.xlu1 %v932_v7  ;;  %v7049_v8 = vsub.f32 %v10915_v25, %v594_v59  ;;  %v944_v7 = vsel %vm289_vm0, %v760_v42, 0.0  ;;  %v763_v42 = vmul.f32 %v7046_v19, %v7046_v19  ;;  %v7073_v25 = vsub.f32 %v10919_v23, %v598_v6 }
 0x166   : > { %930 = vadd.xlane.f32.xlu0 %v929_v14  ;;  %v941_v14 = vsel %vm289_vm0, %v759_v24, 0.0  ;;  %v596_v24 = vmul.f32 0.020408163, %v6744_v26  ;;  %v947_v26 = vsel %vm289_vm0, %v761_v30, 0.0  ;;  %v600_v6 = vmul.f32 0.020408163, %v6764_v37 }
 0x167   : > { %10916 = vst [vmem:[#allocation16_spill] sm:$0xff] %v7049_v8  ;;  %v762_v13 = vmul.f32 %v7049_v8, %v7049_v8  ;;  %v10927_v37 = vld [vmem:[#allocation34_spill] sm:$0xff]  ;;  %v10929_v8 = vld [vmem:[#allocation35_spill] sm:$0xff] }
 0x168   : > { %v7032_v28 = vpop.xlane.xlu2 %810  ;;  %v7034_v27 = vpop.xlane.xlu1 %807  ;;  %10920 = vst [vmem:[#allocation18_spill] sm:$0xff] %v7073_v25  ;;  %v7081_v19 = vsub.f32 %v10923_v55, %v596_v24 }
 0x169   : > { %v7041_v61 = vpop.xlane.xlu0 %804 }
 0x16a   : > { %10924 = vst [vmem:[#allocation20_spill] sm:$0xff] %v7081_v19  ;;  %v764_v30 = vmul.f32 %v7081_v19, %v7081_v19  ;;  %v604_v19 = vmul.f32 0.020408163, %v6789_v63  ;;  %v10931_v63 = vld [vmem:[#allocation36_spill] sm:$0xff] }
 0x16d   : > { %945 = vadd.xlane.f32.xlu2 %v944_v7  ;;  %942 = vadd.xlane.f32.xlu1 %v941_v14  ;;  %v7076_v7 = vsub.f32 %v10921_v31, %v597_v51  ;;  %v953_v14 = vsel %vm289_vm0, %v763_v42, 0.0  ;;  %v766_v42 = vmul.f32 %v7073_v25, %v7073_v25  ;;  %v7100_v31 = vsub.f32 %v10925_v4, %v601_v29 }
 0x16e   : > { %939 = vadd.xlane.f32.xlu0 %v938_v20  ;;  %v950_v20 = vsel %vm289_vm0, %v762_v13, 0.0  ;;  %v599_v13 = vmul.f32 0.020408163, %v6771_v32  ;;  %v956_v32 = vsel %vm289_vm0, %v764_v30, 0.0  ;;  %v603_v29 = vmul.f32 0.020408163, %v6791_v43 }
 0x16f   : > { %10922 = vst [vmem:[#allocation19_spill] sm:$0xff] %v7076_v7  ;;  %v765_v55 = vmul.f32 %v7076_v7, %v7076_v7  ;;  %v10933_v43 = vld [vmem:[#allocation37_spill] sm:$0xff]  ;;  %v10935_v7 = vld [vmem:[#allocation38_spill] sm:$0xff] }
 0x170   : > { %v7059_v47 = vpop.xlane.xlu2 %819  ;;  %v7061_v59 = vpop.xlane.xlu1 %816  ;;  %10926 = vst [vmem:[#allocation21_spill] sm:$0xff] %v7100_v31  ;;  %v7108_v25 = vsub.f32 %v10929_v8, %v599_v13 }
 0x171   : > { %v7068_v34 = vpop.xlane.xlu0 %813  ;;  %v1054_v12 = vmul.f32 0.020408163, %v7059_v47 }
 0x172   : > { %10930 = vst [vmem:[#allocation23_spill] sm:$0xff] %v7108_v25  ;;  %v767_v30 = vmul.f32 %v7108_v25, %v7108_v25  ;;  %v607_v25 = vmul.f32 0.020408163, %v6816_v46  ;;  %v10937_v46 = vld [vmem:[#allocation39_spill] sm:$0xff] }
 0x173   : > { %v7418_v2 = vadd.f32 1e-05, %v1054_v12 }
 0x175   : > { %954 = vadd.xlane.f32.xlu2 %v953_v14  ;;  %951 = vadd.xlane.f32.xlu1 %v950_v20  ;;  %v7103_v14 = vsub.f32 %v10927_v37, %v600_v6  ;;  %v962_v20 = vsel %vm289_vm0, %v766_v42, 0.0  ;;  %v769_v42 = vmul.f32 %v7100_v31, %v7100_v31  ;;  %v7127_v37 = vsub.f32 %v10931_v63, %v604_v19 }
 0x176   : > { %948 = vadd.xlane.f32.xlu0 %v947_v26  ;;  %v959_v26 = vsel %vm289_vm0, %v765_v55, 0.0  ;;  %v602_v55 = vmul.f32 0.020408163, %v6798_v38  ;;  %v965_v38 = vsel %vm289_vm0, %v767_v30, 0.0  ;;  %v606_v19 = vmul.f32 0.020408163, %v6818_v49 }
 0x177   : > { %10928 = vst [vmem:[#allocation22_spill] sm:$0xff] %v7103_v14  ;;  %v768_v8 = vmul.f32 %v7103_v14, %v7103_v14  ;;  %v10939_v49 = vld [vmem:[#allocation40_spill] sm:$0xff]  ;;  %v10941_v14 = vld [vmem:[#allocation41_spill] sm:$0xff] }
 0x178   : > { %v7086_v23 = vpop.xlane.xlu2 %828  ;;  %v7088_v51 = vpop.xlane.xlu1 %825  ;;  %10932 = vst [vmem:[#allocation24_spill] sm:$0xff] %v7127_v37  ;;  %v7135_v31 = vsub.f32 %v10935_v7, %v602_v55 }
 0x179   : > { %v7095_v24 = vpop.xlane.xlu0 %822  ;;  %v1057_v22 = vmul.f32 0.020408163, %v7086_v23 }
 0x17a   : > { %10936 = vst [vmem:[#allocation26_spill] sm:$0xff] %v7135_v31  ;;  %v770_v30 = vmul.f32 %v7135_v31, %v7135_v31  ;;  %v1055_v52 = vmul.f32 0.020408163, %v7095_v24 }
 0x17d   : > { %963 = vadd.xlane.f32.xlu2 %v962_v20  ;;  %960 = vadd.xlane.f32.xlu1 %v959_v26  ;;  %v7130_v20 = vsub.f32 %v10933_v43, %v603_v29  ;;  %v971_v26 = vsel %vm289_vm0, %v769_v42, 0.0  ;;  %v772_v42 = vmul.f32 %v7127_v37, %v7127_v37  ;;  %v7154_v43 = vsub.f32 %v10937_v46, %v607_v25 }
 0x17e   : > { %957 = vadd.xlane.f32.xlu0 %v956_v32  ;;  %v968_v32 = vsel %vm289_vm0, %v768_v8, 0.0  ;;  %v605_v8 = vmul.f32 0.020408163, %v6825_v18  ;;  %v974_v18 = vsel %vm289_vm0, %v770_v30, 0.0  ;;  %v609_v25 = vmul.f32 0.020408163, %v6845_v48 }
 0x17f   : > { %10934 = vst [vmem:[#allocation25_spill] sm:$0xff] %v7130_v20  ;;  %v771_v7 = vmul.f32 %v7130_v20, %v7130_v20  ;;  %v610_v20 = vmul.f32 0.020408163, %v6843_v53  ;;  %v10943_v53 = vld [vmem:[#allocation42_spill] sm:$0xff]  ;;  %v10945_v48 = vld [vmem:[#allocation43_spill] sm:$0xff] }
 0x180   : > { %v7113_v4 = vpop.xlane.xlu2 %837  ;;  %v7115_v6 = vpop.xlane.xlu1 %834  ;;  %10938 = vst [vmem:[#allocation27_spill] sm:$0xff] %v7154_v43  ;;  %v7162_v37 = vsub.f32 %v10941_v14, %v605_v8 }
 0x181   : > { %v7122_v13 = vpop.xlane.xlu0 %831 }
 0x182   : > { %10942 = vst [vmem:[#allocation29_spill] sm:$0xff] %v7162_v37  ;;  %v773_v30 = vmul.f32 %v7162_v37, %v7162_v37 }
 0x185   : > { %972 = vadd.xlane.f32.xlu2 %v971_v26  ;;  %969 = vadd.xlane.f32.xlu1 %v968_v32  ;;  %v7157_v26 = vsub.f32 %v10939_v49, %v606_v19  ;;  %v980_v32 = vsel %vm289_vm0, %v772_v42, 0.0  ;;  %v775_v42 = vmul.f32 %v7154_v43, %v7154_v43  ;;  %v7181_v49 = vsub.f32 %v10943_v53, %v610_v20  ;;  %v10947_v43 = vld [vmem:[#allocation44_spill] sm:$0xff] }
 0x186   : > { %966 = vadd.xlane.f32.xlu0 %v965_v38  ;;  %v977_v38 = vsel %vm289_vm0, %v771_v7, 0.0  ;;  %v608_v7 = vmul.f32 0.020408163, %v6852_v54  ;;  %v983_v54 = vsel %vm289_vm0, %v773_v30, 0.0  ;;  %v612_v20 = vmul.f32 0.020408163, %v6872_v33 }
 0x187   : > { %10940 = vst [vmem:[#allocation28_spill] sm:$0xff] %v7157_v26  ;;  %v774_v14 = vmul.f32 %v7157_v26, %v7157_v26  ;;  %v613_v26 = vmul.f32 0.020408163, %v6870_v1  ;;  %v10949_v1 = vld [vmem:[#allocation45_spill] sm:$0xff]  ;;  %v10951_v33 = vld [vmem:[#allocation46_spill] sm:$0xff] }
 0x188   : > { %v7140_v63 = vpop.xlane.xlu2 %846  ;;  %v7142_v29 = vpop.xlane.xlu1 %843  ;;  %10944 = vst [vmem:[#allocation30_spill] sm:$0xff] %v7181_v49  ;;  %v7189_v31 = vsub.f32 %v10947_v43, %v608_v7 }
 0x189   : > { %v7149_v55 = vpop.xlane.xlu0 %840  ;;  %v1062_v12 = vmul.f32 0.020408163, %v7142_v29 }
 0x18a   : > { %10948 = vst [vmem:[#allocation32_spill] sm:$0xff] %v7189_v31  ;;  %v776_v30 = vmul.f32 %v7189_v31, %v7189_v31  ;;  %v616_v31 = vmul.f32 0.020408163, %v6897_v58  ;;  %v10955_v58 = vld [vmem:[#allocation48_spill] sm:$0xff] }
 0x18d   : > { %981 = vadd.xlane.f32.xlu2 %v980_v32  ;;  %978 = vadd.xlane.f32.xlu1 %v977_v38  ;;  %v7184_v32 = vsub.f32 %v10945_v48, %v609_v25  ;;  %v989_v38 = vsel %vm289_vm0, %v775_v42, 0.0  ;;  %v778_v42 = vmul.f32 %v7181_v49, %v7181_v49  ;;  %v7208_v48 = vsub.f32 %v10949_v1, %v613_v26  ;;  %v10953_v49 = vld [vmem:[#allocation47_spill] sm:$0xff] }
 0x18e   : > { %975 = vadd.xlane.f32.xlu0 %v974_v18  ;;  %v986_v18 = vsel %vm289_vm0, %v774_v14, 0.0  ;;  %v611_v14 = vmul.f32 0.020408163, %v6879_v60  ;;  %v992_v60 = vsel %vm289_vm0, %v776_v30, 0.0  ;;  %v615_v26 = vmul.f32 0.020408163, %v6899_v41 }
 0x18f   : > { %10946 = vst [vmem:[#allocation31_spill] sm:$0xff] %v7184_v32  ;;  %v777_v43 = vmul.f32 %v7184_v32, %v7184_v32  ;;  %v10957_v41 = vld [vmem:[#allocation49_spill] sm:$0xff]  ;;  %v10959_v32 = vld [vmem:[#allocation52_spill] sm:$0xff] }
 0x190   : > { %v7167_v46 = vpop.xlane.xlu2 %855  ;;  %v7169_v19 = vpop.xlane.xlu1 %852  ;;  %10950 = vst [vmem:[#allocation33_spill] sm:$0xff] %v7208_v48  ;;  %v7216_v37 = vsub.f32 %v10953_v49, %v611_v14 }
 0x191   : > { %v7176_v8 = vpop.xlane.xlu0 %849 }
 0x192   : > { %10954 = vst [vmem:[#allocation35_spill] sm:$0xff] %v7216_v37  ;;  %v779_v30 = vmul.f32 %v7216_v37, %v7216_v37  ;;  %v619_v37 = vmul.f32 0.020408163, %v6924_v11  ;;  %v10961_v11 = vld [vmem:[#allocation54_spill] sm:$0xff] }
 0x195   : > { %990 = vadd.xlane.f32.xlu2 %v989_v38  ;;  %987 = vadd.xlane.f32.xlu1 %v986_v18  ;;  %v7211_v38 = vsub.f32 %v10951_v33, %v612_v20  ;;  %v998_v18 = vsel %vm289_vm0, %v778_v42, 0.0  ;;  %v781_v42 = vmul.f32 %v7208_v48, %v7208_v48  ;;  %v7235_v33 = vsub.f32 %v10955_v58, %v616_v31 }
 0x196   : > { %984 = vadd.xlane.f32.xlu0 %v983_v54  ;;  %v995_v54 = vsel %vm289_vm0, %v777_v43, 0.0  ;;  %v614_v43 = vmul.f32 0.020408163, %v6906_v50  ;;  %v1001_v50 = vsel %vm289_vm0, %v779_v30, 0.0  ;;  %v618_v31 = vmul.f32 0.020408163, %v6926_v35 }
 0x197   : > { %10952 = vst [vmem:[#allocation34_spill] sm:$0xff] %v7211_v38  ;;  %v780_v49 = vmul.f32 %v7211_v38, %v7211_v38  ;;  %v10963_v35 = vld [vmem:[#allocation55_spill] sm:$0xff]  ;;  %v10965_v38 = vld [vmem:[#allocation58_spill] sm:$0xff] }
 0x198   : > { %v7194_v53 = vpop.xlane.xlu2 %864  ;;  %v7196_v25 = vpop.xlane.xlu1 %861  ;;  %10956 = vst [vmem:[#allocation36_spill] sm:$0xff] %v7235_v33  ;;  %v7243_v48 = vsub.f32 %v10959_v32, %v614_v43 }
 0x199   : > { %v7203_v7 = vpop.xlane.xlu0 %858 }
 0x19a   : > { %10960 = vst [vmem:[#allocation38_spill] sm:$0xff] %v7243_v48  ;;  %v782_v30 = vmul.f32 %v7243_v48, %v7243_v48 }
 0x19d   : > { %999 = vadd.xlane.f32.xlu2 %v998_v18  ;;  %996 = vadd.xlane.f32.xlu1 %v995_v54  ;;  %v7238_v18 = vsub.f32 %v10957_v41, %v615_v26  ;;  %v1007_v54 = vsel %vm289_vm0, %v781_v42, 0.0  ;;  %v784_v42 = vmul.f32 %v7235_v33, %v7235_v33  ;;  %v7262_v41 = vsub.f32 %v10961_v11, %v619_v37 }
 0x19e   : > { %993 = vadd.xlane.f32.xlu0 %v992_v60  ;;  %v1004_v60 = vsel %vm289_vm0, %v780_v49, 0.0  ;;  %v617_v49 = vmul.f32 0.020408163, %v6933_v21  ;;  %v1046_v21 = vmul.f32 0.020408163, %v7014_v44 }
 0x19f   : > { %10958 = vst [vmem:[#allocation37_spill] sm:$0xff] %v7238_v18  ;;  %v783_v32 = vmul.f32 %v7238_v18, %v7238_v18  ;;  %v1010_v18 = vsel %vm289_vm0, %v782_v30, 0.0  ;;  %v622_v37 = vmul.f32 0.020408163, %v6951_v56  ;;  %v621_v11 = vmul.f32 0.020408163, %v6953_v17 }
 0x1a0   : > { %v7221_v1 = vpop.xlane.xlu2 %873  ;;  %v7223_v20 = vpop.xlane.xlu1 %870  ;;  %10962 = vst [vmem:[#allocation39_spill] sm:$0xff] %v7262_v41  ;;  %v7270_v33 = vsub.f32 %v10965_v38, %v617_v49  ;;  %v620_v44 = vmul.f32 0.020408163, %v6960_v15  ;;  %v1048_v17 = vmul.f32 0.020408163, %v7005_v39 }
 0x1a1   : > { %v7230_v14 = vpop.xlane.xlu0 %867 }
 0x1a2   : > { %10966 = vst [vmem:[#allocation41_spill] sm:$0xff] %v7270_v33  ;;  %v785_v56 = vmul.f32 %v7270_v33, %v7270_v33 }
 0x1a4   : > { %v1019_v39 = vsel %vm289_vm0, %v785_v56, 0.0 }
 0x1a5   : > { %1008 = vadd.xlane.f32.xlu2 %v1007_v54  ;;  %1005 = vadd.xlane.f32.xlu1 %v1004_v60  ;;  %v7265_v54 = vsub.f32 %v10963_v35, %v618_v31  ;;  %v1016_v60 = vsel %vm289_vm0, %v784_v42, 0.0  ;;  %v787_v42 = vmul.f32 %v7262_v41, %v7262_v41 }
 0x1a6   : > { %1002 = vadd.xlane.f32.xlu0 %v1001_v50  ;;  %v1013_v50 = vsel %vm289_vm0, %v783_v32, 0.0  ;;  %v7285_v32 = vadd.f32 1e-05, %v1046_v21  ;;  %v10971_v21 = vld [vmem:[#allocation64_spill] sm:$0xff] }
 0x1a7   : > { %10964 = vst [vmem:[#allocation40_spill] sm:$0xff] %v7265_v54  ;;  %v786_v38 = vmul.f32 %v7265_v54, %v7265_v54  ;;  %v1025_v54 = vsel %vm289_vm0, %v787_v42, 0.0  ;;  %v7302_v41 = vsub.f32 %v10971_v21, %v620_v44  ;;  %v625_v42 = vmul.f32 0.020408163, %v6978_v3  ;;  %v10974_v21 = vld [vmem:[#allocation66_spill] sm:$0xff] }
 0x1a8   : > { %v7248_v58 = vpop.xlane.xlu2 %882  ;;  %v7250_v26 = vpop.xlane.xlu1 %879  ;;  %5710 = vrsqrt.f32 %v7285_v32  ;;  %v1053_v44 = vmul.f32 0.020408163, %v7061_v59  ;;  %vm1304_vm2 = vweird.f32 %v7285_v32 }
 0x1a9   : > { %v7257_v43 = vpop.xlane.xlu0 %876  ;;  %v1022_v15 = vsel %vm289_vm0, %v786_v38, 0.0  ;;  %10972 = vst [vmem:[#allocation44_spill] sm:$0xff] %v7302_v41  ;;  %v624_v38 = vmul.f32 0.020408163, %v6980_v62  ;;  %v788_v3 = vmul.f32 %v7302_v41, %v7302_v41  ;;  %v1049_v62 = vmul.f32 0.020408163, %v7041_v61 }
 0x1ad   : > { %1017 = vadd.xlane.f32.xlu2 %v1016_v60  ;;  %1014 = vadd.xlane.f32.xlu1 %v1013_v50  ;;  %v1047_v60 = vmul.f32 0.020408163, %v7007_v36  ;;  %v10969_v50 = vld [vmem:[#allocation61_spill] sm:$0xff] }
 0x1ae   : > { %1011 = vadd.xlane.f32.xlu0 %v1010_v18  ;;  %v10967_v18 = vld [vmem:[#allocation60_spill] sm:$0xff]  ;;  %v7297_v48 = vsub.f32 %v10969_v50, %v621_v11  ;;  %v7329_v59 = vpop.eup %5710 }
 0x1af   : > { %v7293_v30 = vsub.f32 %v10967_v18, %v622_v37  ;;  %v7306_v37 = vadd.f32 1e-05, %v1048_v17  ;;  %v7308_v36 = vadd.f32 1e-05, %v1047_v60  ;;  %v623_v17 = vmul.f32 0.020408163, %v6987_v40 }
 0x1b0   : > { %v7276_v31 = vpop.xlane.xlu2 %891  ;;  %v7278_v35 = vpop.xlane.xlu1 %888  ;;  %10970 = vst [vmem:[#allocation43_spill] sm:$0xff] %v7297_v48  ;;  %v789_v56 = vmul.f32 %v7297_v48, %v7297_v48  ;;  %v1050_v60 = vmul.f32 0.020408163, %v7034_v27  ;;  %v10976_v40 = vld [vmem:[#allocation67_spill] sm:$0xff]  ;;  %v1028_v48 = vsel %vm289_vm0, %v788_v3, 0.0  ;;  %vm1305_vm3 = vweird.f32 %v7329_v59 }
 0x1b1   : > { %v7287_v49 = vpop.xlane.xlu0 %885  ;;  %10968 = vst [vmem:[#allocation42_spill] sm:$0xff] %v7293_v30  ;;  %v790_v11 = vmul.f32 %v7293_v30, %v7293_v30  ;;  %5712 = vrsqrt.f32 %v7306_v37  ;;  %v7337_v27 = vsub.f32 %v10976_v40, %v624_v38  ;;  %v7339_v30 = vadd.f32 1e-05, %v1053_v44  ;;  %vm7440_vm4 = vmor %vm1304_vm2, %vm1305_vm3 }
 0x1b2   : > { %5714 = vrsqrt.f32 %v7308_v36  ;;  %v1031_v33 = vsel %vm289_vm0, %v789_v56, 0.0  ;;  %v7343_v41 = vsub.f32 %v6578_v10, %v623_v17  ;;  %v7345_v61 = vadd.f32 1e-05, %v1050_v60 }
 0x1b3   : > { %10977 = vst [vmem:[#allocation47_spill] sm:$0xff] %v7337_v27  ;;  %v1051_v38 = vmul.f32 0.020408163, %v7032_v28  ;;  %5716 = vrsqrt.f32 %v7339_v30  ;;  %v1056_v10 = vmul.f32 0.020408163, %v7088_v51  ;;  %v792_v60 = vmul.f32 %v7337_v27, %v7337_v27 }
 0x1b4   : > { %10978 = vst [vmem:[#allocation48_spill] sm:$0xff] %v7343_v41  ;;  %5718 = vrsqrt.f32 %v7345_v61  ;;  %vm1324_vm1 = vweird.f32 %v7306_v37  ;;  %vm1314_vm6 = vweird.f32 %v7308_v36  ;;  %vm1374_vm10 = vweird.f32 %v7339_v30 }
 0x1b5   : > { %1026 = vadd.xlane.f32.xlu2 %v1025_v54  ;;  %1023 = vadd.xlane.f32.xlu1 %v1022_v15  ;;  %v1034_v15 = vsel %vm289_vm0, %v790_v11, 0.0  ;;  %v1299_v11 = vmul.f32 %v7329_v59, %v7285_v32  ;;  %v7381_v27 = vadd.f32 1e-05, %v1056_v10  ;;  %vm1344_vm12 = vweird.f32 %v7345_v61 }
 0x1b6   : > { %1020 = vadd.xlane.f32.xlu0 %v1019_v39  ;;  %v7334_v39 = vsub.f32 %v10974_v21, %v625_v42  ;;  %v7350_v42 = vadd.f32 1e-05, %v1049_v62  ;;  %v1052_v62 = vmul.f32 0.020408163, %v7068_v34  ;;  %v7377_v21 = vadd.f32 1e-05, %v1051_v38 }
 0x1b7   : > { %v7353_v44 = vpop.eup %5712  ;;  %v1300_v51 = vmul.f32 %v7329_v59, %v1299_v11 }
 0x1b8   : > { %v7315_v18 = vpop.xlane.xlu2 %900  ;;  %v7317_v54 = vpop.xlane.xlu1 %897  ;;  %10975 = vst [vmem:[#allocation46_spill] sm:$0xff] %v7334_v39  ;;  %5720 = vrsqrt.f32 %v7350_v42  ;;  %v7388_v0 = vadd.f32 1e-05, %v1052_v62  ;;  %vm1325_vm5 = vweird.f32 %v7353_v44  ;;  %vm1334_vm8 = vweird.f32 %v7350_v42 }
 0x1b9   : > { %v7323_v50 = vpop.xlane.xlu0 %894  ;;  %v7365_v3 = vpop.eup %5714  ;;  %v1301_v38 = vmul.f32 0.5, %v1300_v51  ;;  %5722 = vrsqrt.f32 %v7377_v21  ;;  %vm7485_vm11 = vmor %vm1324_vm1, %vm1325_vm5 }
 0x1ba   : > { %10973 = vst [vmem:[#allocation45_spill] sm:$0xff] %v7323_v50  ;;  %v1309_v40 = vmul.f32 %v7365_v3, %v7308_v36  ;;  %v7386_v11 = vpop.eup %5716  ;;  %5724 = vrsqrt.f32 %v7381_v27  ;;  %vm1315_vm7 = vweird.f32 %v7365_v3 }
 0x1bb   : > { %v7390_v10 = vpop.eup %5718  ;;  %v1369_v62 = vmul.f32 %v7386_v11, %v7339_v30  ;;  %5726 = vrsqrt.f32 %v7388_v0  ;;  %vm7496_vm13 = vmor %vm1314_vm6, %vm1315_vm7  ;;  %vm1375_vm14 = vweird.f32 %v7386_v11  ;;  %v1137_v30 = vld [vmem:[%s10611_s1 + $0x38] sm:$0xff]  ;;  %vm1404_vm6 = vweird.f32 %v7381_v27 }
 0x1bc   : > { %vm1345_vm15 = vweird.f32 %v7390_v10  ;;  %vm7538_vm1 = vmor %vm1374_vm10, %vm1375_vm14  ;;  %vm1364_vm10 = vweird.f32 %v7388_v0 }
 0x1bd   : > { %1035 = vadd.xlane.f32.xlu2 %v1034_v15  ;;  %1032 = vadd.xlane.f32.xlu1 %v1031_v33  ;;  %v793_v33 = vmul.f32 %v7334_v39, %v7334_v39  ;;  %v1319_v15 = vmul.f32 %v7353_v44, %v7306_v37  ;;  %v1065_v37 = vmul.f32 0.020408163, %v7169_v19  ;;  %v1131_v19 = vld [vmem:[%s10611_s1 + $0x8] sm:$0xff]  ;;  %vm7581_vm5 = vmor %vm1344_vm12, %vm1345_vm15 }
 0x1be   : > { %1029 = vadd.xlane.f32.xlu0 %v1028_v48  ;;  %v791_v48 = vmul.f32 %v7343_v41, %v7343_v41  ;;  %v1040_v41 = vsel %vm289_vm0, %v792_v60, 0.0  ;;  %v7394_v60 = vpop.eup %5720 }
 0x1bf   : > { %v1043_v39 = vsel %vm289_vm0, %v793_v33, 0.0  ;;  %v1320_v33 = vmul.f32 %v7353_v44, %v1319_v15  ;;  %v7416_v47 = vpop.eup %5722  ;;  %vm1335_vm9 = vweird.f32 %v7394_v60 }
 0x1c0   : > { %v7357_v56 = vpop.xlane.xlu2 %909  ;;  %v7359_v17 = vpop.xlane.xlu1 %906  ;;  %v1037_v34 = vsel %vm289_vm0, %v791_v48, 0.0  ;;  %v1349_v29 = vmul.f32 %v7416_v47, %v7377_v21  ;;  %vm1355_vm2 = vweird.f32 %v7416_v47  ;;  %vm7562_vm3 = vmor %vm1334_vm8, %vm1335_vm9  ;;  %vm1354_vm9 = vweird.f32 %v7377_v21 }
 0x1c1   : > { %10979 = vst [vmem:[#allocation49_spill] sm:$0xff] %v7357_v56  ;;  %v7368_v28 = vpop.xlane.xlu0 %903  ;;  %v1321_v57 = vmul.f32 0.5, %v1320_v33  ;;  %v7421_v16 = vpop.eup %5724 }
 0x1c2   : > { %10980 = vst [vmem:[#allocation52_spill] sm:$0xff] %v7368_v28  ;;  %v7430_v9 = vpop.eup %5726 }
 0x1c3   : > { %vm1365_vm7 = vweird.f32 %v7430_v9 }
 0x1c5   : > { %1044 = vadd.xlane.f32.xlu2 %v1043_v39  ;;  %1041 = vadd.xlane.f32.xlu1 %v1040_v41  ;;  %v1310_v39 = vmul.f32 %v7365_v3, %v1309_v40  ;;  %v1059_v41 = vmul.f32 0.020408163, %v7115_v6  ;;  %v1339_v40 = vmul.f32 %v7390_v10, %v7345_v61  ;;  %v1329_v6 = vmul.f32 %v7394_v60, %v7350_v42  ;;  %v1133_v61 = vld [vmem:[%s10611_s1 + $0x18] sm:$0xff] }
 0x1c6   : > { %1038 = vadd.xlane.f32.xlu0 %v1037_v34  ;;  %v1302_v34 = vsub.f32 1.5, %v1301_v38  ;;  %v1370_v38 = vmul.f32 %v7386_v11, %v1369_v62 }
 0x1c7   : > { %v1311_v5 = vmul.f32 0.5, %v1310_v39  ;;  %v7414_v45 = vadd.f32 1e-05, %v1059_v41  ;;  %v1322_v39 = vsub.f32 1.5, %v1321_v57  ;;  %v1340_v24 = vmul.f32 %v7390_v10, %v1339_v40 }
 0x1c8   : > { %v7399_v48 = vpop.xlane.xlu2 %918  ;;  %v7401_v51 = vpop.xlane.xlu1 %915  ;;  %v1303_v33 = vmul.f32 %v7329_v59, %v1302_v34  ;;  %v1330_v41 = vmul.f32 %v7394_v60, %v1329_v6  ;;  %v1058_v40 = vmul.f32 0.020408163, %v7122_v13  ;;  %v7466_v13 = vadd.f32 1e-05, %v1057_v22 }
 0x1c9   : > { %10981 = vst [vmem:[#allocation54_spill] sm:$0xff] %v7399_v48  ;;  %v7406_v15 = vpop.xlane.xlu0 %912  ;;  %v1312_v62 = vsub.f32 1.5, %v1311_v5  ;;  %v7433_v48 = vadd.f32 1e-05, %v1055_v52  ;;  %5728 = vrsqrt.f32 %v7414_v45  ;;  %v1371_v5 = vmul.f32 0.5, %v1370_v38 }
 0x1ca   : > { %10982 = vst [vmem:[#allocation55_spill] sm:$0xff] %v7401_v51  ;;  %5730 = vrsqrt.f32 %v7418_v2  ;;  %v1399_v52 = vmul.f32 %v7421_v16, %v7381_v27  ;;  %v1307_v6 = vsel %vm7440_vm4, %v7329_v59, %v1303_v33  ;;  %v1359_v38 = vmul.f32 %v7430_v9, %v7388_v0 }
 0x1cb   : > { %10983 = vst [vmem:[#allocation58_spill] sm:$0xff] %v7406_v15  ;;  %v1331_v15 = vmul.f32 0.5, %v1330_v41  ;;  %v1323_v28 = vmul.f32 %v7353_v44, %v1322_v39  ;;  %5732 = vrsqrt.f32 %v7433_v48  ;;  %v1313_v59 = vmul.f32 %v7365_v3, %v1312_v62 }
 0x1cc   : > { %v1350_v33 = vmul.f32 %v7416_v47, %v1349_v29  ;;  %v1400_v41 = vmul.f32 %v7421_v16, %v1399_v52  ;;  %v7477_v39 = vadd.f32 1e-05, %v1058_v40  ;;  %v1360_v52 = vmul.f32 %v7430_v9, %v1359_v38  ;;  %v1132_v40 = vld [vmem:[%s10611_s1 + $0x10] sm:$0xff] }
 0x1cd   : > { %v1327_v36 = vsel %vm7485_vm11, %v7353_v44, %v1323_v28  ;;  %v1060_v28 = vmul.f32 0.020408163, %v7113_v4  ;;  %v7542_v4 = vadd.f32 1e-05, %v1065_v37  ;;  %vm1405_vm4 = vweird.f32 %v7421_v16  ;;  %vm7638_vm11 = vmor %vm1354_vm9, %vm1355_vm2 }
 0x1ce   : > { %v1401_v38 = vmul.f32 0.5, %v1400_v41  ;;  %v1351_v62 = vmul.f32 0.5, %v1350_v33  ;;  %v1361_v41 = vmul.f32 0.5, %v1360_v52  ;;  %v2140_v50 = vmul.f32 %v1327_v36, %v1132_v40  ;;  %vm7617_vm8 = vmor %vm1404_vm6, %vm1405_vm4 }
 0x1cf   : > { %vm1434_vm15 = vweird.f32 %v7414_v45  ;;  %vm1394_vm4 = vweird.f32 %v7433_v48 }
 0x1d0   : > { %v7436_v34 = vpop.xlane.xlu2 %927  ;;  %v7438_v32 = vpop.xlane.xlu1 %924  ;;  %v1352_v37 = vsub.f32 1.5, %v1351_v62  ;;  %v1362_v40 = vsub.f32 1.5, %v1361_v41 }
 0x1d1   : > { %10984 = vst [vmem:[#allocation60_spill] sm:$0xff] %v7436_v34  ;;  %v7449_v23 = vpop.xlane.xlu0 %921  ;;  %v1341_v34 = vmul.f32 0.5, %v1340_v24  ;;  %v1372_v24 = vsub.f32 1.5, %v1371_v5  ;;  %v1332_v5 = vsub.f32 1.5, %v1331_v15 }
 0x1d2   : > { %10985 = vst [vmem:[#allocation61_spill] sm:$0xff] %v7438_v32  ;;  %v7459_v32 = vadd.f32 1e-05, %v1062_v12  ;;  %v7473_v12 = vpop.eup %5728 }
 0x1d3   : > { %10988 = vst [vmem:[#allocation64_spill] sm:$0xff] %v7449_v23  ;;  %v1130_v23 = vld [vmem:[%s10611_s1] sm:$0xff]  ;;  %v7479_v57 = vpop.eup %5730  ;;  %v1342_v29 = vsub.f32 1.5, %v1341_v34  ;;  %v1429_v56 = vmul.f32 %v7473_v12, %v7414_v45  ;;  %vm1435_vm12 = vweird.f32 %v7473_v12 }
 0x1d4   : > { %v2138_v22 = vmul.f32 %v1307_v6, %v1130_v23  ;;  %5734 = vrsqrt.f32 %v7459_v32  ;;  %v1373_v6 = vmul.f32 %v7386_v11, %v1372_v24  ;;  %v1379_v44 = vmul.f32 %v7479_v57, %v7418_v2 }
 0x1d5   : > { %5736 = vrsqrt.f32 %v7466_v13  ;;  %v1333_v24 = vmul.f32 %v7394_v60, %v1332_v5  ;;  %v1343_v23 = vmul.f32 %v7390_v10, %v1342_v29  ;;  %v1430_v29 = vmul.f32 %v7473_v12, %v1429_v56 }
 0x1d6   : > { %5738 = vrsqrt.f32 %v7477_v39  ;;  %v1377_v5 = vsel %vm7538_vm1, %v7386_v11, %v1373_v6  ;;  %vm1385_vm14 = vweird.f32 %v7479_v57  ;;  %vm7687_vm1 = vmor %vm1434_vm15, %vm1435_vm12  ;;  %vm1464_vm9 = vweird.f32 %v7459_v32 }
 0x1d7   : > { %v1337_v36 = vsel %vm7562_vm3, %v7394_v60, %v1333_v24  ;;  %5740 = vrsqrt.f32 %v7542_v4  ;;  %v2145_v62 = vmul.f32 %v1377_v5, %v1137_v30  ;;  %v1431_v24 = vmul.f32 0.5, %v1430_v29 }
 0x1d8   : > { %v7503_v34 = vpop.xlane.xlu2 %936  ;;  %v7505_v15 = vpop.xlane.xlu1 %933  ;;  %v2141_v29 = vmul.f32 %v1337_v36, %v1133_v61  ;;  %v1140_v36 = vld [vmem:[%s10611_s1 + $0x50] sm:$0xff]  ;;  %v1063_v61 = vmul.f32 0.020408163, %v7140_v63  ;;  %v1135_v63 = vld [vmem:[%s10611_s1 + $0x28] sm:$0xff]  ;;  %vm1384_vm3 = vweird.f32 %v7418_v2  ;;  %vm1414_vm12 = vweird.f32 %v7466_v13 }
 0x1d9   : > { %10993 = vst [vmem:[#allocation66_spill] sm:$0xff] %v7503_v34  ;;  %v7516_v51 = vpop.xlane.xlu0 %930  ;;  %v1317_v34 = vsel %vm7496_vm13, %v7365_v3, %v1313_v59  ;;  %v1347_v3 = vsel %vm7581_vm5, %v7390_v10, %v1343_v23  ;;  %vm7649_vm13 = vmor %vm1364_vm10, %vm1365_vm7 }
 0x1da   : > { %10994 = vst [vmem:[#allocation67_spill] sm:$0xff] %v7505_v15  ;;  %v7524_v15 = vpop.eup %5732  ;;  %2224 = vperm.xlu0 %5707, %v2138_v22   ;;  %v2139_v59 = vmul.f32 %v1317_v34, %v1131_v19  ;;  %v1402_v22 = vsub.f32 1.5, %v1401_v38  ;;  %v7567_v34 = vadd.f32 1e-05, %v1060_v28  ;;  %vm7710_vm5 = vmor %vm1384_vm3, %vm1385_vm14  ;;  %vm1424_vm14 = vweird.f32 %v7477_v39 }
 0x1db   : > { %10995 = vst [vmem:[#allocation97_spill] sm:$0xff] %v7516_v51  ;;  %v1061_v51 = vmul.f32 0.020408163, %v7149_v55  ;;  %v7544_v33 = vpop.eup %5734  ;;  %v1389_v55 = vmul.f32 %v7524_v15, %v7433_v48  ;;  %vm1395_vm2 = vweird.f32 %v7524_v15  ;;  %vm1494_vm3 = vweird.f32 %v7542_v4 }
 0x1dc   : > { %v7555_v52 = vpop.eup %5736  ;;  %v1459_v38 = vmul.f32 %v7544_v33, %v7459_v32  ;;  %5742 = vrsqrt.f32 %v7567_v34  ;;  %vm1465_vm6 = vweird.f32 %v7544_v33  ;;  %vm7719_vm7 = vmor %vm1394_vm4, %vm1395_vm2 }
 0x1dd   : > { %2234 = vperm.xlu2 %5709, %v2140_v50   ;;  %v1380_v50 = vmul.f32 %v7479_v57, %v1379_v44  ;;  %v7570_v11 = vadd.f32 1e-05, %v1061_v51  ;;  %v7575_v6 = vpop.eup %5738  ;;  %v1068_v51 = vmul.f32 0.020408163, %v7196_v25  ;;  %v1403_v44 = vmul.f32 %v7421_v16, %v1402_v22  ;;  %v1134_v25 = vld [vmem:[%s10611_s1 + $0x20] sm:$0xff] }
 0x1de   : > { %2229 = vperm.xlu1 %5708, %v2139_v59   ;;  %v1390_v28 = vmul.f32 %v7524_v15, %v1389_v55  ;;  %v1353_v59 = vmul.f32 %v7416_v47, %v1352_v37  ;;  %v1409_v30 = vmul.f32 %v7555_v52, %v7466_v13  ;;  %v1419_v55 = vmul.f32 %v7575_v6, %v7477_v39 }
 0x1df   : > { %v1381_v22 = vmul.f32 0.5, %v1380_v50  ;;  %5744 = vrsqrt.f32 %v7570_v11  ;;  %v1460_v27 = vmul.f32 %v7544_v33, %v1459_v38  ;;  %v7622_v23 = vadd.f32 1e-05, %v1068_v51 }
 0x1e0   : > { %v7589_v19 = vpop.xlane.xlu2 %945  ;;  %v7591_v60 = vpop.xlane.xlu1 %942  ;;  %v2142_v5 = vmul.f32 %v1347_v3, %v1134_v25  ;;  %v1363_v37 = vmul.f32 %v7430_v9, %v1362_v40  ;;  %v1391_v56 = vmul.f32 0.5, %v1390_v28  ;;  %v1432_v50 = vsub.f32 1.5, %v1431_v24 }
 0x1e1   : > { %11002 = vst [vmem:[#allocation98_spill] sm:$0xff] %v7589_v19  ;;  %v7598_v41 = vpop.xlane.xlu0 %939  ;;  %v1407_v42 = vsel %vm7617_vm8, %v7421_v16, %v1403_v44  ;;  %v1410_v38 = vmul.f32 %v7555_v52, %v1409_v30  ;;  %v1382_v51 = vsub.f32 1.5, %v1381_v22  ;;  %v1420_v16 = vmul.f32 %v7575_v6, %v1419_v55 }
 0x1e2   : > { %2259 = vperm.xlu0 %5707, %v2145_v62   ;;  %v7631_v62 = vpop.eup %5740  ;;  %v1461_v21 = vmul.f32 0.5, %v1460_v27  ;;  %5746 = vrsqrt.f32 %v7622_v23  ;;  %v2148_v25 = vmul.f32 %v1407_v42, %v1140_v36  ;;  %v1357_v3 = vsel %vm7638_vm11, %v7416_v47, %v1353_v59  ;;  %v1136_v27 = vld [vmem:[%s10611_s1 + $0x30] sm:$0xff]  ;;  %vm7755_vm11 = vmor %vm1464_vm9, %vm1465_vm6 }
 0x1e3   : > { %v7645_v44 = vpop.eup %5742  ;;  %v1392_v22 = vsub.f32 1.5, %v1391_v56  ;;  %v1433_v55 = vmul.f32 %v7473_v12, %v1432_v50  ;;  %v1411_v47 = vmul.f32 0.5, %v1410_v38  ;;  %v1064_v59 = vmul.f32 0.020408163, %v7176_v8 }
 0x1e4   : > { %v1439_v56 = vmul.f32 %v7645_v44, %v7567_v34  ;;  %v1421_v50 = vmul.f32 0.5, %v1420_v16  ;;  %v7682_v36 = vadd.f32 1e-05, %v1063_v61  ;;  %v2143_v42 = vmul.f32 %v1357_v3, %v1135_v63 }
 0x1e5   : > { %2239 = vperm.xlu2 %5709, %v2141_v29   ;;  %v7664_v30 = vpop.eup %5744  ;;  %v1489_v29 = vmul.f32 %v7631_v62, %v7542_v4  ;;  %v1383_v40 = vmul.f32 %v7479_v57, %v1382_v51  ;;  %v1393_v38 = vmul.f32 %v7524_v15, %v1392_v22  ;;  %v1143_v51 = vld [vmem:[%s10611_s1 + $0x68] sm:$0xff]  ;;  %v1437_v61 = vsel %vm7687_vm1, %v7473_v12, %v1433_v55 }
 0x1e6   : > { %2244 = vperm.xlu1 %5708, %v2142_v5   ;;  %v1367_v5 = vsel %vm7649_vm13, %v7430_v9, %v1363_v37  ;;  %v1462_v37 = vsub.f32 1.5, %v1461_v21  ;;  %v1449_v45 = vmul.f32 %v7664_v30, %v7570_v11  ;;  %v1412_v21 = vsub.f32 1.5, %v1411_v47  ;;  %v1139_v9 = vld [vmem:[%s10611_s1 + $0x48] sm:$0xff] }
 0x1e7   : > { %v2144_v8 = vmul.f32 %v1367_v5, %v1136_v27  ;;  %v1490_v16 = vmul.f32 %v7631_v62, %v1489_v29  ;;  %v1440_v3 = vmul.f32 %v7645_v44, %v1439_v56  ;;  %v1422_v22 = vsub.f32 1.5, %v1421_v50  ;;  %v1138_v5 = vld [vmem:[%s10611_s1 + $0x40] sm:$0xff] }
 0x1e8   : > { %v7654_v28 = vpop.xlane.xlu2 %954  ;;  %v7656_v24 = vpop.xlane.xlu1 %951  ;;  %5748 = vrsqrt.f32 %v7682_v36  ;;  %v1463_v48 = vmul.f32 %v7544_v33, %v1462_v37  ;;  %v1450_v12 = vmul.f32 %v7664_v30, %v1449_v45  ;;  %v2151_v27 = vmul.f32 %v1437_v61, %v1143_v51 }
 0x1e9   : > { %11009 = vst [vmem:[#allocation99_spill] sm:$0xff] %v7654_v28  ;;  %v7669_v10 = vpop.xlane.xlu0 %948  ;;  %v7702_v0 = vpop.eup %5746  ;;  %v1387_v47 = vsel %vm7710_vm5, %v7479_v57, %v1383_v40  ;;  %v1071_v50 = vmul.f32 0.020408163, %v7223_v20  ;;  %v1397_v37 = vsel %vm7719_vm7, %v7524_v15, %v1393_v38  ;;  %v1413_v45 = vmul.f32 %v7555_v52, %v1412_v21  ;;  %v11069_v28 = vld [vmem:[#allocation60_spill] sm:$0xff] }
 0x1ea   : > { %11010 = vst [vmem:[#allocation100_spill] sm:$0xff] %v7669_v10  ;;  %2274 = vperm.xlu0 %5707, %v2148_v25   ;;  %v7706_v25 = vadd.f32 1e-05, %v1064_v59  ;;  %v1491_v59 = vmul.f32 0.5, %v1490_v16  ;;  %v1519_v56 = vmul.f32 %v7702_v0, %v7622_v23  ;;  %vm1415_vm8 = vweird.f32 %v7555_v52 }
 0x1eb   : > { %v1441_v57 = vmul.f32 0.5, %v1440_v3  ;;  %v1066_v20 = vmul.f32 0.020408163, %v7167_v46  ;;  %v2146_v40 = vmul.f32 %v1387_v47, %v1138_v5  ;;  %vm1425_vm10 = vweird.f32 %v7575_v6  ;;  %v1146_v46 = vld [vmem:[%s10611_s1 + $0x80] sm:$0xff]  ;;  %vm7774_vm13 = vmor %vm1414_vm12, %vm1415_vm8 }
 0x1ec   : > { %5750 = vrsqrt.f32 %v7706_v25  ;;  %v1451_v38 = vmul.f32 0.5, %v1450_v12  ;;  %v2147_v16 = vmul.f32 %v1397_v37, %v1139_v9  ;;  %v1492_v61 = vsub.f32 1.5, %v1491_v59  ;;  %vm7786_vm15 = vmor %vm1424_vm14, %vm1425_vm10  ;;  %v1142_v9 = vld [vmem:[%s10611_s1 + $0x60] sm:$0xff] }
 0x1ed   : > { %2249 = vperm.xlu2 %5709, %v2143_v42   ;;  %v1520_v32 = vmul.f32 %v7702_v0, %v1519_v56  ;;  %v7762_v21 = vadd.f32 1e-05, %v1071_v50  ;;  %v1467_v63 = vsel %vm7755_vm11, %v7544_v33, %v1463_v48  ;;  %v1067_v3 = vmul.f32 0.020408163, %v7203_v7 }
 0x1ee   : > { %2254 = vperm.xlu1 %5708, %v2144_v8   ;;  %v1423_v8 = vmul.f32 %v7575_v6, %v1422_v22  ;;  %v7759_v51 = vpop.eup %5748  ;;  %v1442_v2 = vsub.f32 1.5, %v1441_v57  ;;  %v7779_v12 = vadd.f32 1e-05, %v1066_v20  ;;  %v1452_v13 = vsub.f32 1.5, %v1451_v38 }
 0x1ef   : > { %vm1495_vm1 = vweird.f32 %v7631_v62  ;;  %v2154_v39 = vmul.f32 %v1467_v63, %v1146_v46  ;;  %v1417_v47 = vsel %vm7774_vm13, %v7555_v52, %v1413_v45  ;;  %v1493_v59 = vmul.f32 %v7631_v62, %v1492_v61  ;;  %v1149_v61 = vld [vmem:[%s10611_s1 + $0x98] sm:$0xff] }
 0x1f0   : > { %v7725_v55 = vpop.xlane.xlu2 %963  ;;  %v7727_v29 = vpop.xlane.xlu1 %960  ;;  %v1521_v56 = vmul.f32 0.5, %v1520_v32  ;;  %5752 = vrsqrt.f32 %v7762_v21  ;;  %v1427_v37 = vsel %vm7786_vm15, %v7575_v6, %v1423_v8  ;;  %vm1445_vm2 = vweird.f32 %v7645_v44  ;;  %vm7826_vm5 = vmor %vm1494_vm3, %vm1495_vm1 }
 0x1f1   : > { %v7738_v42 = vpop.xlane.xlu0 %957  ;;  %v1469_v52 = vmul.f32 %v7759_v51, %v7682_v36  ;;  %v7814_v45 = vadd.f32 1e-05, %v1067_v3  ;;  %v1443_v15 = vmul.f32 %v7645_v44, %v1442_v2  ;;  %vm1455_vm4 = vweird.f32 %v7664_v30 }
 0x1f2   : > { %2289 = vperm.xlu0 %5707, %v2151_v27   ;;  %v1069_v27 = vmul.f32 0.020408163, %v7194_v53  ;;  %v7782_v5 = vpop.eup %5750  ;;  %v1141_v53 = vld [vmem:[%s10611_s1 + $0x58] sm:$0xff]  ;;  %5754 = vrsqrt.f32 %v7779_v12  ;;  %v2150_v8 = vmul.f32 %v1427_v37, %v1142_v9  ;;  %v1453_v4 = vmul.f32 %v7664_v30, %v1452_v13 }
 0x1f3   : > { %v1479_v57 = vmul.f32 %v7782_v5, %v7706_v25  ;;  %v1522_v38 = vsub.f32 1.5, %v1521_v56  ;;  %v1497_v32 = vsel %vm7826_vm5, %v7631_v62, %v1493_v59  ;;  %vm1444_vm6 = vweird.f32 %v7567_v34 }
 0x1f4   : > { %v7819_v20 = vadd.f32 1e-05, %v1069_v27  ;;  %v1470_v46 = vmul.f32 %v7759_v51, %v1469_v52  ;;  %5756 = vrsqrt.f32 %v7814_v45  ;;  %v1070_v63 = vmul.f32 0.020408163, %v7230_v14  ;;  %vm7846_vm7 = vmor %vm1444_vm6, %vm1445_vm2  ;;  %v1144_v27 = vld [vmem:[%s10611_s1 + $0x70] sm:$0xff] }
 0x1f5   : > { %2264 = vperm.xlu2 %5709, %v2146_v40   ;;  %v2149_v40 = vmul.f32 %v1417_v47, %v1141_v53  ;;  %vm1454_vm8 = vweird.f32 %v7570_v11  ;;  %v1480_v62 = vmul.f32 %v7782_v5, %v1479_v57  ;;  %v1072_v34 = vmul.f32 0.020408163, %v7221_v1 }
 0x1f6   : > { %2269 = vperm.xlu1 %5708, %v2147_v16   ;;  %v1074_v16 = vmul.f32 0.020408163, %v7250_v26  ;;  %v7842_v3 = vpop.eup %5752  ;;  %5758 = vrsqrt.f32 %v7819_v20  ;;  %vm7856_vm9 = vmor %vm1454_vm8, %vm1455_vm4  ;;  %v2157_v2 = vmul.f32 %v1497_v32, %v1149_v61  ;;  %v1447_v11 = vsel %vm7846_vm7, %v7645_v44, %v1443_v15 }
 0x1f7   : > { %v1523_v7 = vmul.f32 %v7702_v0, %v1522_v38  ;;  %vm1525_vm10 = vweird.f32 %v7702_v0  ;;  %v1457_v53 = vsel %vm7856_vm9, %v7664_v30, %v1453_v4  ;;  %v1471_v59 = vmul.f32 0.5, %v1470_v46 }
 0x1f8   : > { %v7791_v33 = vpop.xlane.xlu2 %972  ;;  %v7793_v48 = vpop.xlane.xlu1 %969  ;;  %v7870_v1 = vadd.f32 1e-05, %v1074_v16  ;;  %vm1524_vm11 = vweird.f32 %v7622_v23  ;;  %v1549_v44 = vmul.f32 %v7842_v3, %v7762_v21  ;;  %v7885_v56 = vadd.f32 1e-05, %v1070_v63 }
 0x1f9   : > { %v7803_v50 = vpop.xlane.xlu0 %966  ;;  %v7880_v47 = vpop.eup %5754  ;;  %v1481_v37 = vmul.f32 0.5, %v1480_v62  ;;  %v7889_v52 = vadd.f32 1e-05, %v1072_v34  ;;  %v1077_v57 = vmul.f32 0.020408163, %v7278_v35  ;;  %vm7896_vm12 = vmor %vm1524_vm11, %vm1525_vm10  ;;  %v1152_v35 = vld [vmem:[%s10611_s1 + $0xb0] sm:$0xff]  ;;  %vm1475_vm13 = vweird.f32 %v7759_v51 }
 0x1fa   : > { %2304 = vperm.xlu0 %5707, %v2154_v39   ;;  %v1145_v39 = vld [vmem:[%s10611_s1 + $0x78] sm:$0xff]  ;;  %v7892_v30 = vpop.eup %5756  ;;  %5760 = vrsqrt.f32 %v7870_v1  ;;  %v1527_v4 = vsel %vm7896_vm12, %v7702_v0, %v1523_v7  ;;  %v1472_v38 = vsub.f32 1.5, %v1471_v59  ;;  %v1499_v16 = vmul.f32 %v7880_v47, %v7779_v12 }
 0x1fb   : > { %v2153_v15 = vmul.f32 %v1457_v53, %v1145_v39  ;;  %v1550_v61 = vmul.f32 %v7842_v3, %v1549_v44  ;;  %5762 = vrsqrt.f32 %v7885_v56  ;;  %v1482_v32 = vsub.f32 1.5, %v1481_v37 }
 0x1fc   : > { %v7900_v6 = vpop.eup %5758  ;;  %5764 = vrsqrt.f32 %v7889_v52  ;;  %v7917_v46 = vadd.f32 1e-05, %v1077_v57  ;;  %v2160_v26 = vmul.f32 %v1527_v4, %v1152_v35  ;;  %v1075_v62 = vmul.f32 0.020408163, %v7248_v58 }
 0x1fd   : > { %2279 = vperm.xlu2 %5709, %v2149_v40   ;;  %v2152_v40 = vmul.f32 %v1447_v11, %v1144_v27  ;;  %v1529_v0 = vmul.f32 %v7900_v6, %v7819_v20  ;;  %v1500_v27 = vmul.f32 %v7880_v47, %v1499_v16  ;;  %v1551_v11 = vmul.f32 0.5, %v1550_v61  ;;  %v1148_v61 = vld [vmem:[%s10611_s1 + $0x90] sm:$0xff] }
 0x1fe   : > { %2284 = vperm.xlu1 %5708, %v2150_v8   ;;  %v1073_v8 = vmul.f32 0.020408163, %v7257_v43  ;;  %v1509_v43 = vmul.f32 %v7892_v30, %v7814_v45  ;;  %v1483_v39 = vmul.f32 %v7782_v5, %v1482_v32  ;;  %vm1485_vm14 = vweird.f32 %v7782_v5 }
 0x1ff   : > { %5766 = vrsqrt.f32 %v7917_v46  ;;  %vm1474_vm15 = vweird.f32 %v7682_v36  ;;  %v1530_v59 = vmul.f32 %v7900_v6, %v1529_v0  ;;  %vm1484_vm2 = vweird.f32 %v7706_v25  ;;  %v1147_v25 = vld [vmem:[%s10611_s1 + $0x88] sm:$0xff] }
 0x200   : > { %v7860_v22 = vpop.xlane.xlu2 %981  ;;  %v7887_v9 = vpop.xlane.xlu1 %978  ;;  %v7924_v34 = vadd.f32 1e-05, %v1073_v8  ;;  %v1510_v58 = vmul.f32 %v7892_v30, %v1509_v43  ;;  %vm7945_vm1 = vmor %vm1474_vm15, %vm1475_vm13  ;;  %v1076_v23 = vmul.f32 0.020408163, %v7287_v49  ;;  %v1080_v35 = vmul.f32 0.020408163, %v7317_v54 }
 0x201   : > { %v7872_v13 = vpop.xlane.xlu0 %975  ;;  %v7931_v7 = vpop.eup %5760  ;;  %vm7954_vm3 = vmor %vm1484_vm2, %vm1485_vm14  ;;  %vm1504_vm4 = vweird.f32 %v7779_v12  ;;  %v1531_v32 = vmul.f32 0.5, %v1530_v59  ;;  %vm1555_vm5 = vweird.f32 %v7842_v3  ;;  %vm1505_vm6 = vweird.f32 %v7880_v47 }
 0x202   : > { %2319 = vperm.xlu0 %5707, %v2157_v2   ;;  %v1473_v2 = vmul.f32 %v7759_v51, %v1472_v38  ;;  %v7937_v53 = vpop.eup %5762  ;;  %5768 = vrsqrt.f32 %v7924_v34  ;;  %v1579_v8 = vmul.f32 %v7931_v7, %v7870_v1  ;;  %v1501_v38 = vmul.f32 0.5, %v1500_v27  ;;  %vm8038_vm13 = vmor %vm1504_vm4, %vm1505_vm6 }
 0x203   : > { %v7943_v37 = vpop.eup %5764  ;;  %v1511_v49 = vmul.f32 0.5, %v1510_v58  ;;  %v1539_v16 = vmul.f32 %v7937_v53, %v7885_v56  ;;  %v1487_v54 = vsel %vm7954_vm3, %v7782_v5, %v1483_v39  ;;  %v7988_v27 = vadd.f32 1e-05, %v1080_v35 }
 0x204   : > { %v1477_v4 = vsel %vm7945_vm1, %v7759_v51, %v1473_v2  ;;  %v1559_v43 = vmul.f32 %v7943_v37, %v7889_v52  ;;  %v1580_v5 = vmul.f32 %v7931_v7, %v1579_v8  ;;  %v1502_v59 = vsub.f32 1.5, %v1501_v38 }
 0x205   : > { %2294 = vperm.xlu2 %5709, %v2152_v40   ;;  %v7950_v40 = vadd.f32 1e-05, %v1075_v62  ;;  %v7980_v0 = vpop.eup %5766  ;;  %v2155_v62 = vmul.f32 %v1477_v4, %v1147_v25  ;;  %v1512_v57 = vsub.f32 1.5, %v1511_v49  ;;  %v1540_v36 = vmul.f32 %v7937_v53, %v1539_v16  ;;  %v1155_v49 = vld [vmem:[%s10611_s1 + $0xc8] sm:$0xff] }
 0x206   : > { %2299 = vperm.xlu1 %5708, %v2153_v15   ;;  %v1552_v15 = vsub.f32 1.5, %v1551_v11  ;;  %v2156_v11 = vmul.f32 %v1487_v54, %v1148_v61  ;;  %vm1514_vm7 = vweird.f32 %v7814_v45  ;;  %vm1554_vm8 = vweird.f32 %v7762_v21 }
 0x207   : > { %5770 = vrsqrt.f32 %v7950_v40  ;;  %v1532_v8 = vsub.f32 1.5, %v1531_v32  ;;  %v1560_v35 = vmul.f32 %v7943_v37, %v1559_v43  ;;  %vm8004_vm9 = vmor %vm1554_vm8, %vm1555_vm5  ;;  %v1078_v4 = vmul.f32 0.020408163, %v7276_v31 }
 0x208   : > { %v7921_v63 = vpop.xlane.xlu2 %990  ;;  %v7941_v44 = vpop.xlane.xlu1 %987  ;;  %v1553_v2 = vmul.f32 %v7842_v3, %v1552_v15  ;;  %v1083_v15 = vmul.f32 0.020408163, %v7359_v17  ;;  %v1581_v21 = vmul.f32 0.5, %v1580_v5  ;;  %v1503_v31 = vmul.f32 %v7880_v47, %v1502_v59  ;;  %v11045_v59 = vld [vmem:[#allocation45_spill] sm:$0xff] }
 0x209   : > { %11031 = vst [vmem:[#allocation101_spill] sm:$0xff] %v7921_v63  ;;  %v7926_v14 = vpop.xlane.xlu0 %984  ;;  %v7992_v58 = vpop.eup %5768  ;;  %vm1534_vm10 = vweird.f32 %v7819_v20  ;;  %v1513_v54 = vmul.f32 %v7892_v30, %v1512_v57  ;;  %vm1515_vm11 = vweird.f32 %v7892_v30  ;;  %v1541_v32 = vmul.f32 0.5, %v1540_v36 }
 0x20a   : > { %2334 = vperm.xlu0 %5707, %v2160_v26   ;;  %11032 = vst [vmem:[#allocation102_spill] sm:$0xff] %v7941_v44  ;;  %v7984_v26 = vadd.f32 1e-05, %v1076_v23  ;;  %v1609_v23 = vmul.f32 %v7980_v0, %v7917_v46  ;;  %v1569_v38 = vmul.f32 %v7992_v58, %v7924_v34  ;;  %v1557_v16 = vsel %vm8004_vm9, %v7842_v3, %v1553_v2  ;;  %vm8054_vm15 = vmor %vm1514_vm7, %vm1515_vm11  ;;  %v11049_v2 = vld [vmem:[#allocation55_spill] sm:$0xff] }
 0x20b   : > { %vm1535_vm12 = vweird.f32 %v7900_v6  ;;  %v8030_v5 = vadd.f32 1e-05, %v1083_v15  ;;  %vm1544_vm14 = vweird.f32 %v7885_v56  ;;  %v1079_v57 = vmul.f32 0.020408163, %v11045_v59 }
 0x20c   : > { %5772 = vrsqrt.f32 %v7984_v26  ;;  %v1610_v43 = vmul.f32 %v7980_v0, %v1609_v23  ;;  %v2163_v36 = vmul.f32 %v1557_v16, %v1155_v49  ;;  %v8050_v23 = vmul.f32 %v7900_v6, %v1532_v8  ;;  %v1151_v49 = vld [vmem:[%s10611_s1 + $0xa8] sm:$0xff]  ;;  %vm8099_vm5 = vmor %vm1534_vm10, %vm1535_vm12 }
 0x20d   : > { %2309 = vperm.xlu2 %5709, %v2155_v62   ;;  %5774 = vrsqrt.f32 %v7988_v27  ;;  %v8021_v61 = vpop.eup %5770  ;;  %v1081_v62 = vmul.f32 0.020408163, %v7315_v18  ;;  %v1150_v18 = vld [vmem:[%s10611_s1 + $0xa0] sm:$0xff]  ;;  %v8058_v15 = vmul.f32 0.5, %v1560_v35  ;;  %v1582_v25 = vsub.f32 1.5, %v1581_v21 }
 0x20e   : > { %2314 = vperm.xlu1 %5708, %v2156_v11   ;;  %v8043_v11 = vadd.f32 1e-05, %v1078_v4  ;;  %v1570_v4 = vmul.f32 %v7992_v58, %v1569_v38  ;;  %v1542_v59 = vsub.f32 1.5, %v1541_v32  ;;  %v1589_v8 = vmul.f32 %v8021_v61, %v7950_v40 }
 0x20f   : > { %v1507_v45 = vsel %vm8038_vm13, %v7880_v47, %v1503_v31  ;;  %v1517_v35 = vsel %vm8054_vm15, %v7892_v30, %v1513_v54  ;;  %v1611_v38 = vmul.f32 0.5, %v1610_v43  ;;  %v8076_v44 = vadd.f32 1e-05, %v1081_v62 }
 0x210   : > { %v7978_v51 = vpop.xlane.xlu2 %999  ;;  %v8013_v17 = vpop.xlane.xlu1 %996  ;;  %5776 = vrsqrt.f32 %v8030_v5  ;;  %v2158_v32 = vmul.f32 %v1507_v45, %v1150_v18  ;;  %v1086_v47 = vmul.f32 0.020408163, %v11049_v2  ;;  %v2159_v31 = vmul.f32 %v1517_v35, %v1151_v49  ;;  %v11053_v49 = vld [vmem:[#allocation52_spill] sm:$0xff]  ;;  %v1158_v45 = vld [vmem:[%s10611_s1 + $0xe0] sm:$0xff]  ;;  %v1153_v2 = vld [vmem:[%s10611_s1 + $0xb8] sm:$0xff] }
 0x211   : > { %11037 = vst [vmem:[#allocation103_spill] sm:$0xff] %v7978_v51  ;;  %v7990_v39 = vpop.xlane.xlu0 %993  ;;  %5778 = vrsqrt.f32 %v8043_v11  ;;  %v1583_v12 = vmul.f32 %v7931_v7, %v1582_v25  ;;  %vm1585_vm1 = vweird.f32 %v7931_v7  ;;  %v1571_v30 = vmul.f32 0.5, %v1570_v4  ;;  %v11052_v25 = vld [vmem:[#allocation49_spill] sm:$0xff] }
 0x212   : > { %11038 = vst [vmem:[#allocation104_spill] sm:$0xff] %v7990_v39  ;;  %v8064_v16 = vpop.eup %5772  ;;  %2349 = vperm.xlu0 %5707, %v2163_v36   ;;  %v8082_v36 = vadd.f32 1e-05, %v1079_v57  ;;  %vm1565_vm2 = vweird.f32 %v7943_v37  ;;  %v1543_v43 = vmul.f32 %v7937_v53, %v1542_v59  ;;  %vm1545_vm3 = vweird.f32 %v7937_v53 }
 0x213   : > { %11041 = vst [vmem:[#allocation105_spill] sm:$0xff] %v8013_v17  ;;  %v8074_v21 = vpop.eup %5774  ;;  %v1599_v54 = vmul.f32 %v8064_v16, %v7984_v26  ;;  %vm1584_vm4 = vweird.f32 %v7870_v1  ;;  %v1612_v18 = vsub.f32 1.5, %v1611_v38  ;;  %5780 = vrsqrt.f32 %v8076_v44  ;;  %vm8130_vm8 = vmor %vm1544_vm14, %vm1545_vm3 }
 0x214   : > { %v1639_v62 = vmul.f32 %v8074_v21, %v7988_v27  ;;  %v1084_v4 = vmul.f32 0.020408163, %v11052_v25  ;;  %v1082_v59 = vmul.f32 0.020408163, %v11053_v49  ;;  %v1562_v20 = vsub.f32 1.5, %v8058_v15  ;;  %vm1586_vm7 = vmor %vm1584_vm4, %vm1585_vm1  ;;  %v1154_v49 = vld [vmem:[%s10611_s1 + $0xc0] sm:$0xff] }
 0x215   : > { %2324 = vperm.xlu2 %5709, %v2158_v32   ;;  %vm1564_vm6 = vweird.f32 %v7889_v52  ;;  %v1590_v38 = vmul.f32 %v8021_v61, %v1589_v8  ;;  %5782 = vrsqrt.f32 %v8082_v36  ;;  %v8119_v32 = vadd.f32 1e-05, %v1086_v47  ;;  %v1161_v15 = vld [vmem:[%s10611_s1 + $0xf8] sm:$0xff] }
 0x216   : > { %2329 = vperm.xlu1 %5708, %v2159_v31   ;;  %v8124_v31 = vpop.eup %5776  ;;  %v1572_v8 = vsub.f32 1.5, %v1571_v30  ;;  %vm1615_vm9 = vweird.f32 %v7980_v0  ;;  %v1600_v47 = vmul.f32 %v8064_v16, %v1599_v54  ;;  %v1587_v25 = vsel %vm1586_vm7, %v7931_v7, %v1583_v12  ;;  %vm1566_vm1 = vmor %vm1564_vm6, %vm1565_vm2 }
 0x217   : > { %v8140_v39 = vpop.eup %5778  ;;  %v1640_v17 = vmul.f32 %v8074_v21, %v1639_v62  ;;  %v2166_v56 = vmul.f32 %v1587_v25, %v1158_v45  ;;  %v1537_v30 = vsel %vm8099_vm5, %v7900_v6, %v8050_v23  ;;  %v1547_v54 = vsel %vm8130_vm8, %v7937_v53, %v1543_v43  ;;  %v11057_v45 = vld [vmem:[#allocation61_spill] sm:$0xff] }
 0x218   : > { %v8032_v3 = vpop.xlane.xlu2 %1008  ;;  %v8106_v1 = vpop.xlane.xlu1 %1005  ;;  %v1613_v7 = vmul.f32 %v7980_v0, %v1612_v18  ;;  %v8151_v12 = vadd.f32 1e-05, %v1084_v4  ;;  %v8153_v51 = vadd.f32 1e-05, %v1082_v59  ;;  %v1669_v62 = vmul.f32 %v8124_v31, %v8030_v5 }
 0x219   : > { %11042 = vst [vmem:[#allocation106_spill] sm:$0xff] %v8032_v3  ;;  %v8079_v63 = vpop.xlane.xlu0 %1002  ;;  %5784 = vrsqrt.f32 %v8119_v32  ;;  %v1089_v25 = vmul.f32 0.020408163, %v11057_v45  ;;  %v2162_v6 = vmul.f32 %v1547_v54, %v1154_v49  ;;  %v8159_v23 = vpop.eup %5780  ;;  %v1563_v53 = vmul.f32 %v7943_v37, %v1562_v20  ;;  %v11062_v54 = vld [vmem:[#allocation54_spill] sm:$0xff]  ;;  %v1157_v45 = vld [vmem:[%s10611_s1 + $0xd8] sm:$0xff] }
 0x21a   : > { %11048 = vst [vmem:[#allocation45_spill] sm:$0xff] %v8079_v63  ;;  %v2161_v63 = vmul.f32 %v1537_v30, %v1153_v2  ;;  %2364 = vperm.xlu0 %5707, %v2166_v56   ;;  %v1591_v43 = vmul.f32 0.5, %v1590_v38  ;;  %vm1574_vm10 = vweird.f32 %v7924_v34  ;;  %vm1614_vm11 = vweird.f32 %v7917_v46  ;;  %v1156_v56 = vld [vmem:[%s10611_s1 + $0xd0] sm:$0xff] }
 0x21b   : > { %11054 = vst [vmem:[#allocation55_spill] sm:$0xff] %v8106_v1  ;;  %v8166_v18 = vpop.eup %5782  ;;  %v1573_v4 = vmul.f32 %v7992_v58, %v1572_v8  ;;  %vm1575_vm12 = vweird.f32 %v7992_v58  ;;  %v1619_v59 = vmul.f32 %v8140_v39, %v8043_v11  ;;  %vm8174_vm13 = vmor %vm1614_vm11, %vm1615_vm9  ;;  %v1641_v38 = vmul.f32 0.5, %v1640_v17 }
 0x21c   : > { %vm1594_vm14 = vweird.f32 %v7950_v40  ;;  %v1601_v46 = vmul.f32 0.5, %v1600_v47  ;;  %5786 = vrsqrt.f32 %v8153_v51  ;;  %v1617_v8 = vsel %vm8174_vm13, %v7980_v0, %v1613_v7  ;;  %vm1576_vm2 = vmor %vm1574_vm10, %vm1575_vm12 }
 0x21d   : > { %2339 = vperm.xlu2 %5709, %v2161_v63   ;;  %v11061_v63 = vld [vmem:[#allocation58_spill] sm:$0xff]  ;;  %vm1595_vm15 = vweird.f32 %v8021_v61  ;;  %5788 = vrsqrt.f32 %v8151_v12  ;;  %v1670_v17 = vmul.f32 %v8124_v31, %v1669_v62  ;;  %v8192_v47 = vadd.f32 1e-05, %v1089_v25 }
 0x21e   : > { %2344 = vperm.xlu1 %5708, %v2162_v6   ;;  %v1085_v2 = vmul.f32 0.020408163, %v11061_v63  ;;  %v1592_v0 = vsub.f32 1.5, %v1591_v43  ;;  %vm1604_vm3 = vweird.f32 %v7984_v26  ;;  %v1629_v30 = vmul.f32 %v8166_v18, %v8082_v36  ;;  %vm8250_vm7 = vmor %vm1594_vm14, %vm1595_vm15 }
 0x21f   : > { %v1087_v7 = vmul.f32 0.020408163, %v11062_v54  ;;  %v8210_v25 = vpop.eup %5784  ;;  %v1620_v52 = vmul.f32 %v8140_v39, %v1619_v59  ;;  %v1642_v6 = vsub.f32 1.5, %v1641_v38  ;;  %v2169_v43 = vmul.f32 %v1617_v8, %v1161_v15  ;;  %v11065_v15 = vld [vmem:[#allocation64_spill] sm:$0xff] }
 0x220   : > { %v8111_v35 = vpop.xlane.xlu2 %1017  ;;  %v8205_v62 = vpop.xlane.xlu1 %1014  ;;  %v1567_v20 = vsel %vm1566_vm1, %v7943_v37, %v1563_v53  ;;  %v1602_v63 = vsub.f32 1.5, %v1601_v46  ;;  %v8218_v54 = vadd.f32 1e-05, %v1085_v2  ;;  %v1577_v10 = vsel %vm1576_vm2, %v7992_v58, %v1573_v4 }
 0x221   : > { %v8164_v57 = vpop.xlane.xlu0 %1011  ;;  %11063 = vst [vmem:[#allocation52_spill] sm:$0xff] %v8205_v62  ;;  %v2164_v3 = vmul.f32 %v1567_v20, %v1156_v56  ;;  %v1649_v19 = vmul.f32 %v8159_v23, %v8076_v44  ;;  %v1671_v1 = vmul.f32 0.5, %v1670_v17  ;;  %5790 = vrsqrt.f32 %v8192_v47 }
 0x222   : > { %11058 = vst [vmem:[#allocation49_spill] sm:$0xff] %v8164_v57  ;;  %2379 = vperm.xlu0 %5707, %v2169_v43   ;;  %v2165_v34 = vmul.f32 %v1577_v10, %v1157_v45  ;;  %v8224_v57 = vpop.eup %5786  ;;  %v1593_v59 = vmul.f32 %v8021_v61, %v1592_v0  ;;  %v1630_v37 = vmul.f32 %v8166_v18, %v1629_v30  ;;  %v8228_v53 = vadd.f32 1e-05, %v1087_v7  ;;  %v11064_v10 = vld [vmem:[#allocation67_spill] sm:$0xff] }
 0x223   : > { %v1699_v38 = vmul.f32 %v8210_v25, %v8119_v32  ;;  %v8232_v58 = vpop.eup %5788  ;;  %v1643_v4 = vmul.f32 %v8074_v21, %v1642_v6  ;;  %vm1644_vm4 = vweird.f32 %v7988_v27  ;;  %vm1645_vm5 = vweird.f32 %v8074_v21  ;;  %v1164_v6 = vld [vmem:[%s10611_s1 + $0x110] sm:$0xff]  ;;  %v1159_v43 = vld [vmem:[%s10611_s1 + $0xe8] sm:$0xff] }
 0x224   : > { %v1092_v46 = vmul.f32 0.020408163, %v11064_v10  ;;  %v1603_v2 = vmul.f32 %v8064_v16, %v1602_v63  ;;  %vm1605_vm6 = vweird.f32 %v8064_v16  ;;  %5792 = vrsqrt.f32 %v8218_v54  ;;  %vm1646_vm8 = vmor %vm1644_vm4, %vm1645_vm5 }
 0x225   : > { %2354 = vperm.xlu2 %5709, %v2164_v3   ;;  %v1088_v8 = vmul.f32 0.020408163, %v11065_v15  ;;  %v1621_v0 = vmul.f32 0.5, %v1620_v52  ;;  %v1650_v30 = vmul.f32 %v8159_v23, %v1649_v19  ;;  %v1672_v7 = vsub.f32 1.5, %v1671_v1  ;;  %v1160_v52 = vld [vmem:[%s10611_s1 + $0xf0] sm:$0xff]  ;;  %vm1606_vm9 = vmor %vm1604_vm3, %vm1605_vm6 }
 0x226   : > { %2359 = vperm.xlu1 %5708, %v2165_v34   ;;  %v1659_v45 = vmul.f32 %v8224_v57, %v8153_v51  ;;  %v1631_v40 = vmul.f32 0.5, %v1630_v37  ;;  %v1679_v19 = vmul.f32 %v8232_v58, %v8151_v12  ;;  %5794 = vrsqrt.f32 %v8228_v53 }
 0x227   : > { %v1700_v1 = vmul.f32 %v8210_v25, %v1699_v38  ;;  %v8274_v20 = vpop.eup %5790  ;;  %vm1675_vm10 = vweird.f32 %v8124_v31  ;;  %v8281_v27 = vadd.f32 1e-05, %v1092_v46  ;;  %v1647_v63 = vsel %vm1646_vm8, %v8074_v21, %v1643_v4 }
 0x228   : > { %v8187_v49 = vpop.xlane.xlu2 %1026  ;;  %v1597_v34 = vsel %vm8250_vm7, %v8021_v61, %v1593_v59  ;;  %vm1624_vm11 = vweird.f32 %v8043_v11  ;;  %v8288_v37 = vadd.f32 1e-05, %v1088_v8  ;;  %v8290_v38 = vpop.xlane.xlu1 %1023  ;;  %v2172_v10 = vmul.f32 %v1647_v63, %v1164_v6  ;;  %v1163_v11 = vld [vmem:[%s10611_s1 + $0x108] sm:$0xff] }
 0x229   : > { %v8242_v3 = vpop.xlane.xlu0 %1020  ;;  %v2167_v15 = vmul.f32 %v1597_v34, %v1159_v43  ;;  %v1607_v26 = vsel %vm1606_vm9, %v8064_v16, %v1603_v2  ;;  %v1660_v46 = vmul.f32 %v8224_v57, %v1659_v45  ;;  %v1090_v21 = vmul.f32 0.020408163, %v11069_v28  ;;  %v11072_v45 = vld [vmem:[#allocation97_spill] sm:$0xff] }
 0x22a   : > { %v2168_v4 = vmul.f32 %v1607_v26, %v1160_v52  ;;  %v8296_v62 = vpop.eup %5792  ;;  %v1622_v61 = vsub.f32 1.5, %v1621_v0  ;;  %vm1625_vm12 = vweird.f32 %v8140_v39  ;;  %v1701_v59 = vmul.f32 0.5, %v1700_v1  ;;  %2394 = vperm.xlu0 %5707, %v2172_v10  }
 0x22b   : > { %v1729_v8 = vmul.f32 %v8274_v20, %v8192_v47  ;;  %v1632_v56 = vsub.f32 1.5, %v1631_v40  ;;  %vm1674_vm13 = vweird.f32 %v8030_v5  ;;  %5796 = vrsqrt.f32 %v8281_v27  ;;  %vm8346_vm4 = vmor %vm1624_vm11, %vm1625_vm12 }
 0x22c   : > { %v1095_v16 = vmul.f32 0.020408163, %v7591_v60  ;;  %v8304_v28 = vpop.eup %5794  ;;  %v1651_v2 = vmul.f32 0.5, %v1650_v30  ;;  %v1680_v0 = vmul.f32 %v8232_v58, %v1679_v19  ;;  %vm8309_vm14 = vmor %vm1674_vm13, %vm1675_vm10  ;;  %5798 = vrsqrt.f32 %v8288_v37  ;;  %v1167_v30 = vld [vmem:[%s10611_s1 + $0x128] sm:$0xff] }
 0x22d   : > { %2369 = vperm.xlu2 %5709, %v2167_v15   ;;  %v1091_v5 = vmul.f32 0.020408163, %v11072_v45  ;;  %v1661_v43 = vmul.f32 0.5, %v1660_v46  ;;  %v1689_v60 = vmul.f32 %v8296_v62, %v8218_v54  ;;  %v8319_v40 = vadd.f32 1e-05, %v1090_v21 }
 0x22e   : > { %2374 = vperm.xlu1 %5708, %v2168_v4   ;;  %v1623_v1 = vmul.f32 %v8140_v39, %v1622_v61  ;;  %vm1634_vm15 = vweird.f32 %v8082_v36  ;;  %v1702_v52 = vsub.f32 1.5, %v1701_v59  ;;  %v1730_v63 = vmul.f32 %v8274_v20, %v1729_v8 }
 0x22f   : > { %vm1655_vm1 = vweird.f32 %v8159_v23  ;;  %v1633_v10 = vmul.f32 %v8166_v18, %v1632_v56  ;;  %vm1635_vm3 = vweird.f32 %v8166_v18  ;;  %v8335_v15 = vadd.f32 1e-05, %v1095_v16  ;;  %v1162_v56 = vld [vmem:[%s10611_s1 + $0x100] sm:$0xff] }
 0x230   : > { %v8244_v17 = vpop.xlane.xlu2 %1035  ;;  %v1652_v26 = vsub.f32 1.5, %v1651_v2  ;;  %vm1654_vm2 = vweird.f32 %v8076_v44  ;;  %v1662_v61 = vsub.f32 1.5, %v1661_v43  ;;  %v1709_v59 = vmul.f32 %v8304_v28, %v8228_v53  ;;  %vm1636_vm5 = vmor %vm1634_vm15, %vm1635_vm3 }
 0x231   : > { %11066 = vst [vmem:[#allocation61_spill] sm:$0xff] %v8244_v17  ;;  %v1673_v17 = vmul.f32 %v8124_v31, %v1672_v7  ;;  %v8330_v34 = vpop.xlane.xlu0 %1029  ;;  %v8340_v21 = vpop.eup %5796  ;;  %v1690_v8 = vmul.f32 %v8296_v62, %v1689_v60  ;;  %5800 = vrsqrt.f32 %v8319_v40  ;;  %v1703_v2 = vmul.f32 %v8210_v25, %v1702_v52  ;;  %v11076_v7 = vld [vmem:[#allocation66_spill] sm:$0xff]  ;;  %vm8419_vm13 = vmor %vm1654_vm2, %vm1655_vm1 }
 0x232   : > { %v8360_v16 = vpop.eup %5798  ;;  %vm1705_vm6 = vweird.f32 %v8210_v25  ;;  %v1093_v45 = vmul.f32 0.020408163, %v11076_v7  ;;  %5802 = vrsqrt.f32 %v8335_v15  ;;  %v1094_v43 = vmul.f32 0.020408163, %v7598_v41 }
 0x233   : > { %v1677_v19 = vsel %vm8309_vm14, %v8124_v31, %v1673_v17  ;;  %v1681_v31 = vmul.f32 0.5, %v1680_v0  ;;  %v8338_v17 = vadd.f32 1e-05, %v1091_v5  ;;  %v1731_v0 = vmul.f32 0.5, %v1730_v63  ;;  %v8369_v5 = vpop.xlane.xlu1 %1032 }
 0x234   : > { %v2175_v46 = vmul.f32 %v1677_v19, %v1167_v30  ;;  %v1627_v60 = vsel %vm8346_vm4, %v8140_v39, %v1623_v1  ;;  %v1637_v36 = vsel %vm1636_vm5, %v8166_v18, %v1633_v10  ;;  %v1759_v30 = vmul.f32 %v8340_v21, %v8281_v27 }
 0x235   : > { %5804 = vrsqrt.f32 %v8338_v17  ;;  %v2170_v19 = vmul.f32 %v1627_v60, %v1162_v56  ;;  %v2171_v52 = vmul.f32 %v1637_v36, %v1163_v11  ;;  %v1710_v7 = vmul.f32 %v8304_v28, %v1709_v59 }
 0x236   : > { %2409 = vperm.xlu0 %5707, %v2175_v46   ;;  %v1682_v46 = vsub.f32 1.5, %v1681_v31  ;;  %v1719_v41 = vmul.f32 %v8360_v16, %v8288_v37  ;;  %vm1684_vm7 = vweird.f32 %v8151_v12  ;;  %vm1704_vm8 = vweird.f32 %v8119_v32 }
 0x237   : > { %v1732_v39 = vsub.f32 1.5, %v1731_v0  ;;  %v8387_v18 = vadd.f32 1e-05, %v1093_v45  ;;  %2384 = vperm.xlu2 %5709, %v2170_v19   ;;  %2389 = vperm.xlu1 %5708, %v2171_v52   ;;  %v8389_v1 = vpop.eup %5800  ;;  %v1653_v10 = vmul.f32 %v8159_v23, %v1652_v26  ;;  %v1663_v31 = vmul.f32 %v8224_v57, %v1662_v61  ;;  %vm8396_vm10 = vmor %vm1704_vm8, %vm1705_vm6  ;;  %v1170_v26 = vld [vmem:[%s10611_s1 + $0x140] sm:$0xff] }
 0x238   : > { %v8315_v6 = vpop.xlane.xlu2 %1044  ;;  %vm1665_vm9 = vweird.f32 %v8224_v57  ;;  %v8400_v32 = vadd.f32 1e-05, %v1094_v43  ;;  %vm1685_vm11 = vweird.f32 %v8232_v58  ;;  %vm1664_vm12 = vweird.f32 %v8153_v51  ;;  %v8413_v56 = vpop.eup %5802 }
 0x239   : > { %11073 = vst [vmem:[#allocation58_spill] sm:$0xff] %v8315_v6  ;;  %v1691_v6 = vmul.f32 0.5, %v1690_v8  ;;  %v1760_v59 = vmul.f32 %v8340_v21, %v1759_v30  ;;  %v8405_v8 = vpop.xlane.xlu0 %1038  ;;  %v1707_v61 = vsel %vm8396_vm10, %v8210_v25, %v1703_v2  ;;  %v1683_v11 = vmul.f32 %v8232_v58, %v1682_v46  ;;  %v1165_v25 = vld [vmem:[%s10611_s1 + $0x118] sm:$0xff]  ;;  %v1166_v2 = vld [vmem:[%s10611_s1 + $0x120] sm:$0xff]  ;;  %vm1666_vm14 = vmor %vm1664_vm12, %vm1665_vm9 }
 0x23a   : > { %11079 = vst [vmem:[#allocation54_spill] sm:$0xff] %v8405_v8  ;;  %v1711_v0 = vmul.f32 0.5, %v1710_v7  ;;  %v1720_v43 = vmul.f32 %v8360_v16, %v1719_v41  ;;  %v1739_v44 = vmul.f32 %v8389_v1, %v8319_v40  ;;  %vm1735_vm15 = vweird.f32 %v8274_v20  ;;  %vm8459_vm3 = vmor %vm1684_vm7, %vm1685_vm11 }
 0x23b   : > { %v1692_v45 = vsub.f32 1.5, %v1691_v6  ;;  %v8431_v60 = vpop.eup %5804  ;;  %v1733_v6 = vmul.f32 %v8274_v20, %v1732_v39  ;;  %5806 = vrsqrt.f32 %v8387_v18  ;;  %v2178_v36 = vmul.f32 %v1707_v61, %v1170_v26  ;;  %v8447_v7 = vpop.xlane.xlu1 %1041 }
 0x23c   : > { %5808 = vrsqrt.f32 %v8400_v32  ;;  %v1657_v30 = vsel %vm8419_vm13, %v8159_v23, %v1653_v10  ;;  %v1667_v19 = vsel %vm1666_vm14, %v8224_v57, %v1663_v31  ;;  %v1761_v52 = vmul.f32 0.5, %v1760_v59  ;;  %11082 = vst [vmem:[#allocation67_spill] sm:$0xff] %v8447_v7  ;;  %v1192_v7 = vld [vmem:[%s10611_s1 + $0x1f0] sm:$0xff] }
 0x23d   : > { %v1789_v46 = vmul.f32 %v8413_v56, %v8335_v15  ;;  %v2173_v41 = vmul.f32 %v1657_v30, %v1165_v25  ;;  %v2174_v39 = vmul.f32 %v1667_v19, %v1166_v2  ;;  %v1693_v8 = vmul.f32 %v8296_v62, %v1692_v45  ;;  %v1169_v30 = vld [vmem:[%s10611_s1 + $0x138] sm:$0xff] }
 0x23e   : > { %vm1695_vm1 = vweird.f32 %v8296_v62  ;;  %v1721_v26 = vmul.f32 0.5, %v1720_v43  ;;  %v1749_v23 = vmul.f32 %v8431_v60, %v8338_v17  ;;  %2424 = vperm.xlu0 %5707, %v2178_v36   ;;  %v1712_v10 = vsub.f32 1.5, %v1711_v0 }
 0x23f   : > { %vm1734_vm2 = vweird.f32 %v8192_v47  ;;  %2399 = vperm.xlu2 %5709, %v2173_v41   ;;  %2404 = vperm.xlu1 %5708, %v2174_v39   ;;  %vm1694_vm4 = vweird.f32 %v8218_v54  ;;  %v1740_v31 = vmul.f32 %v8389_v1, %v1739_v44  ;;  %v1762_v51 = vsub.f32 1.5, %v1761_v52  ;;  %v1173_v54 = vld [vmem:[%s10611_s1 + $0x158] sm:$0xff]  ;;  %v1168_v44 = vld [vmem:[%s10611_s1 + $0x130] sm:$0xff] }
 0x240   : > { %v8380_v63 = vpop.permute.xlu2 %2234  ;;  %vm8468_vm5 = vmor %vm1734_vm2, %vm1735_vm15  ;;  %v1790_v47 = vmul.f32 %v8413_v56, %v1789_v46  ;;  %v1722_v25 = vsub.f32 1.5, %v1721_v26  ;;  %v1750_v2 = vmul.f32 %v8431_v60, %v1749_v23  ;;  %v1687_v36 = vsel %vm8459_vm3, %v8232_v58, %v1683_v11 }
 0x241   : > { %v8472_v12 = vpop.eup %5806  ;;  %vm8474_vm6 = vmor %vm1694_vm4, %vm1695_vm1  ;;  %v1737_v0 = vsel %vm8468_vm5, %v8274_v20, %v1733_v6  ;;  %v1713_v6 = vmul.f32 %v8304_v28, %v1712_v10  ;;  %vm1714_vm7 = vweird.f32 %v8228_v53  ;;  %vm1715_vm8 = vweird.f32 %v8304_v28 }
 0x242   : > { %v8487_v43 = vpop.eup %5808  ;;  %v1697_v20 = vsel %vm8474_vm6, %v8296_v62, %v1693_v8  ;;  %v1741_v19 = vmul.f32 0.5, %v1740_v31  ;;  %v1769_v52 = vmul.f32 %v8472_v12, %v8387_v18  ;;  %vm1765_vm9 = vweird.f32 %v8340_v21  ;;  %vm8521_vm11 = vmor %vm1714_vm7, %vm1715_vm8 }
 0x243   : > { %v2181_v58 = vmul.f32 %v1737_v0, %v1173_v54  ;;  %v1763_v11 = vmul.f32 %v8340_v21, %v1762_v51  ;;  %v1791_v46 = vmul.f32 0.5, %v1790_v47  ;;  %v2176_v41 = vmul.f32 %v1687_v36, %v1168_v44  ;;  %v1172_v44 = vld [vmem:[%s10611_s1 + $0x150] sm:$0xff] }
 0x244   : > { %v2177_v39 = vmul.f32 %v1697_v20, %v1169_v30  ;;  %v1723_v8 = vmul.f32 %v8360_v16, %v1722_v25  ;;  %vm1725_vm10 = vweird.f32 %v8360_v16  ;;  %v1751_v23 = vmul.f32 0.5, %v1750_v2  ;;  %v1171_v25 = vld [vmem:[%s10611_s1 + $0x148] sm:$0xff] }
 0x245   : > { %v1779_v57 = vmul.f32 %v8487_v43, %v8400_v32  ;;  %vm1764_vm12 = vweird.f32 %v8281_v27  ;;  %v1742_v31 = vsub.f32 1.5, %v1741_v19  ;;  %vm1724_vm13 = vweird.f32 %v8288_v37  ;;  %v1176_v27 = vld [vmem:[%s10611_s1 + $0x170] sm:$0xff] }
 0x246   : > { %2439 = vperm.xlu0 %5707, %v2181_v58   ;;  %vm8529_vm14 = vmor %vm1764_vm12, %vm1765_vm9  ;;  %v1770_v53 = vmul.f32 %v8472_v12, %v1769_v52  ;;  %v1792_v51 = vsub.f32 1.5, %v1791_v46  ;;  %v1752_v54 = vsub.f32 1.5, %v1751_v23  ;;  %v1717_v2 = vsel %vm8521_vm11, %v8304_v28, %v1713_v6  ;;  %v1179_v46 = vld [vmem:[%s10611_s1 + $0x188] sm:$0xff] }
 0x247   : > { %2414 = vperm.xlu2 %5709, %v2176_v41   ;;  %2419 = vperm.xlu1 %5708, %v2177_v39   ;;  %vm8533_vm15 = vmor %vm1724_vm13, %vm1725_vm10  ;;  %v1767_v37 = vsel %vm8529_vm14, %v8340_v21, %v1763_v11  ;;  %v1780_v0 = vmul.f32 %v8487_v43, %v1779_v57  ;;  %v1743_v36 = vmul.f32 %v8389_v1, %v1742_v31  ;;  %vm1744_vm1 = vweird.f32 %v8319_v40  ;;  %v1175_v57 = vld [vmem:[%s10611_s1 + $0x168] sm:$0xff] }
 0x248   : > { %v8449_v4 = vpop.permute.xlu2 %2239  ;;  %v1727_v21 = vsel %vm8533_vm15, %v8360_v16, %v1723_v8  ;;  %vm1745_vm3 = vweird.f32 %v8389_v1  ;;  %v2184_v30 = vmul.f32 %v1767_v37, %v1176_v27  ;;  %v1793_v20 = vmul.f32 %v8413_v56, %v1792_v51  ;;  %v1178_v37 = vld [vmem:[%s10611_s1 + $0x180] sm:$0xff] }
 0x249   : > { %vm1795_vm2 = vweird.f32 %v8413_v56  ;;  %v2179_v28 = vmul.f32 %v1717_v2, %v1171_v25  ;;  %v2180_v6 = vmul.f32 %v1727_v21, %v1172_v44  ;;  %v1771_v58 = vmul.f32 0.5, %v1770_v53  ;;  %vm8570_vm5 = vmor %vm1744_vm1, %vm1745_vm3  ;;  %v2741_v21 = vld [vmem:[%s10612_s2 + $0x78] sm:$0xff] }
 0x24a   : > { %v1753_v16 = vmul.f32 %v8431_v60, %v1752_v54  ;;  %vm1755_vm4 = vweird.f32 %v8431_v60  ;;  %v1781_v11 = vmul.f32 0.5, %v1780_v0  ;;  %vm1794_vm6 = vweird.f32 %v8335_v15  ;;  %v1174_v15 = vld [vmem:[%s10611_s1 + $0x160] sm:$0xff] }
 0x24b   : > { %vm1754_vm7 = vweird.f32 %v8338_v17  ;;  %vm1796_vm8 = vmor %vm1794_vm6, %vm1795_vm2  ;;  %v1772_v8 = vsub.f32 1.5, %v1771_v58  ;;  %v1747_v17 = vsel %vm8570_vm5, %v8389_v1, %v1743_v36  ;;  %vm1775_vm10 = vweird.f32 %v8472_v12  ;;  %v1177_v1 = vld [vmem:[%s10611_s1 + $0x178] sm:$0xff]  ;;  %v2738_v58 = vld [vmem:[%s10612_s2 + $0x60] sm:$0xff] }
 0x24c   : > { %v8485_v45 = vpop.permute.xlu0 %2224  ;;  %vm1756_vm9 = vmor %vm1754_vm7, %vm1755_vm4  ;;  %v1797_v41 = vsel %vm1796_vm8, %v8413_v56, %v1793_v20  ;;  %v1782_v23 = vsub.f32 1.5, %v1781_v11  ;;  %v2182_v56 = vmul.f32 %v1747_v17, %v1174_v15  ;;  %vm1785_vm11 = vweird.f32 %v8487_v43  ;;  %v2750_v17 = vld [vmem:[%s10612_s2 + $0xc0] sm:$0xff] }
 0x24d   : > { %11089 = vst [vmem:[#allocation64_spill] sm:$0xff] %v8485_v45  ;;  %v1757_v10 = vsel %vm1756_vm9, %v8431_v60, %v1753_v16  ;;  %v2187_v31 = vmul.f32 %v1797_v41, %v1179_v46  ;;  %v1773_v51 = vmul.f32 %v8472_v12, %v1772_v8  ;;  %vm1774_vm12 = vweird.f32 %v8387_v18  ;;  %v2756_v18 = vld [vmem:[%s10612_s2 + $0xf0] sm:$0xff]  ;;  %v2753_v46 = vld [vmem:[%s10612_s2 + $0xd8] sm:$0xff]  ;;  %v2754_v41 = vld [vmem:[%s10612_s2 + $0xe0] sm:$0xff] }
 0x24e   : > { %2454 = vperm.xlu0 %5707, %v2184_v30   ;;  %v2183_v59 = vmul.f32 %v1757_v10, %v1175_v57  ;;  %v1783_v27 = vmul.f32 %v8487_v43, %v1782_v23  ;;  %vm1776_vm13 = vmor %vm1774_vm12, %vm1775_vm10  ;;  %vm1784_vm14 = vweird.f32 %v8400_v32  ;;  %v2755_v8 = vld [vmem:[%s10612_s2 + $0xe8] sm:$0xff]  ;;  %v2737_v57 = vld [vmem:[%s10612_s2 + $0x58] sm:$0xff] }
 0x24f   : > { %2429 = vperm.xlu2 %5709, %v2179_v28   ;;  %2434 = vperm.xlu1 %5708, %v2180_v6   ;;  %vm1786_vm15 = vmor %vm1784_vm14, %vm1785_vm11  ;;  %v1777_v60 = vsel %vm1776_vm13, %v8472_v12, %v1773_v51  ;;  %v2739_v12 = vld [vmem:[%s10612_s2 + $0x68] sm:$0xff]  ;;  %v2736_v28 = vld [vmem:[%s10612_s2 + $0x50] sm:$0xff] }
 0x250   : > { %v8509_v26 = vpop.permute.xlu1 %2229  ;;  %v8511_v62 = vpop.permute.xlu2 %2249  ;;  %v1787_v54 = vsel %vm1786_vm15, %v8487_v43, %v1783_v27  ;;  %v2185_v32 = vmul.f32 %v1777_v60, %v1177_v1  ;;  %v2740_v43 = vld [vmem:[%s10612_s2 + $0x70] sm:$0xff]  ;;  %v2757_v6 = vld [vmem:[%s10612_s2 + $0xf8] sm:$0xff]  ;;  %v1108_v27 = vmul.f32 0.020408163, %v7860_v22  ;;  %v2734_v1 = vld [vmem:[%s10612_s2 + $0x40] sm:$0xff] }
 0x251   : > { %v2186_v25 = vmul.f32 %v1787_v54, %v1178_v37  ;;  %v2752_v10 = vld [vmem:[%s10612_s2 + $0xd0] sm:$0xff]  ;;  %v2733_v51 = vld [vmem:[%s10612_s2 + $0x38] sm:$0xff]  ;;  %v2735_v60 = vld [vmem:[%s10612_s2 + $0x48] sm:$0xff] }
 0x252   : > { %v2730_v22 = vld [vmem:[%s10612_s2 + $0x20] sm:$0xff]  ;;  %v11123_v45 = vld [vmem:[#allocation4_spill] sm:$0xff] }
 0x254   : > { %v8544_v47 = vpop.permute.xlu0 %2259 }
 0x256   : > { %2469 = vperm.xlu0 %5707, %v2187_v31  }
 0x257   : > { %2444 = vperm.xlu2 %5709, %v2182_v56   ;;  %2449 = vperm.xlu1 %5708, %v2183_v59  }
 0x258   : > { %v8564_v19 = vpop.permute.xlu1 %2244  ;;  %v8566_v52 = vpop.permute.xlu2 %2264 }
 0x25c   : > { %v8582_v39 = vpop.permute.xlu0 %2274 }
 0x25e   : > { %2962 = vperm.xlu0 %5707, %v2756_v18   ;;  %v1276_v18 = vadd.f32 1e-05, %v1108_v27 }
 0x25f   : > { %2459 = vperm.xlu2 %5709, %v2185_v32   ;;  %2464 = vperm.xlu1 %5708, %v2186_v25   ;;  %v2751_v25 = vld [vmem:[%s10612_s2 + $0xc8] sm:$0xff] }
 0x260   : > { %v8595_v61 = vpop.permute.xlu2 %2279  ;;  %v8597_v53 = vpop.permute.xlu1 %2254  ;;  %5810 = vrsqrt.f32 %v1276_v18  ;;  %vm1924_vm3 = vweird.f32 %v1276_v18 }
 0x264   : > { %v8612_v0 = vpop.permute.xlu0 %2289 }
 0x266   : > { %2877 = vperm.xlu0 %5707, %v2739_v12   ;;  %v2732_v12 = vld [vmem:[%s10612_s2 + $0x30] sm:$0xff] }
 0x267   : > { %2882 = vperm.xlu2 %5709, %v2740_v43   ;;  %2887 = vperm.xlu1 %5708, %v2741_v21  }
 0x268   : > { %v8617_v2 = vpop.permute.xlu2 %2294  ;;  %v8619_v44 = vpop.permute.xlu1 %2269 }
 0x26c   : > { %v8630_v36 = vpop.permute.xlu0 %2304 }
 0x26d   : > { %11098 = vst [vmem:[#allocation60_spill] sm:$0xff] %v8630_v36 }
 0x26e   : > { %2862 = vperm.xlu0 %5707, %v2736_v28   ;;  %v5811_v28 = vpop.eup %5810 }
 0x26f   : > { %2967 = vperm.xlu2 %5709, %v2757_v6   ;;  %2872 = vperm.xlu1 %5708, %v2738_v58   ;;  %v2747_v6 = vld [vmem:[%s10612_s2 + $0xa8] sm:$0xff]  ;;  %v1106_v58 = vmul.f32 0.020408163, %v7872_v13  ;;  %vm1925_vm1 = vweird.f32 %v5811_v28 }
 0x270   : > { %v8632_v30 = vpop.permute.xlu2 %2309  ;;  %v8634_v20 = vpop.permute.xlu1 %2284  ;;  %vm1926_vm2 = vmor %vm1924_vm3, %vm1925_vm1 }
 0x271   : > { %11099 = vst [vmem:[#allocation97_spill] sm:$0xff] %v8632_v30 }
 0x274   : > { %v8647_v11 = vpop.permute.xlu0 %2319 }
 0x276   : > { %2947 = vperm.xlu0 %5707, %v2753_v46  }
 0x277   : > { %2952 = vperm.xlu2 %5709, %v2754_v41   ;;  %2957 = vperm.xlu1 %5708, %v2755_v8   ;;  %v2748_v41 = vld [vmem:[%s10612_s2 + $0xb0] sm:$0xff]  ;;  %v2749_v8 = vld [vmem:[%s10612_s2 + $0xb8] sm:$0xff] }
 0x278   : > { %v8645_v16 = vpop.permute.xlu2 %2324  ;;  %v8649_v40 = vpop.permute.xlu1 %2299 }
 0x27c   : > { %v8662_v15 = vpop.permute.xlu0 %2334 }
 0x27e   : > { %2932 = vperm.xlu0 %5707, %v2750_v17   ;;  %v1919_v17 = vmul.f32 %v5811_v28, %v1276_v18 }
 0x27f   : > { %2867 = vperm.xlu2 %5709, %v2737_v57   ;;  %2942 = vperm.xlu1 %5708, %v2752_v10   ;;  %v1109_v57 = vmul.f32 0.020408163, %v7926_v14  ;;  %v2731_v14 = vld [vmem:[%s10612_s2 + $0x28] sm:$0xff] }
 0x280   : > { %v8660_v23 = vpop.permute.xlu2 %2339  ;;  %v8673_v31 = vpop.permute.xlu1 %2314  ;;  %v1920_v13 = vmul.f32 %v5811_v28, %v1919_v17 }
 0x281   : > { %v8725_v27 = vadd.f32 1e-05, %v1109_v57  ;;  %v2727_v57 = vld [vmem:[%s10612_s2 + $0x8] sm:$0xff] }
 0x283   : > { %vm1934_vm8 = vweird.f32 %v8725_v27 }
 0x284   : > { %v8677_v59 = vpop.permute.xlu0 %2349 }
 0x286   : > { %2847 = vperm.xlu0 %5707, %v2733_v51   ;;  %v8723_v51 = vadd.f32 1e-05, %v1106_v58 }
 0x287   : > { %2852 = vperm.xlu2 %5709, %v2734_v1   ;;  %2857 = vperm.xlu1 %5708, %v2735_v60   ;;  %v2744_v60 = vld [vmem:[%s10612_s2 + $0x90] sm:$0xff] }
 0x288   : > { %v8675_v56 = vpop.permute.xlu2 %2354  ;;  %v8689_v37 = vpop.permute.xlu1 %2329  ;;  %5812 = vrsqrt.f32 %v8723_v51  ;;  %vm1904_vm6 = vweird.f32 %v8723_v51 }
 0x289   : > { %5814 = vrsqrt.f32 %v8725_v27 }
 0x28c   : > { %v8696_v32 = vpop.permute.xlu0 %2364 }
 0x28e   : > { %2832 = vperm.xlu0 %5707, %v2730_v22   ;;  %v2746_v22 = vld [vmem:[%s10612_s2 + $0xa0] sm:$0xff] }
 0x28f   : > { %2937 = vperm.xlu2 %5709, %v2751_v25   ;;  %2842 = vperm.xlu1 %5708, %v2732_v12   ;;  %v1921_v25 = vmul.f32 0.5, %v1920_v13  ;;  %v1104_v13 = vmul.f32 0.020408163, %v7793_v48 }
 0x290   : > { %v8691_v54 = vpop.permute.xlu2 %2369  ;;  %v8704_v43 = vpop.permute.xlu1 %2344 }
 0x291   : > { %v1922_v58 = vsub.f32 1.5, %v1921_v25  ;;  %v1107_v25 = vmul.f32 0.020408163, %v7887_v9 }
 0x294   : > { %v8712_v46 = vpop.permute.xlu0 %2379 }
 0x296   : > { %2917 = vperm.xlu0 %5707, %v2747_v6  }
 0x297   : > { %2922 = vperm.xlu2 %5709, %v2748_v41   ;;  %2927 = vperm.xlu1 %5708, %v2749_v8   ;;  %v8746_v8 = vpop.eup %5812 }
 0x298   : > { %v8706_v21 = vpop.permute.xlu2 %2384  ;;  %v8721_v10 = vpop.permute.xlu1 %2359  ;;  %vm1905_vm4 = vweird.f32 %v8746_v8 }
 0x299   : > { %11100 = vst [vmem:[#allocation66_spill] sm:$0xff] %v8706_v21  ;;  %v8748_v17 = vpop.eup %5814  ;;  %v1899_v21 = vmul.f32 %v8746_v8, %v8723_v51  ;;  %vm1906_vm7 = vmor %vm1904_vm6, %vm1905_vm4  ;;  %v1190_v51 = vld [vmem:[%s10611_s1 + $0x1e0] sm:$0xff] }
 0x29a   : > { %vm1935_vm5 = vweird.f32 %v8748_v17 }
 0x29b   : > { %vm8828_vm9 = vmor %vm1934_vm8, %vm1935_vm5 }
 0x29c   : > { %v8740_v12 = vpop.permute.xlu0 %2394 }
 0x29d   : > { %11102 = vst [vmem:[#allocation108_spill] sm:$0xff] %v8740_v12  ;;  %v1929_v12 = vmul.f32 %v8748_v17, %v8725_v27 }
 0x29e   : > { %2902 = vperm.xlu0 %5707, %v2744_v60   ;;  %v2728_v60 = vld [vmem:[%s10612_s2 + $0x10] sm:$0xff] }
 0x29f   : > { %2837 = vperm.xlu2 %5709, %v2731_v14   ;;  %2912 = vperm.xlu1 %5708, %v2746_v22   ;;  %v2729_v14 = vld [vmem:[%s10612_s2 + $0x18] sm:$0xff]  ;;  %v1923_v22 = vmul.f32 %v5811_v28, %v1922_v58  ;;  %v1900_v58 = vmul.f32 %v8746_v8, %v1899_v21  ;;  %v1930_v18 = vmul.f32 %v8748_v17, %v1929_v12 }
 0x2a0   : > { %v8727_v1 = vpop.permute.xlu2 %2399  ;;  %v8742_v6 = vpop.permute.xlu1 %2374  ;;  %v2745_v21 = vld [vmem:[%s10612_s2 + $0x98] sm:$0xff] }
 0x2a1   : > { %11101 = vst [vmem:[#allocation107_spill] sm:$0xff] %v8727_v1  ;;  %v8767_v1 = vadd.f32 1e-05, %v1104_v13  ;;  %v1927_v30 = vsel %vm1926_vm2, %v5811_v28, %v1923_v22  ;;  %v1125_v13 = vmul.f32 0.020408163, %v8369_v5  ;;  %v1901_v28 = vmul.f32 0.5, %v1900_v58 }
 0x2a2   : > { %v1931_v22 = vmul.f32 0.5, %v1930_v18  ;;  %v2773_v58 = vld [vmem:[%s10612_s2 + $0x178] sm:$0xff]  ;;  %v1105_v18 = vmul.f32 0.020408163, %v7791_v33 }
 0x2a3   : > { %5816 = vrsqrt.f32 %v8767_v1  ;;  %v8789_v12 = vadd.f32 1e-05, %v1125_v13  ;;  %v1902_v5 = vsub.f32 1.5, %v1901_v28  ;;  %v2742_v13 = vld [vmem:[%s10612_s2 + $0x80] sm:$0xff]  ;;  %v1124_v28 = vmul.f32 0.020408163, %v8330_v34 }
 0x2a4   : > { %vm1884_vm12 = vweird.f32 %v8767_v1 }
 0x2a5   : > { %vm2094_vm3 = vweird.f32 %v8789_v12 }
 0x2a6   : > { %2817 = vperm.xlu0 %5707, %v2727_v57  }
 0x2a7   : > { %2822 = vperm.xlu2 %5709, %v2728_v60   ;;  %2827 = vperm.xlu1 %5708, %v2729_v14   ;;  %v2200_v60 = vmul.f32 %v1927_v30, %v1192_v7  ;;  %v2726_v14 = vld [vmem:[%s10612_s2] sm:$0xff] }
 0x2a8   : > { %v8744_v41 = vpop.permute.xlu2 %2414  ;;  %v8765_v48 = vpop.permute.xlu0 %2409 }
 0x2a9   : > { %11103 = vst [vmem:[#allocation109_spill] sm:$0xff] %v8744_v41  ;;  %v8769_v41 = vadd.f32 1e-05, %v1107_v25  ;;  %v8772_v9 = vpop.permute.xlu1 %2389 }
 0x2aa   : > { %11104 = vst [vmem:[#allocation110_spill] sm:$0xff] %v8765_v48  ;;  %v1932_v48 = vsub.f32 1.5, %v1931_v22 }
 0x2ab   : > { %11105 = vst [vmem:[#allocation111_spill] sm:$0xff] %v8772_v9  ;;  %5818 = vrsqrt.f32 %v8769_v41  ;;  %v8797_v9 = vpop.eup %5816  ;;  %vm1914_vm14 = vweird.f32 %v8769_v41 }
 0x2ac   : > { %5820 = vrsqrt.f32 %v8789_v12  ;;  %v1933_v22 = vmul.f32 %v8748_v17, %v1932_v48  ;;  %v8832_v48 = vadd.f32 1e-05, %v1124_v28  ;;  %vm1885_vm10 = vweird.f32 %v8797_v9 }
 0x2ad   : > { %vm8888_vm13 = vmor %vm1884_vm12, %vm1885_vm10 }
 0x2ae   : > { %2534 = vperm.xlu0 %5707, %v2200_v60   ;;  %v2743_v60 = vld [vmem:[%s10612_s2 + $0x88] sm:$0xff]  ;;  %v1937_v28 = vsel %vm8828_vm9, %v8748_v17, %v1933_v22  ;;  %vm2084_vm8 = vweird.f32 %v8832_v48 }
 0x2af   : > { %2907 = vperm.xlu2 %5709, %v2745_v21   ;;  %2812 = vperm.xlu1 %5708, %v2726_v14   ;;  %v1879_v21 = vmul.f32 %v8797_v9, %v8767_v1  ;;  %v1903_v14 = vmul.f32 %v8746_v8, %v1902_v5  ;;  %v1188_v1 = vld [vmem:[%s10611_s1 + $0x1d0] sm:$0xff] }
 0x2b0   : > { %v8777_v57 = vpop.permute.xlu2 %2429  ;;  %v8791_v25 = vpop.permute.xlu0 %2424 }
 0x2b1   : > { %11106 = vst [vmem:[#allocation112_spill] sm:$0xff] %v8777_v57  ;;  %v8793_v7 = vpop.permute.xlu1 %2404  ;;  %v8799_v57 = vpop.eup %5818  ;;  %v1880_v34 = vmul.f32 %v8797_v9, %v1879_v21  ;;  %v1193_v21 = vld [vmem:[%s10611_s1 + $0x1f8] sm:$0xff] }
 0x2b2   : > { %11107 = vst [vmem:[#allocation113_spill] sm:$0xff] %v8791_v25  ;;  %v1909_v33 = vmul.f32 %v8799_v57, %v8769_v41  ;;  %v8842_v27 = vpop.eup %5820  ;;  %vm1915_vm11 = vweird.f32 %v8799_v57 }
 0x2b3   : > { %11108 = vst [vmem:[#allocation114_spill] sm:$0xff] %v8793_v7  ;;  %v8822_v7 = vadd.f32 1e-05, %v1105_v18  ;;  %v1907_v18 = vsel %vm1906_vm7, %v8746_v8, %v1903_v14  ;;  %v2772_v8 = vld [vmem:[%s10612_s2 + $0x170] sm:$0xff]  ;;  %v1881_v14 = vmul.f32 0.5, %v1880_v34  ;;  %vm8897_vm15 = vmor %vm1914_vm14, %vm1915_vm11  ;;  %vm2095_vm1 = vweird.f32 %v8842_v27 }
 0x2b4   : > { %vm2096_vm2 = vmor %vm2094_vm3, %vm2095_vm1 }
 0x2b5   : > { %5822 = vrsqrt.f32 %v8822_v7  ;;  %v1882_v17 = vsub.f32 1.5, %v1881_v14  ;;  %vm1894_vm6 = vweird.f32 %v8822_v7 }
 0x2b6   : > { %3047 = vperm.xlu0 %5707, %v2773_v58   ;;  %5824 = vrsqrt.f32 %v8832_v48 }
 0x2b7   : > { %2892 = vperm.xlu2 %5709, %v2742_v13   ;;  %2897 = vperm.xlu1 %5708, %v2743_v60   ;;  %v1910_v60 = vmul.f32 %v8799_v57, %v1909_v33  ;;  %v2201_v33 = vmul.f32 %v1937_v28, %v1193_v21  ;;  %v2788_v21 = vld [vmem:[%s10612_s2 + $0x1f0] sm:$0xff]  ;;  %v1883_v28 = vmul.f32 %v8797_v9, %v1882_v17 }
 0x2b8   : > { %v8795_v30 = vpop.permute.xlu2 %2444  ;;  %v8825_v5 = vpop.permute.xlu0 %2439 }
 0x2b9   : > { %11109 = vst [vmem:[#allocation115_spill] sm:$0xff] %v8795_v30  ;;  %v8834_v58 = vpop.permute.xlu1 %2419  ;;  %v1911_v30 = vmul.f32 0.5, %v1910_v60  ;;  %v1122_v60 = vmul.f32 0.020408163, %v8290_v38 }
 0x2ba   : > { %11110 = vst [vmem:[#allocation116_spill] sm:$0xff] %v8825_v5  ;;  %v2089_v5 = vmul.f32 %v8842_v27, %v8789_v12 }
 0x2bb   : > { %11113 = vst [vmem:[#allocation117_spill] sm:$0xff] %v8834_v58  ;;  %v2198_v58 = vmul.f32 %v1907_v18, %v1190_v51  ;;  %v8865_v34 = vpop.eup %5822  ;;  %v8893_v17 = vadd.f32 1e-05, %v1122_v60  ;;  %v1102_v60 = vmul.f32 0.020408163, %v7725_v55 }
 0x2bc   : > { %v2090_v22 = vmul.f32 %v8842_v27, %v2089_v5  ;;  %v8867_v36 = vpop.eup %5824  ;;  %v2789_v5 = vld [vmem:[%s10612_s2 + $0x1f8] sm:$0xff]  ;;  %vm1895_vm4 = vweird.f32 %v8865_v34 }
 0x2bd   : > { %v2079_v38 = vmul.f32 %v8867_v36, %v8832_v48  ;;  %5826 = vrsqrt.f32 %v8893_v17  ;;  %vm2085_vm5 = vweird.f32 %v8867_v36  ;;  %vm8964_vm7 = vmor %vm1894_vm6, %vm1895_vm4  ;;  %vm2064_vm11 = vweird.f32 %v8893_v17 }
 0x2be   : > { %2524 = vperm.xlu0 %5707, %v2198_v58   ;;  %v2771_v58 = vld [vmem:[%s10612_s2 + $0x168] sm:$0xff]  ;;  %vm8979_vm9 = vmor %vm2084_vm8, %vm2085_vm5 }
 0x2bf   : > { %2539 = vperm.xlu2 %5709, %v2201_v33   ;;  %3042 = vperm.xlu1 %5708, %v2772_v8   ;;  %v1889_v8 = vmul.f32 %v8865_v34, %v8822_v7 }
 0x2c0   : > { %v8840_v13 = vpop.permute.xlu2 %2459  ;;  %v8858_v25 = vpop.permute.xlu0 %2454 }
 0x2c1   : > { %11114 = vst [vmem:[#allocation118_spill] sm:$0xff] %v8840_v13  ;;  %v8861_v51 = vpop.permute.xlu1 %2434  ;;  %v1912_v13 = vsub.f32 1.5, %v1911_v30  ;;  %v2091_v30 = vmul.f32 0.5, %v2090_v22 }
 0x2c2   : > { %11115 = vst [vmem:[#allocation119_spill] sm:$0xff] %v8858_v25  ;;  %v1103_v25 = vmul.f32 0.020408163, %v7803_v50 }
 0x2c3   : > { %11116 = vst [vmem:[#allocation120_spill] sm:$0xff] %v8861_v51  ;;  %v1913_v14 = vmul.f32 %v8799_v57, %v1912_v13  ;;  %v2092_v51 = vsub.f32 1.5, %v2091_v30  ;;  %v1191_v30 = vld [vmem:[%s10611_s1 + $0x1e8] sm:$0xff]  ;;  %v8927_v13 = vadd.f32 1e-05, %v1102_v60  ;;  %v8942_v12 = vpop.eup %5826 }
 0x2c4   : > { %vm2065_vm10 = vweird.f32 %v8942_v12 }
 0x2c5   : > { %5828 = vrsqrt.f32 %v8927_v13  ;;  %vm9042_vm12 = vmor %vm2064_vm11, %vm2065_vm10 }
 0x2c6   : > { %3037 = vperm.xlu0 %5707, %v2771_v58  }
 0x2c7   : > { %3122 = vperm.xlu2 %5709, %v2788_v21   ;;  %3127 = vperm.xlu1 %5708, %v2789_v5   ;;  %v1887_v21 = vsel %vm8888_vm13, %v8797_v9, %v1883_v28  ;;  %v1890_v5 = vmul.f32 %v8865_v34, %v1889_v8  ;;  %v2673_v9 = vmul.f32 %v8712_v46, %v11123_v45  ;;  %v2770_v28 = vld [vmem:[%s10612_s2 + $0x160] sm:$0xff]  ;;  %v11124_v45 = vld [vmem:[#allocation5_spill] sm:$0xff] }
 0x2c8   : > { %v8863_v18 = vpop.permute.xlu2 %2882  ;;  %v8895_v22 = vpop.permute.xlu0 %2469  ;;  %v2196_v55 = vmul.f32 %v1887_v21, %v1188_v1  ;;  %v2093_v8 = vmul.f32 %v8842_v27, %v2092_v51  ;;  %v2672_v46 = vmul.f32 %v8742_v6, %v11124_v45 }
 0x2c9   : > { %11119 = vst [vmem:[#allocation121_spill] sm:$0xff] %v8895_v22  ;;  %v8901_v58 = vpop.permute.xlu1 %2449  ;;  %v2080_v22 = vmul.f32 %v8867_v36, %v2079_v38 }
 0x2ca   : > { %11122 = vst [vmem:[#allocation122_spill] sm:$0xff] %v8901_v58  ;;  %v1917_v58 = vsel %vm8897_vm15, %v8799_v57, %v1913_v14  ;;  %v1891_v57 = vmul.f32 0.5, %v1890_v5  ;;  %v8929_v14 = vadd.f32 1e-05, %v1103_v25  ;;  %v2097_v25 = vsel %vm2096_vm2, %v8842_v27, %v2093_v8  ;;  %v2787_v27 = vld [vmem:[%s10612_s2 + $0x1e8] sm:$0xff] }
 0x2cb   : > { %v2199_v38 = vmul.f32 %v1917_v58, %v1191_v30  ;;  %v2081_v50 = vmul.f32 0.5, %v2080_v22  ;;  %v1209_v22 = vld [vmem:[%s10611_s1 + $0x278] sm:$0xff]  ;;  %v8962_v45 = vpop.eup %5828  ;;  %vm1864_vm15 = vweird.f32 %v8927_v13 }
 0x2cc   : > { %v1892_v6 = vsub.f32 1.5, %v1891_v57  ;;  %5830 = vrsqrt.f32 %v8929_v14  ;;  %v2217_v30 = vmul.f32 %v2097_v25, %v1209_v22  ;;  %v11125_v57 = vld [vmem:[#allocation83_spill] sm:$0xff]  ;;  %v11133_v25 = vld [vmem:[#allocation85_spill] sm:$0xff]  ;;  %vm1865_vm13 = vweird.f32 %v8962_v45 }
 0x2cd   : > { %v2082_v60 = vsub.f32 1.5, %v2081_v50  ;;  %v2656_v50 = vmul.f32 %v8617_v2, %v11125_v57  ;;  %vm9084_vm1 = vmor %vm1864_vm15, %vm1865_vm13  ;;  %vm1874_vm3 = vweird.f32 %v8929_v14 }
 0x2ce   : > { %2514 = vperm.xlu0 %5707, %v2196_v55   ;;  %v1123_v55 = vmul.f32 0.020408163, %v8187_v49 }
 0x2cf   : > { %2529 = vperm.xlu2 %5709, %v2199_v38   ;;  %3032 = vperm.xlu1 %5708, %v2770_v28   ;;  %v2059_v28 = vmul.f32 %v8942_v12, %v8893_v17  ;;  %v1893_v38 = vmul.f32 %v8865_v34, %v1892_v6 }
 0x2d0   : > { %v2968_v41 = vpop.permute.xlu2 %2967  ;;  %v2963_v51 = vpop.permute.xlu0 %2962  ;;  %v8974_v7 = vadd.f32 1e-05, %v1123_v55 }
 0x2d1   : > { %v3261_v33 = vadd.f32 %v2968_v41, %v2673_v9  ;;  %v3260_v1 = vadd.f32 %v2963_v51, %v2672_v46  ;;  %v8934_v58 = vpop.permute.xlu1 %2464  ;;  %v2786_v9 = vld [vmem:[%s10612_s2 + $0x1e0] sm:$0xff]  ;;  %v11128_v46 = vld [vmem:[#allocation88_spill] sm:$0xff]  ;;  %v2060_v22 = vmul.f32 %v8942_v12, %v2059_v28 }
 0x2d2   : > { %v2657_v51 = vmul.f32 %v8649_v40, %v11128_v46  ;;  %v8972_v2 = vpop.eup %5830  ;;  %v1101_v40 = vmul.f32 0.020408163, %v7727_v29  ;;  %v2784_v29 = vld [vmem:[%s10612_s2 + $0x1d0] sm:$0xff]  ;;  %5832 = vrsqrt.f32 %v8974_v7  ;;  %v1100_v46 = vmul.f32 0.020408163, %v7738_v42  ;;  %v11134_v42 = vld [vmem:[#allocation81_spill] sm:$0xff] }
 0x2d3   : > { %v3345_v21 = vmax.f32 %v3261_v33, 0.0  ;;  %v3344_v5 = vmax.f32 %v3260_v1, 0.0  ;;  %v2083_v33 = vmul.f32 %v8867_v36, %v2082_v60  ;;  %v3244_v1 = vadd.f32 %v8863_v18, %v2656_v50  ;;  %v1189_v60 = vld [vmem:[%s10611_s1 + $0x1d8] sm:$0xff] }
 0x2d4   : > { %v1869_v55 = vmul.f32 %v8972_v2, %v8929_v14  ;;  %v9004_v50 = vadd.f32 1e-05, %v1101_v40  ;;  %vm1875_vm14 = vweird.f32 %v8972_v2  ;;  %vm2074_vm5 = vweird.f32 %v8974_v7 }
 0x2d5   : > { %v3539_v8 = vpack.c.bf16 %v3345_v21, %v3344_v5  ;;  %v1897_v5 = vsel %vm8964_vm7, %v8865_v34, %v1893_v38  ;;  %v3328_v28 = vmax.f32 %v3244_v1, 0.0  ;;  %vm9095_vm2 = vmor %vm1874_vm3, %vm1875_vm14 }
 0x2d6   : > { %2619 = vperm.xlu0 %5707, %v2217_v30   ;;  %v1208_v30 = vld [vmem:[%s10611_s1 + $0x270] sm:$0xff]  ;;  %v2197_v38 = vmul.f32 %v1897_v5, %v1189_v60  ;;  %5834 = vrsqrt.f32 %v9004_v50  ;;  %vm1854_vm8 = vweird.f32 %v9004_v50 }
 0x2d7   : > { %3112 = vperm.xlu2 %5709, %v2786_v9   ;;  %3117 = vperm.xlu1 %5708, %v2787_v27   ;;  %v2087_v9 = vsel %vm8979_vm9, %v8867_v36, %v2083_v33  ;;  %v1859_v27 = vmul.f32 %v8962_v45, %v8927_v13  ;;  %v11131_v36 = vld [vmem:[#allocation84_spill] sm:$0xff] }
 0x2d8   : > { %v8940_v41 = vpop.permute.xlu2 %2952  ;;  %v2878_v21 = vpop.permute.xlu0 %2877  ;;  %4353 = vmatpush.bf16.msra.mxu1 %v3539_v8  ;;  %5689 = vmatpush.bf16.msra.mxu3 %v3539_v8  ;;  %v2061_v8 = vmul.f32 0.5, %v2060_v22  ;;  %v2216_v57 = vmul.f32 %v2087_v9, %v1208_v30  ;;  %v2655_v33 = vmul.f32 %v8612_v0, %v11131_v36  ;;  %v1870_v0 = vmul.f32 %v8972_v2, %v1869_v55 }
 0x2d9   : > { %v2888_v48 = vpop.permute.xlu1 %2887  ;;  %v1860_v40 = vmul.f32 %v8962_v45, %v1859_v27  ;;  %v9025_v27 = vadd.f32 1e-05, %v1100_v46 }
 0x2da   : > { %v3245_v18 = vadd.f32 %v2888_v48, %v2657_v51  ;;  %v11132_v51 = vld [vmem:[#allocation80_spill] sm:$0xff]  ;;  %v2654_v48 = vmul.f32 %v8634_v20, %v11133_v25  ;;  %v3243_v22 = vadd.f32 %v2878_v21, %v2655_v33  ;;  %v2062_v60 = vsub.f32 1.5, %v2061_v8  ;;  %v9020_v20 = vpop.eup %5832  ;;  %v2805_v21 = vld [vmem:[%s10612_s2 + $0x278] sm:$0xff]  ;;  %v11135_v33 = vld [vmem:[#allocation51_spill] sm:$0xff] }
 0x2db   : > { %v2653_v1 = vmul.f32 %v8595_v61, %v11132_v51  ;;  %v2652_v61 = vmul.f32 %v8582_v39, %v11134_v42  ;;  %v2768_v8 = vld [vmem:[%s10612_s2 + $0x150] sm:$0xff]  ;;  %v2769_v39 = vld [vmem:[%s10612_s2 + $0x158] sm:$0xff]  ;;  %v2069_v36 = vmul.f32 %v9020_v20, %v8974_v7  ;;  %5836 = vrsqrt.f32 %v9025_v27 }
 0x2dc   : > { %v3329_v34 = vmax.f32 %v3245_v18, 0.0  ;;  %v3327_v55 = vmax.f32 %v3243_v22, 0.0  ;;  %v1098_v25 = vmul.f32 0.020408163, %v7656_v24  ;;  %v11144_v24 = vld [vmem:[#allocation95_spill] sm:$0xff]  ;;  %vm2075_vm4 = vweird.f32 %v9020_v20 }
 0x2dd   : > { %v2668_v13 = vmul.f32 %v8675_v56, %v11144_v24  ;;  %v1186_v56 = vld [vmem:[%s10611_s1 + $0x1c0] sm:$0xff]  ;;  %vm9133_vm6 = vmor %vm2074_vm5, %vm2075_vm4  ;;  %v11151_v24 = vld [vmem:[#allocation52_spill] sm:$0xff]  ;;  %vm1844_vm11 = vweird.f32 %v9025_v27 }
 0x2de   : > { %3102 = vperm.xlu0 %5707, %v2784_v29   ;;  %v3531_v49 = vpack.c.bf16 %v3329_v34, %v3328_v28 }
 0x2df   : > { %2519 = vperm.xlu2 %5709, %v2197_v38   ;;  %2614 = vperm.xlu1 %5708, %v2216_v57   ;;  %v1871_v38 = vmul.f32 0.5, %v1870_v0  ;;  %v2063_v57 = vmul.f32 %v8942_v12, %v2062_v60  ;;  %v1206_v60 = vld [vmem:[%s10611_s1 + $0x260] sm:$0xff] }
 0x2e0   : > { %v2868_v6 = vpop.permute.xlu2 %2867  ;;  %v2863_v18 = vpop.permute.xlu0 %2862  ;;  %4239 = vmatpush.bf16.msra.mxu0 %v3531_v49  ;;  %5681 = vmatpush.bf16.msra.mxu2 %v3531_v49  ;;  %v2670_v49 = vmul.f32 %v8696_v32, %v11135_v33  ;;  %v11140_v33 = vld [vmem:[#allocation53_spill] sm:$0xff] }
 0x2e1   : > { %v2873_v5 = vpop.permute.xlu1 %2872  ;;  %v3241_v9 = vadd.f32 %v2868_v6, %v2653_v1  ;;  %v3240_v28 = vadd.f32 %v2863_v18, %v2652_v61  ;;  %v1861_v6 = vmul.f32 0.5, %v1860_v40  ;;  %v9040_v1 = vpop.eup %5834 }
 0x2e2   : > { %v3242_v29 = vadd.f32 %v2873_v5, %v2654_v48  ;;  %v11138_v48 = vld [vmem:[#allocation50_spill] sm:$0xff]  ;;  %v3258_v18 = vadd.f32 %v8940_v41, %v2670_v49  ;;  %v2067_v5 = vsel %vm9042_vm12, %v8942_v12, %v2063_v57  ;;  %v2070_v41 = vmul.f32 %v9020_v20, %v2069_v36  ;;  %v2785_v12 = vld [vmem:[%s10612_s2 + $0x1d8] sm:$0xff] }
 0x2e3   : > { %v3325_v46 = vmax.f32 %v3241_v9, 0.0  ;;  %v2671_v22 = vmul.f32 %v8691_v54, %v11138_v48  ;;  %v3324_v40 = vmax.f32 %v3240_v28, 0.0  ;;  %v1862_v0 = vsub.f32 1.5, %v1861_v6  ;;  %v2804_v6 = vld [vmem:[%s10612_s2 + $0x270] sm:$0xff] }
 0x2e4   : > { %v3326_v34 = vmax.f32 %v3242_v29, 0.0  ;;  %v1872_v54 = vsub.f32 1.5, %v1871_v38  ;;  %v1849_v29 = vmul.f32 %v9040_v1, %v9004_v50  ;;  %v1120_v28 = vmul.f32 0.020408163, %v8111_v35 }
 0x2e5   : > { %v3529_v9 = vpack.c.bf16 %v3325_v46, %v3324_v40  ;;  %v1863_v38 = vmul.f32 %v8962_v45, %v1862_v0  ;;  %v2071_v36 = vmul.f32 0.5, %v2070_v41  ;;  %v2669_v49 = vmul.f32 %v8721_v10, %v11140_v33 }
 0x2e6   : > { %3207 = vperm.xlu0 %5707, %v2805_v21   ;;  %v3530_v51 = vpack.c.bf16 %v3327_v55, %v3326_v34  ;;  %v11139_v21 = vld [vmem:[#allocation96_spill] sm:$0xff]  ;;  %v3342_v34 = vmax.f32 %v3258_v18, 0.0  ;;  %v1873_v57 = vmul.f32 %v8972_v2, %v1872_v54  ;;  %v1850_v48 = vmul.f32 %v9040_v1, %v1849_v29 }
 0x2e7   : > { %3022 = vperm.xlu2 %5709, %v2768_v8   ;;  %3027 = vperm.xlu1 %5708, %v2769_v39   ;;  %v2667_v55 = vmul.f32 %v8677_v59, %v11139_v21  ;;  %v2214_v39 = vmul.f32 %v2067_v5, %v1206_v60  ;;  %v1121_v59 = vmul.f32 0.020408163, %v8242_v3  ;;  %v9089_v10 = vadd.f32 1e-05, %v1120_v28  ;;  %v2767_v28 = vld [vmem:[%s10612_s2 + $0x148] sm:$0xff] }
 0x2e8   : > { %v9015_v30 = vpop.permute.xlu2 %2852  ;;  %v2948_v32 = vpop.permute.xlu0 %2947  ;;  %4240 = vmatpush.bf16.msra.mxu0 %v3530_v51  ;;  %5682 = vmatpush.bf16.msra.mxu2 %v3530_v51  ;;  %v2072_v54 = vsub.f32 1.5, %v2071_v36  ;;  %v9115_v29 = vadd.f32 1e-05, %v1098_v25  ;;  %vm1855_vm7 = vweird.f32 %v9040_v1 }
 0x2e9   : > { %v2958_v17 = vpop.permute.xlu1 %2957  ;;  %v9075_v51 = vpop.eup %5836  ;;  %v3257_v40 = vadd.f32 %v2948_v32, %v2669_v49  ;;  %v1867_v32 = vsel %vm9084_vm1, %v8962_v45, %v1863_v38  ;;  %5838 = vrsqrt.f32 %v9089_v10  ;;  %v11147_v38 = vld [vmem:[#allocation77_spill] sm:$0xff]  ;;  %vm9170_vm9 = vmor %vm1854_vm8, %vm1855_vm7  ;;  %vm2044_vm15 = vweird.f32 %v9089_v10 }
 0x2ea   : > { %v3259_v61 = vadd.f32 %v2958_v17, %v2671_v22  ;;  %v11141_v22 = vld [vmem:[#allocation2_spill] sm:$0xff]  ;;  %v9099_v17 = vadd.f32 1e-05, %v1121_v59  ;;  %v1839_v21 = vmul.f32 %v9075_v51, %v9025_v27  ;;  %v2650_v59 = vmul.f32 %v8566_v52, %v11147_v38 }
 0x2eb   : > { %v2666_v3 = vmul.f32 %v8704_v43, %v11141_v22  ;;  %v3341_v45 = vmax.f32 %v3257_v40, 0.0  ;;  %v2802_v40 = vld [vmem:[%s10612_s2 + $0x260] sm:$0xff]  ;;  %vm1845_vm10 = vweird.f32 %v9075_v51  ;;  %vm1824_vm5 = vweird.f32 %v9115_v29 }
 0x2ec   : > { %v3343_v8 = vmax.f32 %v3259_v61, 0.0  ;;  %4241 = vmatpush.bf16.msra.mxu0 %v3529_v9  ;;  %5683 = vmatpush.bf16.msra.mxu2 %v3529_v9  ;;  %v1187_v61 = vld [vmem:[%s10611_s1 + $0x1c8] sm:$0xff]  ;;  %v1877_v9 = vsel %vm9095_vm2, %v8972_v2, %v1873_v57  ;;  %5840 = vrsqrt.f32 %v9099_v17  ;;  %v11148_v57 = vld [vmem:[#allocation82_spill] sm:$0xff]  ;;  %v3238_v33 = vadd.f32 %v9015_v30, %v2650_v59  ;;  %v1185_v59 = vld [vmem:[%s10611_s1 + $0x1b8] sm:$0xff] }
 0x2ed   : > { %v2651_v36 = vmul.f32 %v8619_v44, %v11148_v57  ;;  %v1840_v25 = vmul.f32 %v9075_v51, %v1839_v21  ;;  %5842 = vrsqrt.f32 %v9115_v29  ;;  %v1207_v44 = vld [vmem:[%s10611_s1 + $0x268] sm:$0xff]  ;;  %v11158_v57 = vld [vmem:[#allocation74_spill] sm:$0xff]  ;;  %vm9219_vm12 = vmor %vm1844_vm11, %vm1845_vm10  ;;  %vm2054_vm3 = vweird.f32 %v9099_v17 }
 0x2ee   : > { %2604 = vperm.xlu0 %5707, %v2214_v39   ;;  %v3538_v46 = vpack.c.bf16 %v3343_v8, %v3342_v34  ;;  %v1851_v34 = vmul.f32 0.5, %v1850_v48  ;;  %v2194_v39 = vmul.f32 %v1867_v32, %v1186_v56  ;;  %v11152_v56 = vld [vmem:[#allocation78_spill] sm:$0xff] }
 0x2ef   : > { %3107 = vperm.xlu2 %5709, %v2785_v12   ;;  %3202 = vperm.xlu1 %5708, %v2804_v6   ;;  %v2195_v12 = vmul.f32 %v1877_v9, %v1187_v61  ;;  %v2073_v6 = vmul.f32 %v9020_v20, %v2072_v54  ;;  %v2649_v32 = vmul.f32 %v8544_v47, %v11152_v56  ;;  %v11156_v47 = vld [vmem:[#allocation79_spill] sm:$0xff] }
 0x2f0   : > { %v2938_v42 = vpop.permute.xlu2 %2937  ;;  %v2933_v0 = vpop.permute.xlu0 %2932  ;;  %4354 = vmatpush.bf16.msra.mxu1 %v3538_v46  ;;  %5690 = vmatpush.bf16.msra.mxu3 %v3538_v46  ;;  %v1852_v46 = vsub.f32 1.5, %v1851_v34 }
 0x2f1   : > { %v3255_v35 = vadd.f32 %v2938_v42, %v2667_v55  ;;  %v3254_v60 = vadd.f32 %v2933_v0, %v2666_v3  ;;  %v2943_v14 = vpop.permute.xlu1 %2942  ;;  %v9137_v3 = vpop.eup %5838  ;;  %v2077_v30 = vsel %vm9133_vm6, %v9020_v20, %v2073_v6  ;;  %v3322_v0 = vmax.f32 %v3238_v33, 0.0 }
 0x2f2   : > { %v3256_v41 = vadd.f32 %v2943_v14, %v2668_v13  ;;  %v9146_v18 = vpop.eup %5840  ;;  %v1119_v13 = vmul.f32 0.020408163, %v11151_v24  ;;  %v1853_v20 = vmul.f32 %v9040_v1, %v1852_v46  ;;  %v2039_v14 = vmul.f32 %v9137_v3, %v9089_v10 }
 0x2f3   : > { %v3339_v5 = vmax.f32 %v3255_v35, 0.0  ;;  %v3338_v55 = vmax.f32 %v3254_v60, 0.0  ;;  %v2766_v60 = vld [vmem:[%s10612_s2 + $0x140] sm:$0xff]  ;;  %v2215_v54 = vmul.f32 %v2077_v30, %v1207_v44  ;;  %v9166_v21 = vpop.eup %5842  ;;  %vm2045_vm13 = vweird.f32 %v9137_v3 }
 0x2f4   : > { %v3340_v8 = vmax.f32 %v3256_v41, 0.0  ;;  %v2049_v41 = vmul.f32 %v9146_v18, %v9099_v17  ;;  %v9164_v9 = vadd.f32 1e-05, %v1119_v13  ;;  %v2040_v6 = vmul.f32 %v9137_v3, %v2039_v14  ;;  %v2782_v30 = vld [vmem:[%s10612_s2 + $0x1c0] sm:$0xff]  ;;  %vm9247_vm1 = vmor %vm2044_vm15, %vm2045_vm13  ;;  %v11171_v17 = vld [vmem:[#allocation91_spill] sm:$0xff] }
 0x2f5   : > { %v3536_v2 = vpack.c.bf16 %v3339_v5, %v3338_v55  ;;  %v1841_v5 = vmul.f32 0.5, %v1840_v25  ;;  %v1819_v46 = vmul.f32 %v9166_v21, %v9115_v29  ;;  %v11159_v25 = vld [vmem:[#allocation49_spill] sm:$0xff]  ;;  %vm2055_vm14 = vweird.f32 %v9146_v18 }
 0x2f6   : > { %3017 = vperm.xlu0 %5707, %v2767_v28   ;;  %v3537_v35 = vpack.c.bf16 %v3341_v45, %v3340_v8  ;;  %v11155_v28 = vld [vmem:[#allocation75_spill] sm:$0xff]  ;;  %v2648_v45 = vmul.f32 %v8597_v53, %v11156_v47  ;;  %v2050_v53 = vmul.f32 %v9146_v18, %v2049_v41  ;;  %5844 = vrsqrt.f32 %v9164_v9  ;;  %vm9259_vm2 = vmor %vm2054_vm3, %vm2055_vm14 }
 0x2f7   : > { %2504 = vperm.xlu2 %5709, %v2194_v39   ;;  %2509 = vperm.xlu1 %5708, %v2195_v12   ;;  %v2647_v34 = vmul.f32 %v8511_v62, %v11155_v28  ;;  %v11157_v39 = vld [vmem:[#allocation99_spill] sm:$0xff]  ;;  %v1857_v62 = vsel %vm9170_vm9, %v9040_v1, %v1853_v20  ;;  %v1118_v48 = vmul.f32 0.020408163, %v11159_v25  ;;  %v2041_v13 = vmul.f32 0.5, %v2040_v6 }
 0x2f8   : > { %v9101_v42 = vpop.permute.xlu2 %2922  ;;  %v2848_v49 = vpop.permute.xlu0 %2847  ;;  %4355 = vmatpush.bf16.msra.mxu1 %v3537_v35  ;;  %5691 = vmatpush.bf16.msra.mxu3 %v3537_v35  ;;  %v1099_v12 = vmul.f32 0.020408163, %v11157_v39  ;;  %v2193_v1 = vmul.f32 %v1857_v62, %v1185_v59  ;;  %v2803_v6 = vld [vmem:[%s10612_s2 + $0x268] sm:$0xff]  ;;  %vm1825_vm4 = vweird.f32 %v9166_v21  ;;  %vm2034_vm8 = vweird.f32 %v9164_v9 }
 0x2f9   : > { %v2858_v52 = vpop.permute.xlu1 %2857  ;;  %v3237_v8 = vadd.f32 %v2848_v49, %v2649_v32  ;;  %v9209_v14 = vadd.f32 1e-05, %v1118_v48  ;;  %v2042_v55 = vsub.f32 1.5, %v2041_v13  ;;  %v11168_v48 = vld [vmem:[#allocation89_spill] sm:$0xff]  ;;  %vm9301_vm6 = vmor %vm1824_vm5, %vm1825_vm4 }
 0x2fa   : > { %v3239_v7 = vadd.f32 %v2858_v52, %v2651_v36  ;;  %v2646_v36 = vmul.f32 %v8564_v19, %v11158_v57  ;;  %v2783_v19 = vld [vmem:[%s10612_s2 + $0x1c8] sm:$0xff] }
 0x2fb   : > { %v3321_v52 = vmax.f32 %v3237_v8, 0.0  ;;  %vm2024_vm14 = vweird.f32 %v9209_v14 }
 0x2fc   : > { %v3323_v43 = vmax.f32 %v3239_v7, 0.0  ;;  %4356 = vmatpush.bf16.msra.mxu1 %v3536_v2  ;;  %5692 = vmatpush.bf16.msra.mxu3 %v3536_v2  ;;  %v1842_v2 = vsub.f32 1.5, %v1841_v5  ;;  %v1820_v5 = vmul.f32 %v9166_v21, %v1819_v46  ;;  %v11167_v46 = vld [vmem:[#allocation90_spill] sm:$0xff] }
 0x2fd   : > { %v2661_v25 = vmul.f32 %v8647_v11, %v11167_v46  ;;  %v2660_v11 = vmul.f32 %v8673_v31, %v11171_v17 }
 0x2fe   : > { %3192 = vperm.xlu0 %5707, %v2802_v40   ;;  %v3528_v61 = vpack.c.bf16 %v3323_v43, %v3322_v0  ;;  %v1843_v24 = vmul.f32 %v9075_v51, %v1842_v2  ;;  %v2051_v40 = vmul.f32 0.5, %v2050_v53  ;;  %v11160_v0 = vld [vmem:[#allocation93_spill] sm:$0xff]  ;;  %v1821_v39 = vmul.f32 0.5, %v1820_v5  ;;  %v11164_v53 = vld [vmem:[#allocation94_spill] sm:$0xff] }
 0x2ff   : > { %2609 = vperm.xlu2 %5709, %v2215_v54   ;;  %3012 = vperm.xlu1 %5708, %v2766_v60   ;;  %v2664_v43 = vmul.f32 %v8662_v15, %v11160_v0  ;;  %v11161_v54 = vld [vmem:[#allocation92_spill] sm:$0xff]  ;;  %v9214_v15 = vpop.eup %5844  ;;  %v2663_v57 = vmul.f32 %v8689_v37, %v11164_v53  ;;  %v2662_v37 = vmul.f32 %v8645_v16, %v11168_v48  ;;  %v11177_v53 = vld [vmem:[#allocation98_spill] sm:$0xff] }
 0x300   : > { %v2838_v22 = vpop.permute.xlu2 %2837  ;;  %v2833_v50 = vpop.permute.xlu0 %2832  ;;  %4242 = vmatpush.bf16.msra.mxu0 %v3528_v61  ;;  %5684 = vmatpush.bf16.msra.mxu2 %v3528_v61  ;;  %v2665_v41 = vmul.f32 %v8660_v23, %v11161_v54  ;;  %v2052_v23 = vsub.f32 1.5, %v2051_v40  ;;  %v1847_v8 = vsel %vm9219_vm12, %v9075_v51, %v1843_v24  ;;  %v2029_v51 = vmul.f32 %v9214_v15, %v9164_v9  ;;  %v1204_v40 = vld [vmem:[%s10611_s1 + $0x250] sm:$0xff]  ;;  %v1203_v9 = vld [vmem:[%s10611_s1 + $0x248] sm:$0xff] }
 0x301   : > { %v2843_v38 = vpop.permute.xlu1 %2842  ;;  %v3235_v33 = vadd.f32 %v2838_v22, %v2647_v34  ;;  %v3234_v7 = vadd.f32 %v2833_v50, %v2646_v36  ;;  %v9201_v22 = vadd.f32 1e-05, %v1099_v12  ;;  %v3252_v56 = vadd.f32 %v9101_v42, %v2664_v43  ;;  %v2764_v50 = vld [vmem:[%s10612_s2 + $0x130] sm:$0xff]  ;;  %v1205_v43 = vld [vmem:[%s10611_s1 + $0x258] sm:$0xff] }
 0x302   : > { %v3236_v49 = vadd.f32 %v2843_v38, %v2648_v45  ;;  %v1184_v45 = vld [vmem:[%s10611_s1 + $0x1b0] sm:$0xff]  ;;  %v2043_v38 = vmul.f32 %v9137_v3, %v2042_v55  ;;  %v2053_v62 = vmul.f32 %v9146_v18, %v2052_v23  ;;  %v2030_v10 = vmul.f32 %v9214_v15, %v2029_v51 }
 0x303   : > { %v3319_v60 = vmax.f32 %v3235_v33, 0.0  ;;  %v3318_v32 = vmax.f32 %v3234_v7, 0.0  ;;  %5846 = vrsqrt.f32 %v9201_v22  ;;  %v3336_v12 = vmax.f32 %v3252_v56, 0.0 }
 0x304   : > { %v3320_v44 = vmax.f32 %v3236_v49, 0.0  ;;  %5848 = vrsqrt.f32 %v9209_v14  ;;  %v2192_v59 = vmul.f32 %v1847_v8, %v1184_v45  ;;  %v2047_v0 = vsel %vm9247_vm1, %v9137_v3, %v2043_v38  ;;  %v11172_v3 = vld [vmem:[#allocation55_spill] sm:$0xff]  ;;  %v11176_v8 = vld [vmem:[#allocation76_spill] sm:$0xff]  ;;  %v1182_v38 = vld [vmem:[%s10611_s1 + $0x1a0] sm:$0xff] }
 0x305   : > { %v3526_v42 = vpack.c.bf16 %v3319_v60, %v3318_v32  ;;  %v2057_v31 = vsel %vm9259_vm2, %v9146_v18, %v2053_v62  ;;  %v1116_v5 = vmul.f32 0.020408163, %v11172_v3  ;;  %v2031_v32 = vmul.f32 0.5, %v2030_v10  ;;  %v11179_v10 = vld [vmem:[#allocation72_spill] sm:$0xff] }
 0x306   : > { %2499 = vperm.xlu0 %5707, %v2193_v1   ;;  %v3527_v20 = vpack.c.bf16 %v3321_v52, %v3320_v44  ;;  %v1822_v44 = vsub.f32 1.5, %v1821_v39  ;;  %v2213_v27 = vmul.f32 %v2057_v31, %v1205_v43  ;;  %vm2035_vm7 = vweird.f32 %v9214_v15 }
 0x307   : > { %3092 = vperm.xlu2 %5709, %v2782_v30   ;;  %3097 = vperm.xlu1 %5708, %v2783_v19   ;;  %v9305_v45 = vadd.f32 1e-05, %v1116_v5  ;;  %v2643_v1 = vmul.f32 %v8509_v26, %v11179_v10  ;;  %vm9344_vm9 = vmor %vm2034_vm8, %vm2035_vm7  ;;  %vm1834_vm12 = vweird.f32 %v9201_v22  ;;  %v5621_v10 = vld [vmem:[%s9366_s28 + $0x214] sm:$0xf] }
 0x308   : > { %v9186_v35 = vpop.permute.xlu2 %2822  ;;  %v2918_v61 = vpop.permute.xlu0 %2917  ;;  %4243 = vmatpush.bf16.msra.mxu0 %v3527_v20  ;;  %5685 = vmatpush.bf16.msra.mxu2 %v3527_v20  ;;  %v2781_v20 = vld [vmem:[%s10612_s2 + $0x1b8] sm:$0xff]  ;;  %v1823_v18 = vmul.f32 %v9166_v21, %v1822_v44 }
 0x309   : > { %v2928_v28 = vpop.permute.xlu1 %2927  ;;  %v9244_v33 = vpop.eup %5846  ;;  %v3251_v52 = vadd.f32 %v2918_v61, %v2663_v57  ;;  %v2212_v61 = vmul.f32 %v2047_v0, %v1204_v40  ;;  %v1096_v57 = vmul.f32 0.020408163, %v11177_v53  ;;  %5850 = vrsqrt.f32 %v9305_v45  ;;  %v11183_v40 = vld [vmem:[#allocation64_spill] sm:$0xff]  ;;  %v5630_v53 = vld [vmem:[%s9366_s28 + $0x254] sm:$0xf0] }
 0x30a   : > { %v3253_v47 = vadd.f32 %v2928_v28, %v2665_v41  ;;  %v9267_v16 = vpop.eup %5848  ;;  %v1829_v60 = vmul.f32 %v9244_v33, %v9201_v22  ;;  %v11173_v28 = vld [vmem:[#allocation71_spill] sm:$0xff]  ;;  %vm1835_vm10 = vweird.f32 %v9244_v33  ;;  %vm2004_vm3 = vweird.f32 %v9305_v45 }
 0x30b   : > { %v3335_v54 = vmax.f32 %v3251_v52, 0.0  ;;  %v2019_v55 = vmul.f32 %v9267_v16, %v9209_v14  ;;  %vm2025_vm11 = vweird.f32 %v9267_v16  ;;  %vm9387_vm13 = vmor %vm1834_vm12, %vm1835_vm10 }
 0x30c   : > { %v3337_v2 = vmax.f32 %v3253_v47, 0.0  ;;  %4244 = vmatpush.bf16.msra.mxu0 %v3526_v42  ;;  %5686 = vmatpush.bf16.msra.mxu2 %v3526_v42  ;;  %v11186_v42 = vld [vmem:[#allocation60_spill] sm:$0xff]  ;;  %vm9402_vm15 = vmor %vm2024_vm14, %vm2025_vm11 }
 0x30e   : > { %3002 = vperm.xlu0 %5707, %v2764_v50   ;;  %v3535_v36 = vpack.c.bf16 %v3337_v2, %v3336_v12  ;;  %v2645_v50 = vmul.f32 %v8449_v4, %v11176_v8  ;;  %v1830_v12 = vmul.f32 %v9244_v33, %v1829_v60  ;;  %v2032_v2 = vsub.f32 1.5, %v2031_v32  ;;  %v2800_v32 = vld [vmem:[%s10612_s2 + $0x250] sm:$0xff] }
 0x30f   : > { %3197 = vperm.xlu2 %5709, %v2803_v6   ;;  %2494 = vperm.xlu1 %5708, %v2192_v59   ;;  %v1827_v4 = vsel %vm9301_vm6, %v9166_v21, %v1823_v18  ;;  %v2765_v21 = vld [vmem:[%s10612_s2 + $0x138] sm:$0xff]  ;;  %v9360_v5 = vpop.eup %5850 }
 0x310   : > { %v2908_v34 = vpop.permute.xlu2 %2907  ;;  %v2903_v7 = vpop.permute.xlu0 %2902  ;;  %4357 = vmatpush.bf16.msra.mxu1 %v3535_v36  ;;  %5693 = vmatpush.bf16.msra.mxu3 %v3535_v36  ;;  %v11178_v36 = vld [vmem:[#allocation100_spill] sm:$0xff]  ;;  %v2190_v48 = vmul.f32 %v1827_v4, %v1182_v38  ;;  %v1831_v52 = vmul.f32 0.5, %v1830_v12  ;;  %vm2005_vm1 = vweird.f32 %v9360_v5 }
 0x311   : > { %v2913_v30 = vpop.permute.xlu1 %2912  ;;  %v3249_v24 = vadd.f32 %v2908_v34, %v2661_v25  ;;  %v3248_v41 = vadd.f32 %v2903_v7, %v2660_v11  ;;  %v2644_v34 = vmul.f32 %v8380_v63, %v11173_v28  ;;  %v1097_v49 = vmul.f32 0.020408163, %v11178_v36  ;;  %vm9469_vm2 = vmor %vm2004_vm3, %vm2005_vm1 }
 0x312   : > { %v3250_v13 = vadd.f32 %v2913_v30, %v2662_v37  ;;  %v2780_v37 = vld [vmem:[%s10612_s2 + $0x1b0] sm:$0xff]  ;;  %v2033_v7 = vmul.f32 %v9214_v15, %v2032_v2  ;;  %v9338_v11 = vadd.f32 1e-05, %v1096_v57  ;;  %v1832_v31 = vsub.f32 1.5, %v1831_v52  ;;  %v11189_v2 = vld [vmem:[#allocation86_spill] sm:$0xff] }
 0x313   : > { %v3333_v23 = vmax.f32 %v3249_v24, 0.0  ;;  %v3232_v63 = vadd.f32 %v9186_v35, %v2644_v34  ;;  %v3332_v39 = vmax.f32 %v3248_v41, 0.0  ;;  %v2020_v35 = vmul.f32 %v9267_v16, %v2019_v55  ;;  %v11184_v55 = vld [vmem:[#allocation106_spill] sm:$0xff] }
 0x314   : > { %v3334_v56 = vmax.f32 %v3250_v13, 0.0  ;;  %v9342_v30 = vadd.f32 1e-05, %v1097_v49  ;;  %v11182_v13 = vld [vmem:[#allocation73_spill] sm:$0xff]  ;;  %5852 = vrsqrt.f32 %v9338_v11  ;;  %v1117_v28 = vmul.f32 0.020408163, %v11184_v55 }
 0x315   : > { %v3533_v62 = vpack.c.bf16 %v3333_v23, %v3332_v39  ;;  %v3316_v46 = vmax.f32 %v3232_v63, 0.0  ;;  %v2021_v44 = vmul.f32 0.5, %v2020_v35  ;;  %v2642_v0 = vmul.f32 %v11183_v40, %v11182_v13  ;;  %v5294_v63 = vld [vmem:[%s9366_s28 + $0x210] sm:$0xf]  ;;  %v5624_v39 = vld [vmem:[%s9366_s28 + $0x224] sm:$0xf0] }
 0x316   : > { %3087 = vperm.xlu0 %5707, %v2781_v20   ;;  %v3534_v47 = vpack.c.bf16 %v3335_v54, %v3334_v56  ;;  %v2037_v20 = vsel %vm9344_vm9, %v9214_v15, %v2033_v7  ;;  %5854 = vrsqrt.f32 %v9342_v30  ;;  %v1999_v34 = vmul.f32 %v9360_v5, %v9305_v45  ;;  %v1183_v49 = vld [vmem:[%s10611_s1 + $0x1a8] sm:$0xff]  ;;  %v2778_v52 = vld [vmem:[%s10612_s2 + $0x1a0] sm:$0xff]  ;;  %v11194_v40 = vld [vmem:[#allocation68_spill] sm:$0xff] }
 0x317   : > { %2594 = vperm.xlu2 %5709, %v2212_v61   ;;  %2599 = vperm.xlu1 %5708, %v2213_v27   ;;  %v2022_v54 = vsub.f32 1.5, %v2021_v44  ;;  %v2211_v15 = vmul.f32 %v2037_v20, %v1203_v9  ;;  %v2801_v61 = vld [vmem:[%s10612_s2 + $0x258] sm:$0xff]  ;;  %v1833_v27 = vmul.f32 %v9244_v33, %v1832_v31  ;;  %v9397_v22 = vadd.f32 1e-05, %v1117_v28  ;;  %v1200_v45 = vld [vmem:[%s10611_s1 + $0x230] sm:$0xff] }
 0x318   : > { %v9265_v19 = vpop.permute.xlu2 %2892  ;;  %v2818_v29 = vpop.permute.xlu0 %2817  ;;  %4358 = vmatpush.bf16.msra.mxu1 %v3534_v47  ;;  %5694 = vmatpush.bf16.msra.mxu3 %v3534_v47  ;;  %v11185_v47 = vld [vmem:[#allocation87_spill] sm:$0xff]  ;;  %v11196_v20 = vld [vmem:[#allocation69_spill] sm:$0xff]  ;;  %vm1804_vm6 = vweird.f32 %v9338_v11  ;;  %vm1814_vm8 = vweird.f32 %v9342_v30 }
 0x319   : > { %v2828_v6 = vpop.permute.xlu1 %2827  ;;  %v3231_v43 = vadd.f32 %v2818_v29, %v2643_v1  ;;  %v2023_v23 = vmul.f32 %v9267_v16, %v2022_v54  ;;  %v2658_v8 = vmul.f32 %v11186_v42, %v11185_v47  ;;  %v5295_v29 = vor.u32 %v5624_v39, %v5294_v63  ;;  %v5296_v1 = vld [vmem:[%s9366_s28 + $0x228] sm:$0xf0]  ;;  %v2762_v63 = vld [vmem:[%s10612_s2 + $0x120] sm:$0xff] }
 0x31a   : > { %v3233_v59 = vadd.f32 %v2828_v6, %v2645_v50  ;;  %v11190_v6 = vld [vmem:[#allocation97_spill] sm:$0xff]  ;;  %5856 = vrsqrt.f32 %v9397_v22  ;;  %v11197_v54 = vld [vmem:[#allocation119_spill] sm:$0xff]  ;;  %vm2014_vm11 = vweird.f32 %v9397_v22 }
 0x31b   : > { %v3315_v56 = vmax.f32 %v3231_v43, 0.0  ;;  %v2659_v38 = vmul.f32 %v11190_v6, %v11189_v2  ;;  %v3246_v4 = vadd.f32 %v9265_v19, %v2658_v8  ;;  %v11198_v47 = vld [vmem:[#allocation103_spill] sm:$0xff] }
 0x31c   : > { %v3317_v25 = vmax.f32 %v3233_v59, 0.0  ;;  %4359 = vmatpush.bf16.msra.mxu1 %v3533_v62  ;;  %5695 = vmatpush.bf16.msra.mxu3 %v3533_v62  ;;  %v9395_v59 = vpop.eup %5852  ;;  %v2000_v62 = vmul.f32 %v9360_v5, %v1999_v34  ;;  %v1114_v42 = vmul.f32 0.020408163, %v11198_v47  ;;  %v2763_v39 = vld [vmem:[%s10612_s2 + $0x128] sm:$0xff] }
 0x31d   : > { %v9408_v19 = vpop.eup %5854  ;;  %v1799_v7 = vmul.f32 %v9395_v59, %v9338_v11  ;;  %v3330_v44 = vmax.f32 %v3246_v4, 0.0  ;;  %vm1805_vm4 = vweird.f32 %v9395_v59  ;;  %v5344_v11 = vld [vmem:[%s9366_s28 + $0x288] sm:$0xf0] }
 0x31e   : > { %2484 = vperm.xlu0 %5707, %v2190_v48   ;;  %v3525_v17 = vpack.c.bf16 %v3317_v25, %v3316_v46  ;;  %v1837_v46 = vsel %vm9387_vm13, %v9244_v33, %v1833_v27  ;;  %v1202_v25 = vld [vmem:[%s10611_s1 + $0x240] sm:$0xff]  ;;  %v2027_v48 = vsel %vm9402_vm15, %v9267_v16, %v2023_v23  ;;  %v1809_v16 = vmul.f32 %v9408_v19, %v9342_v30  ;;  %v2799_v23 = vld [vmem:[%s10612_s2 + $0x248] sm:$0xff]  ;;  %vm9505_vm7 = vmor %vm1804_vm6, %vm1805_vm4 }
 0x31f   : > { %3007 = vperm.xlu2 %5709, %v2765_v21   ;;  %3082 = vperm.xlu1 %5708, %v2780_v37   ;;  %v11193_v21 = vld [vmem:[#allocation45_spill] sm:$0xff]  ;;  %v2191_v24 = vmul.f32 %v1837_v46, %v1183_v49  ;;  %v2210_v13 = vmul.f32 %v2027_v48, %v1202_v25  ;;  %vm1815_vm5 = vweird.f32 %v9408_v19 }
 0x320   : > { %v9317_v51 = vpop.permute.xlu2 %2539  ;;  %v9350_v26 = vpop.permute.xlu0 %2534  ;;  %4245 = vmatpush.bf16.msra.mxu0 %v3525_v17  ;;  %5687 = vmatpush.bf16.msra.mxu2 %v3525_v17  ;;  %v1115_v37 = vmul.f32 0.020408163, %v11193_v21  ;;  %v2001_v17 = vmul.f32 0.5, %v2000_v62  ;;  %v1810_v55 = vmul.f32 %v9408_v19, %v1809_v16  ;;  %v5318_v62 = vld [vmem:[%s9366_s28 + $0x240] sm:$0xf]  ;;  %v11202_v46 = vld [vmem:[#allocation29_spill] sm:$0xff]  ;;  %vm9516_vm9 = vmor %vm1814_vm8, %vm1815_vm5 }
 0x321   : > { %v2813_v60 = vpop.permute.xlu1 %2812  ;;  %v9445_v34 = vpop.eup %5856  ;;  %v2705_v25 = vmul.f32 %v9317_v51, %v11202_v46  ;;  %v5320_v16 = vld [vmem:[%s9366_s28 + $0x258] sm:$0xf0]  ;;  %v11212_v46 = vld [vmem:[#allocation26_spill] sm:$0xff] }
 0x322   : > { %v3230_v41 = vadd.f32 %v2813_v60, %v2642_v0  ;;  %v11195_v0 = vld [vmem:[#allocation118_spill] sm:$0xff]  ;;  %v5299_v60 = vor.u32 %v5621_v10, %v5296_v1  ;;  %v9435_v9 = vadd.f32 1e-05, %v1115_v37  ;;  %v1811_v2 = vmul.f32 0.5, %v1810_v55  ;;  %v2779_v10 = vld [vmem:[%s10612_s2 + $0x1a8] sm:$0xff] }
 0x323   : > { %v2689_v43 = vmul.f32 %v11195_v0, %v11194_v40  ;;  %v2009_v6 = vmul.f32 %v9445_v34, %v9397_v22  ;;  %v2798_v1 = vld [vmem:[%s10612_s2 + $0x240] sm:$0xff]  ;;  %vm2015_vm10 = vweird.f32 %v9445_v34 }
 0x324   : > { %v3314_v18 = vmax.f32 %v3230_v41, 0.0  ;;  %v2688_v41 = vmul.f32 %v11197_v54, %v11196_v20  ;;  %5858 = vrsqrt.f32 %v9435_v9  ;;  %v1812_v51 = vsub.f32 1.5, %v1811_v2  ;;  %v11204_v20 = vld [vmem:[#allocation122_spill] sm:$0xff]  ;;  %vm9562_vm12 = vmor %vm2014_vm11, %vm2015_vm10 }
 0x325   : > { %vm1994_vm14 = vweird.f32 %v9435_v9 }
 0x326   : > { %2589 = vperm.xlu0 %5707, %v2211_v15   ;;  %v3524_v50 = vpack.c.bf16 %v3315_v56, %v3314_v18  ;;  %v1800_v15 = vmul.f32 %v9395_v59, %v1799_v7 }
 0x327   : > { %3182 = vperm.xlu2 %5709, %v2800_v32   ;;  %3187 = vperm.xlu1 %5708, %v2801_v61   ;;  %v2002_v32 = vsub.f32 1.5, %v2001_v17 }
 0x328   : > { %v9358_v3 = vpop.permute.xlu2 %3122  ;;  %v3048_v35 = vpop.permute.xlu0 %3047  ;;  %4246 = vmatpush.bf16.msra.mxu0 %v3524_v50  ;;  %5688 = vmatpush.bf16.msra.mxu2 %v3524_v50 }
 0x329   : > { %v2898_v14 = vpop.permute.xlu1 %2897  ;;  %v3277_v56 = vadd.f32 %v3048_v35, %v2689_v43  ;;  %v2003_v12 = vmul.f32 %v9360_v5, %v2002_v32  ;;  %v1813_v43 = vmul.f32 %v9408_v19, %v1812_v51  ;;  %v11207_v32 = vld [vmem:[#allocation9_spill] sm:$0xff] }
 0x32a   : > { %v3247_v36 = vadd.f32 %v2898_v14, %v2659_v38  ;;  %v11199_v38 = vld [vmem:[#allocation24_spill] sm:$0xff]  ;;  %v5319_v14 = vor.u32 %v5630_v53, %v5318_v62 }
 0x32b   : > { %4302 = vmatmul.bf16.vlgmr.msra.gmra.mxu2 %v5295_v29  ;;  %v3361_v8 = vmax.f32 %v3277_v56, 0.0  ;;  %v1801_v29 = vmul.f32 0.5, %v1800_v15  ;;  %v2704_v4 = vmul.f32 %v9350_v26, %v11199_v38  ;;  %v1817_v2 = vsel %vm9516_vm9, %v9408_v19, %v1813_v43  ;;  %v11211_v38 = vld [vmem:[#allocation67_spill] sm:$0xff]  ;;  %v2796_v43 = vld [vmem:[%s10612_s2 + $0x230] sm:$0xff]  ;;  %v5032_v15 = vld [vmem:[%s9366_s28 + $0x18] sm:$0xf0] }
 0x32c   : > { %v3331_v33 = vmax.f32 %v3247_v36, 0.0  ;;  %v9467_v36 = vadd.f32 1e-05, %v1114_v42 }
 0x32d   : > { %v3292_v26 = vadd.f32 %v9358_v3, %v2704_v4  ;;  %v1802_v21 = vsub.f32 1.5, %v1801_v29  ;;  %v2010_v3 = vmul.f32 %v9445_v34, %v2009_v6  ;;  %v2761_v6 = vld [vmem:[%s10612_s2 + $0x118] sm:$0xff]  ;;  %v1128_v4 = vmul.f32 0.020408163, %v11211_v38 }
 0x32e   : > { %3072 = vperm.xlu0 %5707, %v2778_v52   ;;  %v3532_v31 = vpack.c.bf16 %v3331_v33, %v3330_v44  ;;  %v2007_v52 = vsel %vm9469_vm2, %v9360_v5, %v2003_v12  ;;  %v9484_v44 = vpop.eup %5858  ;;  %5860 = vrsqrt.f32 %v9467_v36  ;;  %v1181_v12 = vld [vmem:[%s10611_s1 + $0x198] sm:$0xff]  ;;  %vm1984_vm3 = vweird.f32 %v9467_v36 }
 0x32f   : > { %2489 = vperm.xlu2 %5709, %v2191_v24   ;;  %2584 = vperm.xlu1 %5708, %v2210_v13   ;;  %v3376_v5 = vmax.f32 %v3292_v26, 0.0  ;;  %v2208_v24 = vmul.f32 %v2007_v52, %v1200_v45  ;;  %v5627_v13 = vld [vmem:[%s9366_s28 + $0x244] sm:$0xf]  ;;  %v1803_v40 = vmul.f32 %v9395_v59, %v1802_v21  ;;  %v1989_v0 = vmul.f32 %v9484_v44, %v9435_v9  ;;  %v5558_v21 = vld [vmem:[%s9366_s28 + $0x14] sm:$0xf0] }
 0x330   : > { %v9406_v57 = vpop.permute.xlu2 %2529  ;;  %v9439_v18 = vpop.permute.xlu0 %2524  ;;  %4360 = vmatpush.bf16.msra.mxu1 %v3532_v31  ;;  %5696 = vmatpush.bf16.msra.mxu3 %v3532_v31  ;;  %v2011_v31 = vmul.f32 0.5, %v2010_v3  ;;  %v5323_v56 = vor.u32 %v5627_v13, %v5320_v16  ;;  %v2189_v49 = vmul.f32 %v1817_v2, %v1181_v12  ;;  %v5636_v52 = vld [vmem:[%s9366_s28 + $0x284] sm:$0xf0]  ;;  %v9552_v51 = vadd.f32 1e-05, %v1128_v4  ;;  %v11213_v3 = vld [vmem:[#allocation25_spill] sm:$0xff] }
 0x331   : > { %v3043_v61 = vpop.permute.xlu1 %3042  ;;  %v1990_v47 = vmul.f32 %v9484_v44, %v1989_v0  ;;  %v1807_v29 = vsel %vm9505_vm7, %v9395_v59, %v1803_v40  ;;  %vm1995_vm13 = vweird.f32 %v9484_v44 }
 0x332   : > { %v3276_v28 = vadd.f32 %v3043_v61, %v2688_v41  ;;  %v11208_v61 = vld [vmem:[#allocation115_spill] sm:$0xff]  ;;  %v2012_v30 = vsub.f32 1.5, %v2011_v31  ;;  %v1201_v31 = vld [vmem:[%s10611_s1 + $0x238] sm:$0xff]  ;;  %5862 = vrsqrt.f32 %v9552_v51  ;;  %vm1996_vm15 = vmor %vm1994_vm14, %vm1995_vm13  ;;  %vm2124_vm5 = vweird.f32 %v9552_v51 }
 0x333   : > { %4416 = vmatmul.bf16.vlgmr.msra.gmra.mxu3 %v5299_v60  ;;  %v11203_v60 = vld [vmem:[#allocation70_spill] sm:$0xff]  ;;  %v2686_v55 = vmul.f32 %v11208_v61, %v11207_v32  ;;  %v1991_v53 = vmul.f32 0.5, %v1990_v47 }
 0x334   : > { %v3360_v50 = vmax.f32 %v3276_v28, 0.0  ;;  %v2687_v54 = vmul.f32 %v11204_v20, %v11203_v60  ;;  %v2013_v19 = vmul.f32 %v9445_v34, %v2012_v30  ;;  %v11218_v20 = vld [vmem:[#allocation21_spill] sm:$0xff] }
 0x336   : > { %3177 = vperm.xlu0 %5707, %v2799_v23   ;;  %v3547_v35 = vpack.c.bf16 %v3361_v8, %v3360_v50  ;;  %v9523_v50 = vpop.eup %5860  ;;  %v2017_v60 = vsel %vm9562_vm12, %v9445_v34, %v2013_v19  ;;  %v2776_v19 = vld [vmem:[%s10612_s2 + $0x190] sm:$0xff] }
 0x337   : > { %2992 = vperm.xlu2 %5709, %v2762_v63   ;;  %2997 = vperm.xlu1 %5708, %v2763_v39   ;;  %v1180_v39 = vld [vmem:[%s10611_s1 + $0x190] sm:$0xff]  ;;  %v1979_v62 = vmul.f32 %v9523_v50, %v9467_v36  ;;  %v2209_v34 = vmul.f32 %v2017_v60, %v1201_v31  ;;  %vm1985_vm1 = vweird.f32 %v9523_v50  ;;  %v5570_v60 = vld [vmem:[%s9366_s28 + $0x74] sm:$0xf0] }
 0x338   : > { %v9442_v27 = vpop.permute.xlu2 %3112  ;;  %v3038_v48 = vpop.permute.xlu0 %3037  ;;  %4467 = vmatpush.bf16.msrb.mxu2 %v3547_v35  ;;  %vm9635_vm2 = vmor %vm1984_vm3, %vm1985_vm1 }
 0x339   : > { %v3128_v37 = vpop.permute.xlu1 %3127  ;;  %v3275_v28 = vadd.f32 %v3038_v48, %v2687_v54  ;;  %v5030_v48 = vld [vmem:[%s9366_s28] sm:$0xf] }
 0x33a   : > { %v3293_v33 = vadd.f32 %v3128_v37, %v2705_v25  ;;  %v2702_v25 = vmul.f32 %v9439_v18, %v11212_v46  ;;  %v5342_v37 = vld [vmem:[%s9366_s28 + $0x270] sm:$0xf]  ;;  %v5031_v45 = vor.u32 %v5558_v21, %v5030_v48  ;;  %v11220_v46 = vld [vmem:[#allocation58_spill] sm:$0xff] }
 0x33b   : > { %4307 = vmatmul.bf16.gmra.mxu2 %v5319_v14  ;;  %v3359_v35 = vmax.f32 %v3275_v28, 0.0  ;;  %v2188_v14 = vmul.f32 %v1807_v29, %v1180_v39  ;;  %v5343_v18 = vor.u32 %v5636_v52, %v5342_v37  ;;  %v5633_v28 = vld [vmem:[%s9366_s28 + $0x274] sm:$0xf]  ;;  %v11219_v39 = vld [vmem:[#allocation22_spill] sm:$0xff]  ;;  %v11221_v37 = vld [vmem:[#allocation11_spill] sm:$0xff] }
 0x33c   : > { %v3377_v17 = vmax.f32 %v3293_v33, 0.0  ;;  %v2703_v33 = vmul.f32 %v9406_v57, %v11213_v3  ;;  %4247 = vmatmul.bf16.vlgmr.msra.gmra.mxu0 %v5031_v45  ;;  %v1980_v57 = vmul.f32 %v9523_v50, %v1979_v62  ;;  %v5347_v12 = vor.u32 %v5633_v28, %v5344_v11  ;;  %v11222_v45 = vld [vmem:[#allocation120_spill] sm:$0xff]  ;;  %v1198_v28 = vld [vmem:[%s10611_s1 + $0x220] sm:$0xff] }
 0x33d   : > { %v2684_v52 = vmul.f32 %v11222_v45, %v11221_v37  ;;  %v5054_v3 = vld [vmem:[%s9366_s28 + $0x30] sm:$0xf] }
 0x33e   : > { %2574 = vperm.xlu0 %5707, %v2208_v24   ;;  %v3555_v41 = vpack.c.bf16 %v3377_v17, %v3376_v5  ;;  %v11214_v5 = vld [vmem:[#allocation105_spill] sm:$0xff]  ;;  %v1992_v24 = vsub.f32 1.5, %v1991_v53 }
 0x33f   : > { %3077 = vperm.xlu2 %5709, %v2779_v10   ;;  %3172 = vperm.xlu1 %5708, %v2798_v1   ;;  %v3290_v10 = vadd.f32 %v9442_v27, %v2702_v25  ;;  %v1113_v17 = vmul.f32 0.020408163, %v11214_v5  ;;  %v11217_v27 = vld [vmem:[#allocation104_spill] sm:$0xff]  ;;  %v1129_v25 = vmul.f32 0.020408163, %v11220_v46 }
 0x340   : > { %v9482_v7 = vpop.permute.xlu2 %2519  ;;  %v9512_v23 = vpop.permute.xlu0 %2514  ;;  %4581 = vmatpush.bf16.msrb.mxu3 %v3555_v41  ;;  %v1112_v40 = vmul.f32 0.020408163, %v11217_v27  ;;  %v2760_v41 = vld [vmem:[%s10612_s2 + $0x110] sm:$0xff]  ;;  %v1993_v47 = vmul.f32 %v9484_v44, %v1992_v24 }
 0x341   : > { %v3033_v42 = vpop.permute.xlu1 %3032  ;;  %v2701_v54 = vmul.f32 %v9482_v7, %v11218_v20  ;;  %v3374_v32 = vmax.f32 %v3290_v10, 0.0  ;;  %v2700_v29 = vmul.f32 %v9512_v23, %v11219_v39  ;;  %v9604_v23 = vpop.eup %5862  ;;  %v5366_v10 = vld [vmem:[%s9366_s28 + $0x2a0] sm:$0xf]  ;;  %v9639_v20 = vadd.f32 1e-05, %v1129_v25 }
 0x342   : > { %v3274_v63 = vadd.f32 %v3033_v42, %v2686_v55  ;;  %v1981_v42 = vmul.f32 0.5, %v1980_v57  ;;  %v9594_v2 = vadd.f32 1e-05, %v1112_v40  ;;  %v1997_v9 = vsel %vm1996_vm15, %v9484_v44, %v1993_v47  ;;  %v2777_v44 = vld [vmem:[%s10612_s2 + $0x198] sm:$0xff]  ;;  %v11226_v57 = vld [vmem:[#allocation116_spill] sm:$0xff] }
 0x343   : > { %4421 = vmatmul.bf16.gmra.mxu3 %v5323_v56  ;;  %v5555_v56 = vld [vmem:[%s9366_s28 + $0x4] sm:$0xf]  ;;  %vm2125_vm4 = vweird.f32 %v9604_v23  ;;  %vm2134_vm14 = vweird.f32 %v9639_v20 }
 0x344   : > { %v3358_v59 = vmax.f32 %v3274_v63, 0.0  ;;  %v5035_v55 = vor.u32 %v5555_v56, %v5032_v15  ;;  %v9589_v63 = vadd.f32 1e-05, %v1113_v17  ;;  %v1982_v53 = vsub.f32 1.5, %v1981_v42  ;;  %v11224_v17 = vld [vmem:[#allocation102_spill] sm:$0xff]  ;;  %vm9720_vm6 = vmor %vm2124_vm5, %vm2125_vm4 }
 0x345   : > { %v1110_v22 = vmul.f32 0.020408163, %v11224_v17  ;;  %v5056_v56 = vld [vmem:[%s9366_s28 + $0x48] sm:$0xf0]  ;;  %v2774_v42 = vld [vmem:[%s10612_s2 + $0x180] sm:$0xff]  ;;  %vm1964_vm11 = vweird.f32 %v9594_v2 }
 0x346   : > { %2987 = vperm.xlu0 %5707, %v2761_v6   ;;  %v3546_v26 = vpack.c.bf16 %v3359_v35, %v3358_v59  ;;  %4361 = vmatmul.bf16.vlgmr.msra.gmra.mxu1 %v5035_v55  ;;  %v1199_v59 = vld [vmem:[%s10611_s1 + $0x228] sm:$0xff]  ;;  %5864 = vrsqrt.f32 %v9589_v63  ;;  %v1983_v21 = vmul.f32 %v9523_v50, %v1982_v53  ;;  %v2758_v17 = vld [vmem:[%s10612_s2 + $0x100] sm:$0xff]  ;;  %vm1974_vm9 = vweird.f32 %v9589_v63 }
 0x347   : > { %2474 = vperm.xlu2 %5709, %v2188_v14   ;;  %2479 = vperm.xlu1 %5708, %v2189_v49   ;;  %5866 = vrsqrt.f32 %v9594_v2  ;;  %v2207_v49 = vmul.f32 %v1997_v9, %v1199_v59  ;;  %v11230_v53 = vld [vmem:[#allocation43_spill] sm:$0xff] }
 0x348   : > { %v9521_v8 = vpop.permute.xlu2 %3022  ;;  %v9557_v1 = vpop.permute.xlu0 %2619  ;;  %4468 = vmatpush.bf16.msrb.mxu2 %v3546_v26  ;;  %v2119_v26 = vmul.f32 %v9604_v23, %v9552_v51  ;;  %v1987_v11 = vsel %vm9635_vm2, %v9523_v50, %v1983_v21  ;;  %v5639_v50 = vld [vmem:[%s9366_s28 + $0x2a4] sm:$0xf]  ;;  %5868 = vrsqrt.f32 %v9639_v20 }
 0x349   : > { %v3118_v13 = vpop.permute.xlu1 %3117  ;;  %v3272_v40 = vadd.f32 %v9521_v8, %v2684_v52  ;;  %v5561_v8 = vld [vmem:[%s9366_s28 + $0x34] sm:$0xf]  ;;  %v2206_v59 = vmul.f32 %v1987_v11, %v1198_v28 }
 0x34a   : > { %v3291_v0 = vadd.f32 %v3118_v13, %v2703_v33  ;;  %v5564_v33 = vld [vmem:[%s9366_s28 + $0x44] sm:$0xf0]  ;;  %v5642_v13 = vld [vmem:[%s9366_s28 + $0x2b4] sm:$0xf0]  ;;  %v2120_v36 = vmul.f32 %v9604_v23, %v2119_v26  ;;  %v5059_v47 = vor.u32 %v5561_v8, %v5056_v56 }
 0x34b   : > { %4312 = vmatmul.bf16.gmra.mxu2 %v5343_v18  ;;  %v11223_v18 = vld [vmem:[#allocation101_spill] sm:$0xff]  ;;  %v5055_v24 = vor.u32 %v5564_v33, %v5054_v3  ;;  %v5648_v56 = vld [vmem:[%s9366_s28 + $0x2e4] sm:$0xf0] }
 0x34c   : > { %v3375_v61 = vmax.f32 %v3291_v0, 0.0  ;;  %v1111_v5 = vmul.f32 0.020408163, %v11223_v18  ;;  %v9631_v31 = vpop.eup %5864  ;;  %v11232_v33 = vld [vmem:[#allocation61_spill] sm:$0xff] }
 0x34d   : > { %4252 = vmatmul.bf16.gmra.mxu0 %v5055_v24  ;;  %v9646_v15 = vpop.eup %5866  ;;  %v1969_v39 = vmul.f32 %v9631_v31, %v9589_v63  ;;  %vm1975_vm7 = vweird.f32 %v9631_v31 }
 0x34e   : > { %3162 = vperm.xlu0 %5707, %v2796_v43   ;;  %v3554_v30 = vpack.c.bf16 %v3375_v61, %v3374_v32  ;;  %v5367_v43 = vor.u32 %v5642_v13, %v5366_v10  ;;  %v11229_v32 = vld [vmem:[#allocation54_spill] sm:$0xff]  ;;  %v9687_v3 = vpop.eup %5868  ;;  %v1126_v10 = vmul.f32 0.020408163, %v11232_v33  ;;  %vm1965_vm8 = vweird.f32 %v9646_v15  ;;  %v11237_v33 = vld [vmem:[#allocation112_spill] sm:$0xff]  ;;  %vm9764_vm10 = vmor %vm1974_vm9, %vm1975_vm7 }
 0x34f   : > { %2579 = vperm.xlu2 %5709, %v2209_v34   ;;  %2982 = vperm.xlu1 %5708, %v2760_v41   ;;  %v1127_v61 = vmul.f32 0.020408163, %v11229_v32  ;;  %v9655_v34 = vadd.f32 1e-05, %v1111_v5  ;;  %vm9775_vm12 = vmor %vm1964_vm11, %vm1965_vm8  ;;  %vm2135_vm13 = vweird.f32 %v9687_v3 }
 0x350   : > { %v3108_v16 = vpop.permute.xlu2 %3107  ;;  %v3103_v6 = vpop.permute.xlu0 %3102  ;;  %4582 = vmatpush.bf16.msrb.mxu3 %v3554_v30  ;;  %v2797_v30 = vld [vmem:[%s10612_s2 + $0x238] sm:$0xff]  ;;  %vm9814_vm15 = vmor %vm2134_vm14, %vm2135_vm13  ;;  %vm4175_vm13 = vcmask 261120  }
 0x351   : > { %v3289_v7 = vadd.f32 %v3108_v16, %v2701_v54  ;;  %v3288_v38 = vadd.f32 %v3103_v6, %v2700_v29  ;;  %v9596_v35 = vpop.permute.xlu1 %2614  ;;  %v11225_v16 = vld [vmem:[#allocation10_spill] sm:$0xff]  ;;  %v3356_v29 = vmax.f32 %v3272_v40, 0.0  ;;  %v5368_v6 = vld [vmem:[%s9366_s28 + $0x2b8] sm:$0xf0]  ;;  %v9672_v9 = vadd.f32 1e-05, %v1127_v61 }
 0x352   : > { %v2685_v27 = vmul.f32 %v11226_v57, %v11225_v16  ;;  %5870 = vrsqrt.f32 %v9655_v34  ;;  %v2129_v40 = vmul.f32 %v9687_v3, %v9639_v20  ;;  %v5573_v20 = vld [vmem:[%s9366_s28 + $0x94] sm:$0xf]  ;;  %vm1954_vm1 = vweird.f32 %v9655_v34 }
 0x353   : > { %v3373_v4 = vmax.f32 %v3289_v7, 0.0  ;;  %v3372_v14 = vmax.f32 %v3288_v38, 0.0  ;;  %4426 = vmatmul.bf16.gmra.mxu3 %v5347_v12  ;;  %v9657_v7 = vadd.f32 1e-05, %v1110_v22  ;;  %v1959_v38 = vmul.f32 %v9646_v15, %v9594_v2  ;;  %v2759_v22 = vld [vmem:[%s10612_s2 + $0x108] sm:$0xff] }
 0x355   : > { %v3553_v48 = vpack.c.bf16 %v3373_v4, %v3372_v14  ;;  %v2121_v4 = vmul.f32 0.5, %v2120_v36  ;;  %v2721_v14 = vmul.f32 %v9557_v1, %v11230_v53  ;;  %5872 = vrsqrt.f32 %v9657_v7  ;;  %v5390_v36 = vld [vmem:[%s9366_s28 + $0x2d0] sm:$0xf]  ;;  %v5080_v53 = vld [vmem:[%s9366_s28 + $0x78] sm:$0xf0] }
 0x356   : > { %2569 = vperm.xlu0 %5707, %v2207_v49   ;;  %4366 = vmatmul.bf16.gmra.mxu1 %v5059_v47  ;;  %v1960_v1 = vmul.f32 %v9646_v15, %v1959_v38  ;;  %5874 = vrsqrt.f32 %v9672_v9  ;;  %v5391_v11 = vor.u32 %v5648_v56, %v5390_v36  ;;  %v11235_v38 = vld [vmem:[#allocation39_spill] sm:$0xff]  ;;  %vm1944_vm7 = vweird.f32 %v9657_v7 }
 0x357   : > { %3062 = vperm.xlu2 %5709, %v2776_v19   ;;  %3067 = vperm.xlu1 %5708, %v2777_v44   ;;  %v5371_v19 = vor.u32 %v5639_v50, %v5368_v6  ;;  %v11231_v44 = vld [vmem:[#allocation44_spill] sm:$0xff]  ;;  %v2122_v21 = vsub.f32 1.5, %v2121_v4  ;;  %v2130_v50 = vmul.f32 %v9687_v3, %v2129_v40 }
 0x358   : > { %v9602_v62 = vpop.permute.xlu2 %2504  ;;  %v3208_v0 = vpop.permute.xlu0 %3207  ;;  %4583 = vmatpush.bf16.msrb.mxu3 %v3553_v48  ;;  %v2720_v46 = vmul.f32 %v9596_v35, %v11231_v44  ;;  %v1970_v48 = vmul.f32 %v9631_v31, %v1969_v39  ;;  %v2795_v35 = vld [vmem:[%s10612_s2 + $0x228] sm:$0xff]  ;;  %v1961_v16 = vmul.f32 0.5, %v1960_v1 }
 0x359   : > { %v3028_v54 = vpop.permute.xlu1 %3027  ;;  %v3309_v25 = vadd.f32 %v3208_v0, %v2721_v14  ;;  %v9699_v24 = vpop.eup %5870  ;;  %v2123_v57 = vmul.f32 %v9604_v23, %v2122_v21 }
 0x35a   : > { %v3273_v55 = vadd.f32 %v3028_v54, %v2685_v27  ;;  %v1971_v13 = vmul.f32 0.5, %v1970_v48  ;;  %v9710_v54 = vadd.f32 1e-05, %v1126_v10  ;;  %v1949_v61 = vmul.f32 %v9699_v24, %v9655_v34 }
 0x35b   : > { %4317 = vmatmul.bf16.gmra.mxu2 %v5367_v43  ;;  %v3393_v18 = vmax.f32 %v3309_v25, 0.0  ;;  %v9703_v27 = vpop.eup %5872  ;;  %v5078_v43 = vld [vmem:[%s9366_s28 + $0x60] sm:$0xf]  ;;  %v5392_v25 = vld [vmem:[%s9366_s28 + $0x2e8] sm:$0xf0]  ;;  %vm1955_vm3 = vweird.f32 %v9699_v24 }
 0x35c   : > { %v3357_v12 = vmax.f32 %v3273_v55, 0.0  ;;  %v5079_v8 = vor.u32 %v5570_v60, %v5078_v43  ;;  %v9714_v32 = vpop.eup %5874  ;;  %v1939_v51 = vmul.f32 %v9703_v27, %v9657_v7  ;;  %5876 = vrsqrt.f32 %v9710_v54  ;;  %vm9848_vm5 = vmor %vm1954_vm1, %vm1955_vm3 }
 0x35d   : > { %v2109_v6 = vmul.f32 %v9714_v32, %v9672_v9  ;;  %v1950_v14 = vmul.f32 %v9699_v24, %v1949_v61  ;;  %v1196_v61 = vld [vmem:[%s10611_s1 + $0x210] sm:$0xff]  ;;  %vm1945_vm2 = vweird.f32 %v9703_v27  ;;  %vm2115_vm4 = vweird.f32 %v9714_v32 }
 0x35e   : > { %3052 = vperm.xlu0 %5707, %v2774_v42   ;;  %v3545_v49 = vpack.c.bf16 %v3357_v12, %v3356_v29  ;;  %v1212_v42 = vld [vmem:[%s10611_s1 + $0x290] sm:$0xff]  ;;  %4257 = vmatmul.bf16.gmra.mxu0 %v5079_v8  ;;  %v1972_v29 = vsub.f32 1.5, %v1971_v13  ;;  %v1962_v12 = vsub.f32 1.5, %v1961_v16  ;;  %v1940_v48 = vmul.f32 %v9703_v27, %v1939_v51  ;;  %v11241_v13 = vld [vmem:[#allocation63_spill] sm:$0xff]  ;;  %v11242_v16 = vld [vmem:[#allocation113_spill] sm:$0xff] }
 0x35f   : > { %3167 = vperm.xlu2 %5709, %v2797_v30   ;;  %2564 = vperm.xlu1 %5708, %v2206_v59   ;;  %v2127_v30 = vsel %vm9720_vm6, %v9604_v23, %v2123_v57  ;;  %v2775_v23 = vld [vmem:[%s10612_s2 + $0x188] sm:$0xff]  ;;  %v5567_v59 = vld [vmem:[%s9366_s28 + $0x64] sm:$0xf]  ;;  %v2682_v57 = vmul.f32 %v11242_v16, %v11241_v13  ;;  %v1951_v51 = vmul.f32 0.5, %v1950_v14  ;;  %v5654_v14 = vld [vmem:[%s9366_s28 + $0x314] sm:$0xf0]  ;;  %vm2114_vm6 = vweird.f32 %v9672_v9 }
 0x360   : > { %v9642_v41 = vpop.permute.xlu2 %2609  ;;  %v9680_v26 = vpop.permute.xlu0 %2604  ;;  %4469 = vmatpush.bf16.msrb.mxu2 %v3545_v49  ;;  %v2220_v49 = vmul.f32 %v2127_v30, %v1212_v42  ;;  %v5083_v44 = vor.u32 %v5567_v59, %v5080_v53  ;;  %v1973_v1 = vmul.f32 %v9631_v31, %v1972_v29  ;;  %v1963_v21 = vmul.f32 %v9646_v15, %v1962_v12  ;;  %v2793_v29 = vld [vmem:[%s10612_s2 + $0x218] sm:$0xff]  ;;  %v5414_v53 = vld [vmem:[%s9366_s28 + $0x300] sm:$0xf]  ;;  %vm9858_vm8 = vmor %vm2114_vm6, %vm2115_vm4 }
 0x361   : > { %v3203_v37 = vpop.permute.xlu1 %3202  ;;  %v2719_v4 = vmul.f32 %v9642_v41, %v11235_v38  ;;  %v1941_v42 = vmul.f32 0.5, %v1940_v48  ;;  %v5576_v38 = vld [vmem:[%s9366_s28 + $0xa4] sm:$0xf0]  ;;  %v1952_v48 = vsub.f32 1.5, %v1951_v51  ;;  %v11249_v13 = vld [vmem:[#allocation65_spill] sm:$0xff]  ;;  %vm9864_vm9 = vmor %vm1944_vm7, %vm1945_vm2  ;;  %vm2104_vm11 = vweird.f32 %v9710_v54 }
 0x362   : > { %v3308_v52 = vadd.f32 %v3203_v37, %v2720_v46  ;;  %v5645_v46 = vld [vmem:[%s9366_s28 + $0x2d4] sm:$0xf]  ;;  %v2131_v37 = vmul.f32 0.5, %v2130_v50  ;;  %v1967_v55 = vsel %vm9775_vm12, %v9646_v15, %v1963_v21  ;;  %v11250_v16 = vld [vmem:[#allocation117_spill] sm:$0xff] }
 0x363   : > { %4431 = vmatmul.bf16.gmra.mxu3 %v5371_v19  ;;  %v2794_v19 = vld [vmem:[%s10612_s2 + $0x220] sm:$0xff]  ;;  %v5666_v51 = vld [vmem:[%s9366_s28 + $0x374] sm:$0xf0] }
 0x364   : > { %v3392_v5 = vmax.f32 %v3308_v52, 0.0  ;;  %v11236_v52 = vld [vmem:[#allocation62_spill] sm:$0xff]  ;;  %v2132_v2 = vsub.f32 1.5, %v2131_v37 }
 0x365   : > { %v2683_v10 = vmul.f32 %v11237_v33, %v11236_v52 }
 0x366   : > { %3157 = vperm.xlu0 %5707, %v2795_v35   ;;  %v3563_v0 = vpack.c.bf16 %v3393_v18, %v3392_v5  ;;  %4371 = vmatmul.bf16.gmra.mxu1 %v5083_v44  ;;  %v2110_v35 = vmul.f32 %v9714_v32, %v2109_v6  ;;  %v11238_v18 = vld [vmem:[#allocation40_spill] sm:$0xff] }
 0x367   : > { %2972 = vperm.xlu2 %5709, %v2758_v17   ;;  %2977 = vperm.xlu1 %5708, %v2759_v22   ;;  %v2718_v5 = vmul.f32 %v9680_v26, %v11238_v18  ;;  %v5395_v17 = vor.u32 %v5645_v46, %v5392_v25  ;;  %v5102_v6 = vld [vmem:[%s9366_s28 + $0x90] sm:$0xf]  ;;  %v5415_v25 = vor.u32 %v5654_v14, %v5414_v53  ;;  %v1195_v53 = vld [vmem:[%s10611_s1 + $0x208] sm:$0xff] }
 0x368   : > { %v9684_v45 = vpop.permute.xlu2 %3092  ;;  %v3018_v28 = vpop.permute.xlu0 %3017  ;;  %4695 = vmatpush.bf16.msrb.mxu0 %v3563_v0  ;;  %v2111_v30 = vmul.f32 0.5, %v2110_v35  ;;  %v5103_v59 = vor.u32 %v5576_v38, %v5102_v6  ;;  %v1211_v6 = vld [vmem:[%s10611_s1 + $0x288] sm:$0xff] }
 0x369   : > { %v9726_v47 = vpop.permute.xlu1 %2509  ;;  %v3271_v63 = vadd.f32 %v3018_v28, %v2683_v10  ;;  %v9771_v0 = vpop.eup %5876  ;;  %v1197_v28 = vld [vmem:[%s10611_s1 + $0x218] sm:$0xff] }
 0x36a   : > { %v2099_v15 = vmul.f32 %v9771_v0, %v9710_v54  ;;  %v2112_v33 = vsub.f32 1.5, %v2111_v30  ;;  %v11254_v30 = vld [vmem:[#allocation109_spill] sm:$0xff] }
 0x36b   : > { %4322 = vmatmul.bf16.gmra.mxu2 %v5391_v11  ;;  %v1977_v11 = vsel %vm9764_vm10, %v9631_v31, %v1973_v1  ;;  %v3355_v12 = vmax.f32 %v3271_v63, 0.0  ;;  %v11246_v1 = vld [vmem:[#allocation23_spill] sm:$0xff]  ;;  %v2808_v63 = vld [vmem:[%s10612_s2 + $0x290] sm:$0xff]  ;;  %vm2105_vm10 = vweird.f32 %v9771_v0  ;;  %v5128_v54 = vld [vmem:[%s9366_s28 + $0xd8] sm:$0xf0] }
 0x36c   : > { %v2205_v31 = vmul.f32 %v1977_v11, %v1197_v28  ;;  %v2699_v21 = vmul.f32 %v9726_v47, %v11246_v1  ;;  %v2100_v47 = vmul.f32 %v9771_v0, %v2099_v15  ;;  %vm2106_vm12 = vmor %vm2104_vm11, %vm2105_vm10 }
 0x36e   : > { %2634 = vperm.xlu0 %5707, %v2220_v49   ;;  %v2133_v49 = vmul.f32 %v9687_v3, %v2132_v2  ;;  %4262 = vmatmul.bf16.gmra.mxu0 %v5103_v59  ;;  %v2101_v28 = vmul.f32 0.5, %v2100_v47  ;;  %v2809_v47 = vld [vmem:[%s10612_s2 + $0x298] sm:$0xff] }
 0x36f   : > { %3057 = vperm.xlu2 %5709, %v2775_v23   ;;  %3152 = vperm.xlu1 %5708, %v2794_v19   ;;  %v11245_v19 = vld [vmem:[#allocation18_spill] sm:$0xff] }
 0x370   : > { %v3198_v39 = vpop.permute.xlu2 %3197  ;;  %v3193_v40 = vpop.permute.xlu0 %3192  ;;  %v2698_v44 = vmul.f32 %v9602_v62, %v11245_v19  ;;  %v1942_v62 = vsub.f32 1.5, %v1941_v42  ;;  %v11253_v42 = vld [vmem:[#allocation6_spill] sm:$0xff]  ;;  %v5582_v19 = vld [vmem:[%s9366_s28 + $0xd4] sm:$0xf0] }
 0x371   : > { %v3307_v41 = vadd.f32 %v3198_v39, %v2719_v4  ;;  %v3306_v43 = vadd.f32 %v3193_v40, %v2718_v5  ;;  %v3013_v36 = vpop.permute.xlu1 %3012  ;;  %v2204_v4 = vmul.f32 %v1967_v55, %v1196_v61  ;;  %v1213_v5 = vld [vmem:[%s10611_s1 + $0x298] sm:$0xff]  ;;  %v2792_v40 = vld [vmem:[%s10612_s2 + $0x210] sm:$0xff]  ;;  %v1953_v61 = vmul.f32 %v9699_v24, %v1952_v48 }
 0x372   : > { %v3270_v56 = vadd.f32 %v3013_v36, %v2682_v57  ;;  %v2681_v57 = vmul.f32 %v11250_v16, %v11249_v13  ;;  %v2113_v36 = vmul.f32 %v9714_v32, %v2112_v33  ;;  %v1943_v55 = vmul.f32 %v9703_v27, %v1942_v62  ;;  %v11259_v13 = vld [vmem:[#allocation19_spill] sm:$0xff] }
 0x373   : > { %v3391_v60 = vmax.f32 %v3307_v41, 0.0  ;;  %v3390_v39 = vmax.f32 %v3306_v43, 0.0  ;;  %4436 = vmatmul.bf16.gmra.mxu3 %v5395_v17  ;;  %v3286_v41 = vadd.f32 %v9684_v45, %v2698_v44  ;;  %v5104_v45 = vld [vmem:[%s9366_s28 + $0xa8] sm:$0xf0]  ;;  %v2137_v17 = vsel %vm9814_vm15, %v9687_v3, %v2133_v49  ;;  %v5651_v43 = vld [vmem:[%s9366_s28 + $0x304] sm:$0xf] }
 0x374   : > { %v3354_v50 = vmax.f32 %v3270_v56, 0.0  ;;  %v5107_v22 = vor.u32 %v5573_v20, %v5104_v45  ;;  %v2221_v2 = vmul.f32 %v2137_v17, %v1213_v5  ;;  %v2117_v38 = vsel %vm9858_vm8, %v9714_v32, %v2113_v36  ;;  %v5126_v49 = vld [vmem:[%s9366_s28 + $0xc0] sm:$0xf]  ;;  %v5579_v45 = vld [vmem:[%s9366_s28 + $0xc4] sm:$0xf]  ;;  %v2791_v36 = vld [vmem:[%s10612_s2 + $0x208] sm:$0xff] }
 0x375   : > { %v3562_v23 = vpack.c.bf16 %v3391_v60, %v3390_v39  ;;  %v3370_v3 = vmax.f32 %v3286_v41, 0.0  ;;  %v5416_v60 = vld [vmem:[%s9366_s28 + $0x318] sm:$0xf0]  ;;  %v2680_v39 = vmul.f32 %v11254_v30, %v11253_v42  ;;  %v1947_v59 = vsel %vm9864_vm9, %v9703_v27, %v1943_v55  ;;  %v2806_v20 = vld [vmem:[%s10612_s2 + $0x280] sm:$0xff]  ;;  %v5657_v5 = vld [vmem:[%s9366_s28 + $0x334] sm:$0xf] }
 0x376   : > { %3147 = vperm.xlu0 %5707, %v2793_v29   ;;  %v3544_v46 = vpack.c.bf16 %v3355_v12, %v3354_v50  ;;  %4376 = vmatmul.bf16.gmra.mxu1 %v5107_v22  ;;  %v5419_v29 = vor.u32 %v5651_v43, %v5416_v60  ;;  %v1957_v14 = vsel %vm9848_vm5, %v9699_v24, %v1953_v61  ;;  %v5440_v17 = vld [vmem:[%s9366_s28 + $0x348] sm:$0xf0]  ;;  %v5150_v61 = vld [vmem:[%s9366_s28 + $0xf0] sm:$0xf]  ;;  %v5588_v55 = vld [vmem:[%s9366_s28 + $0x104] sm:$0xf0] }
 0x377   : > { %2554 = vperm.xlu2 %5709, %v2204_v4   ;;  %2559 = vperm.xlu1 %5708, %v2205_v31   ;;  %v2102_v31 = vsub.f32 1.5, %v2101_v28  ;;  %v2219_v44 = vmul.f32 %v2117_v38, %v1211_v6  ;;  %v2203_v41 = vmul.f32 %v1957_v14, %v1195_v53  ;;  %v5151_v28 = vor.u32 %v5588_v55, %v5150_v61  ;;  %v11261_v42 = vld [vmem:[#allocation36_spill] sm:$0xff]  ;;  %v11263_v38 = vld [vmem:[#allocation15_spill] sm:$0xff]  ;;  %v11269_v61 = vld [vmem:[#allocation37_spill] sm:$0xff] }
 0x378   : > { %v9779_v8 = vpop.permute.xlu2 %2594  ;;  %v9810_v37 = vpop.permute.xlu0 %2499  ;;  %4470 = vmatpush.bf16.msrb.mxu2 %v3544_v46  ;;  %4696 = vmatpush.bf16.msrb.mxu0 %v3562_v23  ;;  %v1194_v23 = vld [vmem:[%s10611_s1 + $0x200] sm:$0xff]  ;;  %v5438_v46 = vld [vmem:[%s9366_s28 + $0x330] sm:$0xf] }
 0x379   : > { %v3098_v10 = vpop.permute.xlu1 %3097  ;;  %v2202_v48 = vmul.f32 %v1947_v59, %v1194_v23  ;;  %v2103_v27 = vmul.f32 %v9771_v0, %v2102_v31  ;;  %v2697_v16 = vmul.f32 %v9810_v37, %v11259_v13  ;;  %v2790_v37 = vld [vmem:[%s10612_s2 + $0x200] sm:$0xff]  ;;  %v2716_v30 = vmul.f32 %v9779_v8, %v11261_v42  ;;  %v2807_v31 = vld [vmem:[%s10612_s2 + $0x288] sm:$0xff]  ;;  %v5585_v23 = vld [vmem:[%s9366_s28 + $0xf4] sm:$0xf] }
 0x37a   : > { %v3287_v18 = vadd.f32 %v3098_v10, %v2699_v21  ;;  %v5127_v21 = vor.u32 %v5582_v19, %v5126_v49  ;;  %v1210_v10 = vld [vmem:[%s10611_s1 + $0x280] sm:$0xff]  ;;  %v5152_v59 = vld [vmem:[%s9366_s28 + $0x108] sm:$0xf0]  ;;  %v5464_v49 = vld [vmem:[%s9366_s28 + $0x378] sm:$0xf0] }
 0x37b   : > { %4327 = vmatmul.bf16.gmra.mxu2 %v5415_v25  ;;  %v5660_v25 = vld [vmem:[%s9366_s28 + $0x344] sm:$0xf0]  ;;  %v5155_v14 = vor.u32 %v5585_v23, %v5152_v59 }
 0x37c   : > { %v3371_v26 = vmax.f32 %v3287_v18, 0.0  ;;  %v5439_v24 = vor.u32 %v5660_v25, %v5438_v46  ;;  %v5131_v18 = vor.u32 %v5579_v45, %v5128_v54  ;;  %v11264_v46 = vld [vmem:[#allocation16_spill] sm:$0xff]  ;;  %v5672_v45 = vld [vmem:[%s9366_s28 + $0x3a4] sm:$0xf0] }
 0x37d   : > { %v11265_v54 = vld [vmem:[#allocation8_spill] sm:$0xff] }
 0x37e   : > { %3222 = vperm.xlu0 %5707, %v2808_v63   ;;  %v3552_v11 = vpack.c.bf16 %v3371_v26, %v3370_v3  ;;  %4267 = vmatmul.bf16.gmra.mxu0 %v5127_v21 }
 0x37f   : > { %2639 = vperm.xlu2 %5709, %v2221_v2   ;;  %3142 = vperm.xlu1 %5708, %v2792_v40  }
 0x380   : > { %v3008_v35 = vpop.permute.xlu2 %3007  ;;  %v3003_v34 = vpop.permute.xlu0 %3002  ;;  %4584 = vmatpush.bf16.msrb.mxu3 %v3552_v11  ;;  %v5462_v11 = vld [vmem:[%s9366_s28 + $0x360] sm:$0xf] }
 0x381   : > { %v3269_v56 = vadd.f32 %v3008_v35, %v2681_v57  ;;  %v3268_v12 = vadd.f32 %v3003_v34, %v2680_v39  ;;  %v2495_v7 = vpop.permute.xlu1 %2494  ;;  %v2107_v35 = vsel %vm2106_vm12, %v9771_v0, %v2103_v27  ;;  %v5443_v0 = vor.u32 %v5657_v5, %v5440_v17  ;;  %v11260_v57 = vld [vmem:[#allocation20_spill] sm:$0xff]  ;;  %v11262_v34 = vld [vmem:[#allocation41_spill] sm:$0xff]  ;;  %v11267_v17 = vld [vmem:[#allocation7_spill] sm:$0xff] }
 0x382   : > { %v2218_v22 = vmul.f32 %v2107_v35, %v1210_v10  ;;  %v2696_v63 = vmul.f32 %v2495_v7, %v11260_v57  ;;  %v5486_v10 = vld [vmem:[%s9366_s28 + $0x390] sm:$0xf] }
 0x383   : > { %v3353_v50 = vmax.f32 %v3269_v56, 0.0  ;;  %v3352_v32 = vmax.f32 %v3268_v12, 0.0  ;;  %4441 = vmatmul.bf16.gmra.mxu3 %v5419_v29  ;;  %v5463_v29 = vor.u32 %v5666_v51, %v5462_v11  ;;  %v5487_v5 = vor.u32 %v5672_v45, %v5486_v10  ;;  %v11270_v51 = vld [vmem:[#allocation38_spill] sm:$0xff] }
 0x385   : > { %v3543_v1 = vpack.c.bf16 %v3353_v50, %v3352_v32  ;;  %v5663_v32 = vld [vmem:[%s9366_s28 + $0x364] sm:$0xf] }
 0x386   : > { %2629 = vperm.xlu0 %5707, %v2219_v44   ;;  %4381 = vmatmul.bf16.gmra.mxu1 %v5131_v18 }
 0x387   : > { %2544 = vperm.xlu2 %5709, %v2202_v48   ;;  %2549 = vperm.xlu1 %5708, %v2203_v41   ;;  %v5467_v48 = vor.u32 %v5663_v32, %v5464_v49 }
 0x388   : > { %v9874_v4 = vpop.permute.xlu2 %3182  ;;  %v3088_v62 = vpop.permute.xlu0 %3087  ;;  %4471 = vmatpush.bf16.msrb.mxu2 %v3543_v1 }
 0x389   : > { %v2600_v52 = vpop.permute.xlu1 %2599  ;;  %v3285_v40 = vadd.f32 %v3088_v62, %v2697_v16  ;;  %v3304_v15 = vadd.f32 %v9874_v4, %v2716_v30 }
 0x38a   : > { %v2717_v9 = vmul.f32 %v2600_v52, %v11262_v34  ;;  %v5174_v52 = vld [vmem:[%s9366_s28 + $0x120] sm:$0xf] }
 0x38b   : > { %4332 = vmatmul.bf16.gmra.mxu2 %v5439_v24  ;;  %v3369_v2 = vmax.f32 %v3285_v40, 0.0  ;;  %v3388_v4 = vmax.f32 %v3304_v15, 0.0  ;;  %v5591_v40 = vld [vmem:[%s9366_s28 + $0x124] sm:$0xf] }
 0x38e   : > { %3212 = vperm.xlu0 %5707, %v2806_v20   ;;  %4272 = vmatmul.bf16.gmra.mxu0 %v5151_v28 }
 0x38f   : > { %3227 = vperm.xlu2 %5709, %v2809_v47   ;;  %2624 = vperm.xlu1 %5708, %v2218_v22   ;;  %v11266_v47 = vld [vmem:[#allocation114_spill] sm:$0xff] }
 0x390   : > { %v2490_v33 = vpop.permute.xlu2 %2489  ;;  %v2485_v3 = vpop.permute.xlu0 %2484  ;;  %v2678_v18 = vmul.f32 %v11266_v47, %v11265_v54  ;;  %v11268_v22 = vld [vmem:[#allocation110_spill] sm:$0xff]  ;;  %v11275_v54 = vld [vmem:[#allocation57_spill] sm:$0xff]  ;;  %v11276_v47 = vld [vmem:[#allocation108_spill] sm:$0xff] }
 0x391   : > { %v3083_v26 = vpop.permute.xlu1 %3082  ;;  %v2695_v8 = vmul.f32 %v2490_v33, %v11263_v38  ;;  %v2694_v25 = vmul.f32 %v2485_v3, %v11264_v46  ;;  %v5594_v33 = vld [vmem:[%s9366_s28 + $0x134] sm:$0xf0]  ;;  %v2679_v13 = vmul.f32 %v11268_v22, %v11267_v17  ;;  %v5176_v3 = vld [vmem:[%s9366_s28 + $0x138] sm:$0xf0]  ;;  %v5597_v46 = vld [vmem:[%s9366_s28 + $0x154] sm:$0xf] }
 0x392   : > { %v3284_v60 = vadd.f32 %v3083_v26, %v2696_v63  ;;  %v5175_v20 = vor.u32 %v5594_v33, %v5174_v52  ;;  %v5678_v38 = vld [vmem:[%s9366_s28 + $0x3d4] sm:$0xf0] }
 0x393   : > { %4446 = vmatmul.bf16.gmra.mxu3 %v5443_v0 }
 0x394   : > { %v3368_v56 = vmax.f32 %v3284_v60, 0.0  ;;  %v5179_v60 = vor.u32 %v5591_v40, %v5176_v3 }
 0x396   : > { %v3551_v39 = vpack.c.bf16 %v3369_v2, %v3368_v56  ;;  %4386 = vmatmul.bf16.gmra.mxu1 %v5155_v14  ;;  %v5669_v2 = vld [vmem:[%s9366_s28 + $0x394] sm:$0xf]  ;;  %v5488_v56 = vld [vmem:[%s9366_s28 + $0x3a8] sm:$0xf0] }
 0x397   : > { %3132 = vperm.xlu2 %5709, %v2790_v37   ;;  %3137 = vperm.xlu1 %5708, %v2791_v36   ;;  %v5491_v11 = vor.u32 %v5669_v2, %v5488_v56  ;;  %v11277_v2 = vld [vmem:[#allocation12_spill] sm:$0xff] }
 0x398   : > { %v2993_v43 = vpop.permute.xlu2 %2992  ;;  %v2590_v12 = vpop.permute.xlu0 %2589  ;;  %4585 = vmatpush.bf16.msrb.mxu3 %v3551_v39 }
 0x399   : > { %v3188_v50 = vpop.permute.xlu1 %3187  ;;  %v3266_v16 = vadd.f32 %v2993_v43, %v2678_v18  ;;  %v2715_v55 = vmul.f32 %v2590_v12, %v11269_v61  ;;  %v5510_v12 = vld [vmem:[%s9366_s28 + $0x3c0] sm:$0xf]  ;;  %v2676_v18 = vmul.f32 %v11276_v47, %v11275_v54  ;;  %v11284_v54 = vld [vmem:[#allocation3_spill] sm:$0xff] }
 0x39a   : > { %v3305_v6 = vadd.f32 %v3188_v50, %v2717_v9  ;;  %v5198_v9 = vld [vmem:[%s9366_s28 + $0x150] sm:$0xf]  ;;  %v5600_v50 = vld [vmem:[%s9366_s28 + $0x164] sm:$0xf0]  ;;  %v11285_v47 = vld [vmem:[#allocation66_spill] sm:$0xff] }
 0x39b   : > { %4337 = vmatmul.bf16.gmra.mxu2 %v5463_v29  ;;  %v3350_v37 = vmax.f32 %v3266_v16, 0.0 }
 0x39c   : > { %v3389_v53 = vmax.f32 %v3305_v6, 0.0 }
 0x39e   : > { %v3561_v44 = vpack.c.bf16 %v3389_v53, %v3388_v4  ;;  %4277 = vmatmul.bf16.gmra.mxu0 %v5175_v20  ;;  %v5511_v53 = vor.u32 %v5678_v38, %v5510_v12  ;;  %v11281_v12 = vld [vmem:[#allocation121_spill] sm:$0xff] }
 0x39f   : > { %3217 = vperm.xlu2 %5709, %v2807_v31  }
 0x3a0   : > { %v3078_v7 = vpop.permute.xlu2 %3077  ;;  %v3073_v41 = vpop.permute.xlu0 %3072  ;;  %4697 = vmatpush.bf16.msrb.mxu0 %v3561_v44 }
 0x3a1   : > { %v3283_v19 = vadd.f32 %v3078_v7, %v2695_v8  ;;  %v3282_v1 = vadd.f32 %v3073_v41, %v2694_v25  ;;  %v2585_v27 = vpop.permute.xlu1 %2584  ;;  %v5199_v8 = vor.u32 %v5600_v50, %v5198_v9  ;;  %v5200_v25 = vld [vmem:[%s9366_s28 + $0x168] sm:$0xf0]  ;;  %v5675_v41 = vld [vmem:[%s9366_s28 + $0x3c4] sm:$0xf] }
 0x3a2   : > { %v2714_v42 = vmul.f32 %v2585_v27, %v11270_v51  ;;  %v11272_v27 = vld [vmem:[#allocation56_spill] sm:$0xff] }
 0x3a3   : > { %v3367_v21 = vmax.f32 %v3283_v19, 0.0  ;;  %v3366_v62 = vmax.f32 %v3282_v1, 0.0  ;;  %4451 = vmatmul.bf16.gmra.mxu3 %v5467_v48  ;;  %v11271_v19 = vld [vmem:[#allocation33_spill] sm:$0xff]  ;;  %v5203_v48 = vor.u32 %v5597_v46, %v5200_v25 }
 0x3a4   : > { %v5512_v1 = vld [vmem:[%s9366_s28 + $0x3d8] sm:$0xf0] }
 0x3a5   : > { %v3550_v35 = vpack.c.bf16 %v3367_v21, %v3366_v62  ;;  %v11273_v62 = vld [vmem:[#allocation107_spill] sm:$0xff]  ;;  %v5515_v45 = vor.u32 %v5675_v41, %v5512_v1 }
 0x3a6   : > { %4391 = vmatmul.bf16.gmra.mxu1 %v5179_v60  ;;  %v2677_v52 = vmul.f32 %v11273_v62, %v11272_v27  ;;  %v5606_v60 = vld [vmem:[%s9366_s28 + $0x194] sm:$0xf0]  ;;  %v5556_v62 = vld [vmem:[%s9366_s28 + $0xc] sm:$0xf] }
 0x3a7   : > { %4586 = vmatpush.bf16.msrb.mxu3 %v3550_v35  ;;  %v11274_v35 = vld [vmem:[#allocation34_spill] sm:$0xff] }
 0x3a8   : > { %v9935_v24 = vpop.permute.xlu2 %2474  ;;  %v3178_v0 = vpop.permute.xlu0 %3177 }
 0x3a9   : > { %v2998_v57 = vpop.permute.xlu1 %2997  ;;  %v3303_v30 = vadd.f32 %v3178_v0, %v2715_v55  ;;  %v2692_v56 = vmul.f32 %v9935_v24, %v11277_v2  ;;  %v5248_v2 = vld [vmem:[%s9366_s28 + $0x1c8] sm:$0xf0] }
 0x3aa   : > { %v3267_v26 = vadd.f32 %v2998_v57, %v2679_v13 }
 0x3ab   : > { %4342 = vmatmul.bf16.gmra.mxu2 %v5487_v5  ;;  %v3387_v7 = vmax.f32 %v3303_v30, 0.0 }
 0x3ac   : > { %v3351_v36 = vmax.f32 %v3267_v26, 0.0  ;;  %v5222_v26 = vld [vmem:[%s9366_s28 + $0x180] sm:$0xf] }
 0x3ae   : > { %v3542_v28 = vpack.c.bf16 %v3351_v36, %v3350_v37  ;;  %v4303_v43 = vpop.f32.mrf.mxu2  ;;  %4282 = vmatmul.bf16.gmra.mxu0 %v5199_v8  ;;  %v5223_v36 = vor.u32 %v5606_v60, %v5222_v26 }
 0x3b0   : > { %v2580_v63 = vpop.permute.xlu2 %2579  ;;  %v2575_v39 = vpop.permute.xlu0 %2574  ;;  %4472 = vmatpush.bf16.msrb.mxu2 %v3542_v28 }
 0x3b1   : > { %v3173_v29 = vpop.permute.xlu1 %3172  ;;  %v2713_v44 = vmul.f32 %v2580_v63, %v11271_v19  ;;  %v2712_v20 = vmul.f32 %v2575_v39, %v11274_v35  ;;  %v11283_v19 = vld [vmem:[#allocation14_spill] sm:$0xff]  ;;  %v5246_v35 = vld [vmem:[%s9366_s28 + $0x1b0] sm:$0xf] }
 0x3b2   : > { %v3302_v34 = vadd.f32 %v3173_v29, %v2714_v42  ;;  %v11279_v42 = vld [vmem:[#allocation17_spill] sm:$0xff]  ;;  %v5603_v29 = vld [vmem:[%s9366_s28 + $0x184] sm:$0xf] }
 0x3b3   : > { %4456 = vmatmul.bf16.gmra.mxu3 %v5491_v11 }
 0x3b4   : > { %v3386_v6 = vmax.f32 %v3302_v34, 0.0  ;;  %v5224_v34 = vld [vmem:[%s9366_s28 + $0x198] sm:$0xf0] }
 0x3b5   : > { %v5227_v24 = vor.u32 %v5603_v29, %v5224_v34  ;;  %v11290_v34 = vld [vmem:[#allocation35_spill] sm:$0xff] }
 0x3b6   : > { %v3560_v31 = vpack.c.bf16 %v3387_v7, %v3386_v6  ;;  %v4417_v23 = vpop.f32.mrf.mxu3  ;;  %v9955_v59 = vpop.f32.mrf.mxu2  ;;  %4396 = vmatmul.bf16.gmra.mxu1 %v5203_v48  ;;  %v11280_v6 = vld [vmem:[#allocation13_spill] sm:$0xff] }
 0x3b7   : > { %v9957_v4 = vadd.f32 %v4417_v23, %v4303_v43  ;;  %v2691_v38 = vmul.f32 %v11281_v12, %v11280_v6  ;;  %v11292_v12 = vld [vmem:[#allocation30_spill] sm:$0xff] }
 0x3b8   : > { %v3063_v15 = vpop.permute.xlu2 %3062  ;;  %v2988_v14 = vpop.permute.xlu0 %2987  ;;  %4698 = vmatpush.bf16.msrb.mxu0 %v3560_v31 }
 0x3b9   : > { %v2480_v32 = vpop.permute.xlu1 %2479  ;;  %v3265_v5 = vadd.f32 %v2988_v14, %v2677_v52  ;;  %v4248_v11 = vpop.f32.mrf.mxu0  ;;  %v3280_v51 = vadd.f32 %v3063_v15, %v2692_v56  ;;  %v5040_v52 = vld [vmem:[%s9366_s28 + $0x20] sm:$0xf0] }
 0x3ba   : > { %v2693_v30 = vmul.f32 %v2480_v32, %v11279_v42  ;;  %v5038_v42 = vld [vmem:[%s9366_s28 + $0x8] sm:$0xf] }
 0x3bb   : > { %4347 = vmatmul.bf16.gmra.mxu2 %v5511_v53  ;;  %v3349_v40 = vmax.f32 %v3265_v5, 0.0  ;;  %v3364_v31 = vmax.f32 %v3280_v51, 0.0  ;;  %v5043_v5 = vor.u32 %v5556_v62, %v5040_v52  ;;  %v5270_v62 = vld [vmem:[%s9366_s28 + $0x1e0] sm:$0xf]  ;;  %v5618_v52 = vld [vmem:[%s9366_s28 + $0x1f4] sm:$0xf0] }
 0x3be   : > { %v9966_v33 = vpop.f32.mrf.mxu3  ;;  %v4308_v10 = vpop.f32.mrf.mxu2  ;;  %4287 = vmatmul.bf16.gmra.mxu0 %v5223_v36  ;;  %v5609_v36 = vld [vmem:[%s9366_s28 + $0x1b4] sm:$0xf] }
 0x3c0   : > { %v3168_v49 = vpop.permute.xlu2 %3167  ;;  %v3163_v17 = vpop.permute.xlu0 %3162 }
 0x3c1   : > { %v3301_v21 = vadd.f32 %v3168_v49, %v2713_v44  ;;  %v3300_v22 = vadd.f32 %v3163_v17, %v2712_v20  ;;  %v2983_v16 = vpop.permute.xlu1 %2982  ;;  %v2690_v44 = vmul.f32 %v8934_v58, %v11283_v19  ;;  %v9990_v46 = vpop.f32.mrf.mxu0  ;;  %v5612_v20 = vld [vmem:[%s9366_s28 + $0x1c4] sm:$0xf0] }
 0x3c2   : > { %v3264_v57 = vadd.f32 %v2983_v16, %v2676_v18  ;;  %v5247_v58 = vor.u32 %v5612_v20, %v5246_v35  ;;  %v2674_v18 = vmul.f32 %v11285_v47, %v11284_v54  ;;  %v5272_v54 = vld [vmem:[%s9366_s28 + $0x1f8] sm:$0xf0] }
 0x3c3   : > { %v3385_v13 = vmax.f32 %v3301_v21, 0.0  ;;  %v3384_v63 = vmax.f32 %v3300_v22, 0.0  ;;  %4461 = vmatmul.bf16.gmra.mxu3 %v5515_v45  ;;  %v4362_v8 = vpop.f32.mrf.mxu1 }
 0x3c4   : > { %v3348_v3 = vmax.f32 %v3264_v57, 0.0  ;;  %v9984_v53 = vadd.f32 %v4362_v8, %v4248_v11  ;;  %v11288_v57 = vld [vmem:[#allocation59_spill] sm:$0xff] }
 0x3c5   : > { %v3559_v37 = vpack.c.bf16 %v3385_v13, %v3384_v63  ;;  %v11289_v63 = vld [vmem:[#allocation111_spill] sm:$0xff] }
 0x3c6   : > { %v3541_v61 = vpack.c.bf16 %v3349_v40, %v3348_v3  ;;  %v4422_v55 = vpop.f32.mrf.mxu3  ;;  %v9975_v28 = vpop.f32.mrf.mxu2  ;;  %4401 = vmatmul.bf16.gmra.mxu1 %v5227_v24  ;;  %v2675_v40 = vmul.f32 %v11289_v63, %v11288_v57 }
 0x3c7   : > { %11278 = vst [vmem:[#allocation4_spill] sm:$0xff] %v9975_v28  ;;  %4699 = vmatpush.bf16.msrb.mxu0 %v3559_v37  ;;  %v9977_v43 = vadd.f32 %v4422_v55, %v4308_v10  ;;  %v5614_v28 = vld [vmem:[%s9366_s28 + $0x1d4] sm:$0xf0] }
 0x3c8   : > { %v2973_v0 = vpop.permute.xlu2 %2972  ;;  %v2570_v39 = vpop.permute.xlu0 %2569  ;;  %4473 = vmatpush.bf16.msrb.mxu2 %v3541_v61  ;;  %v5251_v61 = vor.u32 %v5609_v36, %v5248_v2 }
 0x3c9   : > { %v3068_v9 = vpop.permute.xlu1 %3067  ;;  %v3262_v3 = vadd.f32 %v2973_v0, %v2674_v18 }
 0x3ca   : > { %v3281_v7 = vadd.f32 %v3068_v9, %v2693_v30  ;;  %v4253_v16 = vpop.f32.mrf.mxu0  ;;  %v5559_v30 = vld [vmem:[%s9366_s28 + $0x1c] sm:$0xf0]  ;;  %v2711_v9 = vmul.f32 %v2570_v39, %v11290_v34 }
 0x3cb   : > { %v9996_v10 = vpop.f32.mrf.mxu1  ;;  %v3346_v11 = vmax.f32 %v3262_v3, 0.0  ;;  %v5039_v24 = vor.u32 %v5559_v30, %v5038_v42 }
 0x3cc   : > { %v3365_v23 = vmax.f32 %v3281_v7, 0.0 }
 0x3ce   : > { %v3549_v14 = vpack.c.bf16 %v3365_v23, %v3364_v31  ;;  %v9986_v32 = vpop.f32.mrf.mxu3  ;;  %v4313_v49 = vpop.f32.mrf.mxu2  ;;  %4292 = vmatmul.bf16.gmra.mxu0 %v5247_v58  ;;  %v5615_v58 = vld [vmem:[%s9366_s28 + $0x1e4] sm:$0xf] }
 0x3cf   : > { %11282 = vst [vmem:[#allocation5_spill] sm:$0xff] %v9986_v32 }
 0x3d0   : > { %v3058_v50 = vpop.permute.xlu2 %3057  ;;  %v3053_v25 = vpop.permute.xlu0 %3052  ;;  %4587 = vmatpush.bf16.msrb.mxu3 %v3549_v14  ;;  %v5562_v14 = vld [vmem:[%s9366_s28 + $0x3c] sm:$0xf] }
 0x3d1   : > { %v3279_v15 = vadd.f32 %v3058_v50, %v2691_v38  ;;  %v3278_v48 = vadd.f32 %v3053_v25, %v2690_v44  ;;  %v2565_v1 = vpop.permute.xlu1 %2564 }
 0x3d2   : > { %v10017_v6 = vpop.f32.mrf.mxu0  ;;  %v2710_v38 = vmul.f32 %v2565_v1, %v11292_v12 }
 0x3d3   : > { %v3363_v41 = vmax.f32 %v3279_v15, 0.0  ;;  %v3362_v27 = vmax.f32 %v3278_v48, 0.0  ;;  %v4367_v55 = vpop.f32.mrf.mxu1 }
 0x3d4   : > { %v10012_v29 = vadd.f32 %v4367_v55, %v4253_v16  ;;  %v11295_v16 = vld [vmem:[#allocation46_spill] sm:$0xff]  ;;  %v11298_v55 = vld [vmem:[#allocation47_spill] sm:$0xff] }
 0x3d5   : > { %v3548_v45 = vpack.c.bf16 %v3363_v41, %v3362_v27 }
 0x3d6   : > { %v4427_v17 = vpop.f32.mrf.mxu3  ;;  %v10002_v22 = vpop.f32.mrf.mxu2  ;;  %4406 = vmatmul.bf16.gmra.mxu1 %v5251_v61 }
 0x3d7   : > { %11286 = vst [vmem:[#allocation83_spill] sm:$0xff] %v10002_v22  ;;  %4588 = vmatpush.bf16.msrb.mxu3 %v3548_v45  ;;  %v10004_v13 = vadd.f32 %v4427_v17, %v4313_v49  ;;  %v5064_v49 = vld [vmem:[%s9366_s28 + $0x50] sm:$0xf0]  ;;  %v5271_v45 = vor.u32 %v5618_v52, %v5270_v62  ;;  %v5275_v17 = vor.u32 %v5615_v58, %v5272_v54  ;;  %v5086_v58 = vld [vmem:[%s9366_s28 + $0x68] sm:$0xf] }
 0x3d8   : > { %v9992_v21 = vpop.permute.xlu2 %2554  ;;  %v3158_v26 = vpop.permute.xlu0 %3157  ;;  %v5067_v41 = vor.u32 %v5562_v14, %v5064_v49  ;;  %v5571_v54 = vld [vmem:[%s9366_s28 + $0x7c] sm:$0xf0] }
 0x3d9   : > { %11287 = vst [vmem:[#allocation88_spill] sm:$0xff] %v10004_v13  ;;  %v2978_v60 = vpop.permute.xlu1 %2977  ;;  %v3299_v8 = vadd.f32 %v3158_v26, %v2711_v9  ;;  %v5062_v26 = vld [vmem:[%s9366_s28 + $0x38] sm:$0xf] }
 0x3da   : > { %v3263_v56 = vadd.f32 %v2978_v60, %v2675_v40  ;;  %4589 = vmatmul.bf16.vlgmr.msrb.gmra.mxu3 %v5043_v5  ;;  %v11296_v40 = vld [vmem:[#allocation31_spill] sm:$0xff]  ;;  %v5565_v60 = vld [vmem:[%s9366_s28 + $0x4c] sm:$0xf0] }
 0x3db   : > { %v10024_v19 = vpop.f32.mrf.mxu1  ;;  %v3383_v44 = vmax.f32 %v3299_v8, 0.0  ;;  %v4258_v20 = vpop.f32.mrf.mxu0  ;;  %v5568_v8 = vld [vmem:[%s9366_s28 + $0x6c] sm:$0xf] }
 0x3dc   : > { %v3347_v51 = vmax.f32 %v3263_v56, 0.0 }
 0x3de   : > { %v3540_v0 = vpack.c.bf16 %v3347_v51, %v3346_v11  ;;  %v10015_v50 = vpop.f32.mrf.mxu3  ;;  %v4318_v7 = vpop.f32.mrf.mxu2  ;;  %4297 = vmatmul.bf16.gmra.mxu0 %v5271_v45  ;;  %v5063_v51 = vor.u32 %v5565_v60, %v5062_v26  ;;  %v11304_v60 = vld [vmem:[#allocation42_spill] sm:$0xff] }
 0x3df   : > { %11291 = vst [vmem:[#allocation84_spill] sm:$0xff] %v10015_v50  ;;  %v5608_v50 = vld [vmem:[%s9366_s28 + $0x1a4] sm:$0xf0] }
 0x3e0   : > { %v2640_v37 = vpop.permute.xlu2 %2639  ;;  %v2635_v31 = vpop.permute.xlu0 %2634  ;;  %4474 = vmatpush.bf16.msrb.mxu2 %v3540_v0 }
 0x3e1   : > { %v3153_v23 = vpop.permute.xlu1 %3152  ;;  %v2725_v57 = vmul.f32 %v2640_v37, %v11295_v16  ;;  %v2724_v11 = vmul.f32 %v2635_v31, %v11298_v55  ;;  %v11299_v37 = vld [vmem:[#allocation32_spill] sm:$0xff]  ;;  %v5087_v16 = vor.u32 %v5571_v54, %v5086_v58  ;;  %v5574_v55 = vld [vmem:[%s9366_s28 + $0x9c] sm:$0xf] }
 0x3e2   : > { %v3298_v39 = vadd.f32 %v3153_v23, %v2710_v38  ;;  %v2708_v30 = vmul.f32 %v9992_v21, %v11299_v37  ;;  %v5088_v23 = vld [vmem:[%s9366_s28 + $0x80] sm:$0xf0] }
 0x3e3   : > { %4475 = vmatmul.bf16.vlgmr.msrb.gmra.mxu2 %v5039_v24  ;;  %v4372_v63 = vpop.f32.mrf.mxu1  ;;  %v10043_v42 = vpop.f32.mrf.mxu0  ;;  %v5091_v21 = vor.u32 %v5568_v8, %v5088_v23 }
 0x3e4   : > { %v3382_v25 = vmax.f32 %v3298_v39, 0.0  ;;  %v10038_v36 = vadd.f32 %v4372_v63, %v4258_v20  ;;  %v11303_v63 = vld [vmem:[#allocation48_spill] sm:$0xff] }
 0x3e6   : > { %v3558_v48 = vpack.c.bf16 %v3383_v44, %v3382_v25  ;;  %v4432_v1 = vpop.f32.mrf.mxu3  ;;  %v10026_v27 = vpop.f32.mrf.mxu2  ;;  %4411 = vmatmul.bf16.gmra.mxu1 %v5275_v17 }
 0x3e7   : > { %11293 = vst [vmem:[#allocation80_spill] sm:$0xff] %v10026_v27  ;;  %v10030_v35 = vadd.f32 %v4432_v1, %v4318_v7  ;;  %v5240_v27 = vld [vmem:[%s9366_s28 + $0x1a8] sm:$0xf0] }
 0x3e8   : > { %v10020_v15 = vpop.permute.xlu2 %2544  ;;  %v3148_v47 = vpop.permute.xlu0 %3147  ;;  %4700 = vmatpush.bf16.msrb.mxu0 %v3558_v48 }
 0x3e9   : > { %11294 = vst [vmem:[#allocation85_spill] sm:$0xff] %v10030_v35  ;;  %v2560_v18 = vpop.permute.xlu1 %2559  ;;  %v5238_v35 = vld [vmem:[%s9366_s28 + $0x190] sm:$0xf] }
 0x3ea   : > { %4594 = vmatmul.bf16.gmra.mxu3 %v5067_v41  ;;  %v2709_v3 = vmul.f32 %v2560_v18, %v11296_v40 }
 0x3eb   : > { %v10049_v39 = vpop.f32.mrf.mxu1  ;;  %v4263_v62 = vpop.f32.mrf.mxu0 }
 0x3ec   : > { %v3297_v34 = vadd.f32 %v3148_v47, %v2709_v3 }
 0x3ee   : > { %v10040_v56 = vpop.f32.mrf.mxu3  ;;  %v4323_v61 = vpop.f32.mrf.mxu2  ;;  %v3381_v14 = vmax.f32 %v3297_v34, 0.0 }
 0x3ef   : > { %11297 = vst [vmem:[#allocation81_spill] sm:$0xff] %v10040_v56  ;;  %v5605_v56 = vld [vmem:[%s9366_s28 + $0x194] sm:$0xf] }
 0x3f0   : > { %v3228_v5 = vpop.permute.xlu2 %3227  ;;  %v3223_v9 = vpop.permute.xlu0 %3222 }
 0x3f1   : > { %v3313_v2 = vadd.f32 %v3228_v5, %v2725_v57  ;;  %v3312_v0 = vadd.f32 %v3223_v9, %v2724_v11  ;;  %v3143_v24 = vpop.permute.xlu1 %3142  ;;  %v5112_v11 = vld [vmem:[%s9366_s28 + $0xb0] sm:$0xf0] }
 0x3f2   : > { %v3296_v12 = vadd.f32 %v3143_v24, %v2708_v30  ;;  %v11305_v30 = vld [vmem:[#allocation28_spill] sm:$0xff] }
 0x3f3   : > { %v3397_v7 = vmax.f32 %v3313_v2, 0.0  ;;  %v3396_v38 = vmax.f32 %v3312_v0, 0.0  ;;  %4480 = vmatmul.bf16.gmra.mxu2 %v5063_v51  ;;  %v4377_v45 = vpop.f32.mrf.mxu1  ;;  %v10061_v57 = vpop.f32.mrf.mxu0  ;;  %v2706_v34 = vmul.f32 %v10020_v15, %v11305_v30  ;;  %v5557_v24 = vld [vmem:[%s9366_s28 + $0x14] sm:$0xf]  ;;  %v5072_v30 = vld [vmem:[%s9366_s28 + $0x58] sm:$0xf0] }
 0x3f4   : > { %v3380_v31 = vmax.f32 %v3296_v12, 0.0  ;;  %v10057_v47 = vadd.f32 %v4377_v45, %v4263_v62  ;;  %v5048_v12 = vld [vmem:[%s9366_s28 + $0x28] sm:$0xf0]  ;;  %v5577_v45 = vld [vmem:[%s9366_s28 + $0xac] sm:$0xf0] }
 0x3f5   : > { %v3565_v49 = vpack.c.bf16 %v3397_v7, %v3396_v38  ;;  %v5115_v7 = vor.u32 %v5574_v55, %v5112_v11 }
 0x3f6   : > { %v3557_v25 = vpack.c.bf16 %v3381_v14, %v3380_v31  ;;  %v4437_v48 = vpop.f32.mrf.mxu3  ;;  %v10051_v41 = vpop.f32.mrf.mxu2 }
 0x3f7   : > { %11300 = vst [vmem:[#allocation51_spill] sm:$0xff] %v10051_v41  ;;  %4815 = vmatpush.bf16.msrb.mxu1 %v3565_v49  ;;  %v10053_v1 = vadd.f32 %v4437_v48, %v4323_v61  ;;  %v11308_v49 = vld [vmem:[#allocation27_spill] sm:$0xff]  ;;  %v5051_v48 = vor.u32 %v5557_v24, %v5048_v12 }
 0x3f8   : > { %v3133_v44 = vpop.permute.xlu2 %3132  ;;  %4701 = vmatpush.bf16.msrb.mxu0 %v3557_v25  ;;  %v2630_v52 = vpop.permute.xlu0 %2629  ;;  %v5134_v12 = vld [vmem:[%s9366_s28 + $0xc8] sm:$0xf] }
 0x3f9   : > { %11301 = vst [vmem:[#allocation50_spill] sm:$0xff] %v10053_v1  ;;  %v2550_v20 = vpop.permute.xlu1 %2549  ;;  %v2723_v40 = vmul.f32 %v2630_v52, %v11303_v63  ;;  %v3294_v31 = vadd.f32 %v3133_v44, %v2706_v34  ;;  %v5110_v52 = vld [vmem:[%s9366_s28 + $0x98] sm:$0xf]  ;;  %v5278_v41 = vld [vmem:[%s9366_s28 + $0x1e8] sm:$0xf] }
 0x3fa   : > { %4599 = vmatmul.bf16.gmra.mxu3 %v5091_v21  ;;  %v2707_v25 = vmul.f32 %v2550_v20, %v11308_v49  ;;  %v5566_v49 = vld [vmem:[%s9366_s28 + $0x54] sm:$0xf0]  ;;  %v5619_v1 = vld [vmem:[%s9366_s28 + $0x1fc] sm:$0xf0] }
 0x3fb   : > { %v10067_v51 = vpop.f32.mrf.mxu1  ;;  %v4268_v14 = vpop.f32.mrf.mxu0  ;;  %v3378_v54 = vmax.f32 %v3294_v31, 0.0  ;;  %v5070_v31 = vld [vmem:[%s9366_s28 + $0x40] sm:$0xf] }
 0x3fe   : > { %v10059_v18 = vpop.f32.mrf.mxu3  ;;  %v4328_v5 = vpop.f32.mrf.mxu2 }
 0x3ff   : > { %11302 = vst [vmem:[#allocation96_spill] sm:$0xff] %v10059_v18 }
 0x400   : > { %v3218_v17 = vpop.permute.xlu2 %3217  ;;  %v3213_v61 = vpop.permute.xlu0 %3212 }
 0x401   : > { %v2625_v3 = vpop.permute.xlu1 %2624  ;;  %v3311_v26 = vadd.f32 %v3218_v17, %v2723_v40  ;;  %v5046_v17 = vld [vmem:[%s9366_s28 + $0x10] sm:$0xf] }
 0x402   : > { %v2722_v2 = vmul.f32 %v2625_v3, %v11304_v60  ;;  %v5111_v3 = vor.u32 %v5577_v45, %v5110_v52  ;;  %v5586_v45 = vld [vmem:[%s9366_s28 + $0xfc] sm:$0xf] }
 0x403   : > { %4485 = vmatmul.bf16.gmra.mxu2 %v5087_v16  ;;  %v3395_v9 = vmax.f32 %v3311_v26, 0.0  ;;  %v4382_v58 = vpop.f32.mrf.mxu1  ;;  %v5560_v16 = vld [vmem:[%s9366_s28 + $0x24] sm:$0xf0]  ;;  %v10087_v60 = vpop.f32.mrf.mxu0 }
 0x404   : > { %v3310_v37 = vadd.f32 %v3213_v61, %v2722_v2  ;;  %v10082_v44 = vadd.f32 %v4382_v58, %v4268_v14  ;;  %v5047_v26 = vor.u32 %v5560_v16, %v5046_v17  ;;  %v5580_v2 = vld [vmem:[%s9366_s28 + $0xcc] sm:$0xf]  ;;  %v5136_v61 = vld [vmem:[%s9366_s28 + $0xe0] sm:$0xf0]  ;;  %v5583_v14 = vld [vmem:[%s9366_s28 + $0xdc] sm:$0xf0] }
 0x405   : > { %v5139_v11 = vor.u32 %v5580_v2, %v5136_v61  ;;  %v5160_v58 = vld [vmem:[%s9366_s28 + $0x110] sm:$0xf0]  ;;  %v5096_v16 = vld [vmem:[%s9366_s28 + $0x88] sm:$0xf0]  ;;  %v5158_v61 = vld [vmem:[%s9366_s28 + $0xf8] sm:$0xf] }
 0x406   : > { %v3394_v0 = vmax.f32 %v3310_v37, 0.0  ;;  %v4442_v38 = vpop.f32.mrf.mxu3  ;;  %v10073_v8 = vpop.f32.mrf.mxu2  ;;  %v5563_v37 = vld [vmem:[%s9366_s28 + $0x44] sm:$0xf]  ;;  %v5569_v17 = vld [vmem:[%s9366_s28 + $0x74] sm:$0xf] }
 0x407   : > { %11306 = vst [vmem:[#allocation53_spill] sm:$0xff] %v10073_v8  ;;  %v10075_v23 = vadd.f32 %v4442_v38, %v4328_v5  ;;  %v5075_v24 = vor.u32 %v5563_v37, %v5072_v30  ;;  %v5099_v2 = vor.u32 %v5569_v17, %v5096_v16  ;;  %v5589_v37 = vld [vmem:[%s9366_s28 + $0x10c] sm:$0xf0] }
 0x408   : > { %v3564_v21 = vpack.c.bf16 %v3395_v9, %v3394_v0  ;;  %v5094_v30 = vld [vmem:[%s9366_s28 + $0x70] sm:$0xf] }
 0x409   : > { %11307 = vst [vmem:[#allocation2_spill] sm:$0xff] %v10075_v23  ;;  %v3138_v15 = vpop.permute.xlu1 %3137 }
 0x40a   : > { %v3295_v62 = vadd.f32 %v3138_v15, %v2707_v25  ;;  %4816 = vmatpush.bf16.msrb.mxu1 %v3564_v21  ;;  %4604 = vmatmul.bf16.gmra.mxu3 %v5115_v7 }
 0x40b   : > { %v10091_v55 = vpop.f32.mrf.mxu1  ;;  %v4273_v7 = vpop.f32.mrf.mxu0 }
 0x40c   : > { %v3379_v5 = vmax.f32 %v3295_v62, 0.0  ;;  %v5071_v62 = vor.u32 %v5566_v49, %v5070_v31  ;;  %v5592_v49 = vld [vmem:[%s9366_s28 + $0x12c] sm:$0xf] }
 0x40d   : > { %5532 = vmatmul.msk.bf16.vlgmr.msrb.gmra.mxu1 %vm4175_vm13, %v5051_v48  ;;  %v5135_v48 = vor.u32 %v5583_v14, %v5134_v12  ;;  %v5159_v12 = vor.u32 %v5589_v37, %v5158_v61  ;;  %v5595_v61 = vld [vmem:[%s9366_s28 + $0x13c] sm:$0xf0]  ;;  %v5578_v37 = vld [vmem:[%s9366_s28 + $0xb4] sm:$0xf0] }
 0x40e   : > { %v3556_v20 = vpack.c.bf16 %v3379_v5, %v3378_v54  ;;  %v10085_v63 = vpop.f32.mrf.mxu3  ;;  %v4333_v40 = vpop.f32.mrf.mxu2  ;;  %v5163_v5 = vor.u32 %v5586_v45, %v5160_v58  ;;  %v5575_v45 = vld [vmem:[%s9366_s28 + $0xa4] sm:$0xf]  ;;  %v5120_v58 = vld [vmem:[%s9366_s28 + $0xb8] sm:$0xf0] }
 0x40f   : > { %11309 = vst [vmem:[#allocation95_spill] sm:$0xff] %v10085_v63  ;;  %v5280_v63 = vld [vmem:[%s9366_s28 + $0x200] sm:$0xf0] }
 0x410   : > { %4702 = vmatpush.bf16.msrb.mxu0 %v3556_v20 }
 0x413   : > { %4490 = vmatmul.bf16.gmra.mxu2 %v5111_v3  ;;  %4703 = vmatmul.bf16.vlgmr.msrb.gmra.mxu0 %v5047_v26  ;;  %v4387_v38 = vpop.f32.mrf.mxu1  ;;  %v10108_v52 = vpop.f32.mrf.mxu0 }
 0x414   : > { %v10103_v25 = vadd.f32 %v4387_v38, %v4273_v7 }
 0x416   : > { %v4447_v34 = vpop.f32.mrf.mxu3  ;;  %v10095_v9 = vpop.f32.mrf.mxu2 }
 0x417   : > { %11310 = vst [vmem:[#allocation77_spill] sm:$0xff] %v10095_v9  ;;  %v10097_v0 = vadd.f32 %v4447_v34, %v4333_v40  ;;  %v5572_v34 = vld [vmem:[%s9366_s28 + $0x84] sm:$0xf0] }
 0x418   : > { %v5095_v38 = vor.u32 %v5572_v34, %v5094_v30 }
 0x419   : > { %11311 = vst [vmem:[#allocation82_spill] sm:$0xff] %v10097_v0 }
 0x41a   : > { %4609 = vmatmul.bf16.gmra.mxu3 %v5139_v11 }
 0x41b   : > { %v10112_v54 = vpop.f32.mrf.mxu1  ;;  %v4278_v3 = vpop.f32.mrf.mxu0 }
 0x41d   : > { %5533 = vmatmul.msk.bf16.gmra.mxu1 %vm4175_vm13, %v5075_v24 }
 0x41e   : > { %v10106_v21 = vpop.f32.mrf.mxu3  ;;  %v4338_v15 = vpop.f32.mrf.mxu2 }
 0x41f   : > { %11312 = vst [vmem:[#allocation52_spill] sm:$0xff] %v10106_v21  ;;  %v5192_v21 = vld [vmem:[%s9366_s28 + $0x148] sm:$0xf0] }
 0x423   : > { %4495 = vmatmul.bf16.gmra.mxu2 %v5135_v48  ;;  %4708 = vmatmul.bf16.gmra.mxu0 %v5071_v62  ;;  %v4392_v11 = vpop.f32.mrf.mxu1  ;;  %v10129_v14 = vpop.f32.mrf.mxu0 }
 0x424   : > { %v10124_v7 = vadd.f32 %v4392_v11, %v4278_v3  ;;  %v5182_v3 = vld [vmem:[%s9366_s28 + $0x128] sm:$0xf]  ;;  %v5118_v11 = vld [vmem:[%s9366_s28 + $0xa0] sm:$0xf] }
 0x426   : > { %v4452_v20 = vpop.f32.mrf.mxu3  ;;  %v10118_v26 = vpop.f32.mrf.mxu2 }
 0x427   : > { %v10116_v40 = vadd.f32 %v4452_v20, %v4338_v15  ;;  %11314 = vst [vmem:[#allocation75_spill] sm:$0xff] %v10118_v26  ;;  %v5184_v15 = vld [vmem:[%s9366_s28 + $0x140] sm:$0xf0]  ;;  %v5123_v20 = vor.u32 %v5575_v45, %v5120_v58 }
 0x428   : > { %v5187_v62 = vor.u32 %v5592_v49, %v5184_v15  ;;  %v5598_v15 = vld [vmem:[%s9366_s28 + $0x15c] sm:$0xf] }
 0x429   : > { %11313 = vst [vmem:[#allocation78_spill] sm:$0xff] %v10116_v40  ;;  %v5593_v40 = vld [vmem:[%s9366_s28 + $0x134] sm:$0xf] }
 0x42a   : > { %4614 = vmatmul.bf16.gmra.mxu3 %v5163_v5  ;;  %v5195_v9 = vor.u32 %v5593_v40, %v5192_v21 }
 0x42b   : > { %v10133_v48 = vpop.f32.mrf.mxu1  ;;  %v4283_v16 = vpop.f32.mrf.mxu0 }
 0x42d   : > { %5534 = vmatmul.msk.bf16.gmra.mxu1 %vm4175_vm13, %v5099_v2 }
 0x42e   : > { %v10127_v24 = vpop.f32.mrf.mxu3  ;;  %v4343_v31 = vpop.f32.mrf.mxu2 }
 0x42f   : > { %11315 = vst [vmem:[#allocation79_spill] sm:$0xff] %v10127_v24 }
 0x433   : > { %4500 = vmatmul.bf16.gmra.mxu2 %v5159_v12  ;;  %4713 = vmatmul.bf16.gmra.mxu0 %v5095_v38  ;;  %v4397_v2 = vpop.f32.mrf.mxu1  ;;  %v5183_v38 = vor.u32 %v5595_v61, %v5182_v3  ;;  %v10150_v49 = vpop.f32.mrf.mxu0 }
 0x434   : > { %v10145_v34 = vadd.f32 %v4397_v2, %v4283_v16  ;;  %v5144_v16 = vld [vmem:[%s9366_s28 + $0xe8] sm:$0xf0] }
 0x436   : > { %v4457_v5 = vpop.f32.mrf.mxu3  ;;  %v10143_v30 = vpop.f32.mrf.mxu2 }
 0x437   : > { %v10137_v17 = vadd.f32 %v4457_v5, %v4343_v31  ;;  %11317 = vst [vmem:[#allocation74_spill] sm:$0xff] %v10143_v30  ;;  %v5119_v31 = vor.u32 %v5578_v37, %v5118_v11  ;;  %v5581_v5 = vld [vmem:[%s9366_s28 + $0xd4] sm:$0xf]  ;;  %v5206_v11 = vld [vmem:[%s9366_s28 + $0x158] sm:$0xf] }
 0x438   : > { %v5147_v61 = vor.u32 %v5581_v5, %v5144_v16  ;;  %v5584_v30 = vld [vmem:[%s9366_s28 + $0xe4] sm:$0xf0]  ;;  %v5604_v5 = vld [vmem:[%s9366_s28 + $0x18c] sm:$0xf]  ;;  %v5232_v16 = vld [vmem:[%s9366_s28 + $0x1a0] sm:$0xf0] }
 0x439   : > { %11316 = vst [vmem:[#allocation99_spill] sm:$0xff] %v10137_v17 }
 0x43a   : > { %4619 = vmatmul.bf16.gmra.mxu3 %v5187_v62  ;;  %v5208_v62 = vld [vmem:[%s9366_s28 + $0x170] sm:$0xf0] }
 0x43b   : > { %v10154_v45 = vpop.f32.mrf.mxu1  ;;  %v5211_v58 = vor.u32 %v5598_v15, %v5208_v62  ;;  %v4288_v3 = vpop.f32.mrf.mxu0 }
 0x43d   : > { %5535 = vmatmul.msk.bf16.gmra.mxu1 %vm4175_vm13, %v5123_v20 }
 0x43e   : > { %v10148_v12 = vpop.f32.mrf.mxu3  ;;  %v4348_v20 = vpop.f32.mrf.mxu2 }
 0x43f   : > { %11318 = vst [vmem:[#allocation49_spill] sm:$0xff] %v10148_v12 }
 0x443   : > { %4505 = vmatmul.bf16.gmra.mxu2 %v5183_v38  ;;  %4718 = vmatmul.bf16.gmra.mxu0 %v5119_v31  ;;  %v4402_v37 = vpop.f32.mrf.mxu1  ;;  %v5601_v38 = vld [vmem:[%s9366_s28 + $0x16c] sm:$0xf0] }
 0x444   : > { %v5142_v31 = vld [vmem:[%s9366_s28 + $0xd0] sm:$0xf]  ;;  %v10164_v17 = vadd.f32 %v4402_v37, %v4288_v3  ;;  %v5207_v15 = vor.u32 %v5601_v38, %v5206_v11  ;;  %v5235_v3 = vor.u32 %v5604_v5, %v5232_v16  ;;  %v5587_v37 = vld [vmem:[%s9366_s28 + $0x104] sm:$0xf] }
 0x445   : > { %v5143_v62 = vor.u32 %v5584_v30, %v5142_v31  ;;  %v5230_v30 = vld [vmem:[%s9366_s28 + $0x188] sm:$0xf]  ;;  %v5607_v31 = vld [vmem:[%s9366_s28 + $0x19c] sm:$0xf0] }
 0x446   : > { %v4462_v2 = vpop.f32.mrf.mxu3  ;;  %v10178_v38 = vpop.f32.mrf.mxu2 }
 0x447   : > { %v10158_v12 = vadd.f32 %v4462_v2, %v4348_v20  ;;  %v10167_v20 = vpop.f32.mrf.mxu0  ;;  %11321 = vst [vmem:[#allocation94_spill] sm:$0xff] %v10178_v38  ;;  %v5256_v38 = vld [vmem:[%s9366_s28 + $0x1d0] sm:$0xf0] }
 0x449   : > { %11319 = vst [vmem:[#allocation93_spill] sm:$0xff] %v10158_v12  ;;  %v5168_v12 = vld [vmem:[%s9366_s28 + $0x118] sm:$0xf0] }
 0x44a   : > { %4624 = vmatmul.bf16.gmra.mxu3 %v5211_v58  ;;  %v5171_v24 = vor.u32 %v5587_v37, %v5168_v12  ;;  %v5231_v12 = vor.u32 %v5607_v31, %v5230_v30  ;;  %v5610_v37 = vld [vmem:[%s9366_s28 + $0x1bc] sm:$0xf]  ;;  %v5254_v30 = vld [vmem:[%s9366_s28 + $0x1b8] sm:$0xf] }
 0x44b   : > { %v10173_v2 = vpop.f32.mrf.mxu1 }
 0x44d   : > { %5536 = vmatmul.msk.bf16.gmra.mxu1 %vm4175_vm13, %v5147_v61 }
 0x44e   : > { %v10169_v58 = vpop.f32.mrf.mxu3 }
 0x44f   : > { %11320 = vst [vmem:[#allocation92_spill] sm:$0xff] %v10169_v58  ;;  %v4293_v61 = vpop.f32.mrf.mxu0 }
 0x453   : > { %4510 = vmatmul.bf16.gmra.mxu2 %v5207_v15  ;;  %4723 = vmatmul.bf16.gmra.mxu0 %v5143_v62  ;;  %v4407_v11 = vpop.f32.mrf.mxu1  ;;  %v5166_v15 = vld [vmem:[%s9366_s28 + $0x100] sm:$0xf]  ;;  %v5590_v62 = vld [vmem:[%s9366_s28 + $0x114] sm:$0xf0] }
 0x454   : > { %v10183_v58 = vadd.f32 %v4407_v11, %v4293_v61  ;;  %v5167_v16 = vor.u32 %v5590_v62, %v5166_v15  ;;  %v5613_v62 = vld [vmem:[%s9366_s28 + $0x1cc] sm:$0xf0] }
 0x455   : > { %v5255_v40 = vor.u32 %v5613_v62, %v5254_v30  ;;  %v5214_v30 = vld [vmem:[%s9366_s28 + $0x160] sm:$0xf]  ;;  %v5602_v62 = vld [vmem:[%s9366_s28 + $0x174] sm:$0xf0] }
 0x45a   : > { %4629 = vmatmul.bf16.gmra.mxu3 %v5235_v3  ;;  %v10188_v3 = vpop.f32.mrf.mxu0 }
 0x45b   : > { %v10192_v26 = vpop.f32.mrf.mxu1 }
 0x45d   : > { %5537 = vmatmul.msk.bf16.gmra.mxu1 %vm4175_vm13, %v5171_v24  ;;  %v10186_v5 = vpop.f32.mrf.mxu3  ;;  %v5259_v24 = vor.u32 %v5610_v37, %v5256_v38 }
 0x462   : > { %v4298_v31 = vpop.f32.mrf.mxu0 }
 0x463   : > { %4515 = vmatmul.bf16.gmra.mxu2 %v5231_v12  ;;  %4728 = vmatmul.bf16.gmra.mxu0 %v5167_v16  ;;  %v4412_v15 = vpop.f32.mrf.mxu1  ;;  %v5190_v12 = vld [vmem:[%s9366_s28 + $0x130] sm:$0xf]  ;;  %v5596_v16 = vld [vmem:[%s9366_s28 + $0x144] sm:$0xf0] }
 0x464   : > { %v10202_v0 = vadd.f32 %v4412_v15, %v4298_v31  ;;  %v5191_v37 = vor.u32 %v5596_v16, %v5190_v12  ;;  %v5599_v15 = vld [vmem:[%s9366_s28 + $0x164] sm:$0xf] }
 0x465   : > { %v10194_v61 = vpop.f32.mrf.mxu3 }
 0x466   : > { %v4476_v11 = vpop.f32.mrf.mxu2 }
 0x46a   : > { %4634 = vmatmul.bf16.gmra.mxu3 %v5259_v24  ;;  %v5616_v24 = vld [vmem:[%s9366_s28 + $0x1ec] sm:$0xf] }
 0x46b   : > { %v5283_v31 = vor.u32 %v5616_v24, %v5280_v63  ;;  %v5215_v63 = vor.u32 %v5602_v62, %v5214_v30  ;;  %v5622_v24 = vld [vmem:[%s9366_s28 + $0x21c] sm:$0xf]  ;;  %v4477_v62 = vadd.f32 %v4476_v11, %v9984_v53  ;;  %v4365_v53 = vadd.f32 %v9996_v10, %v9990_v46 }
 0x46d   : > { %5538 = vmatmul.msk.bf16.gmra.mxu1 %vm4175_vm13, %v5195_v9  ;;  %v10205_v38 = vpop.f32.mrf.mxu3  ;;  %v5216_v9 = vld [vmem:[%s9366_s28 + $0x178] sm:$0xf0] }
 0x46e   : > { %v4478_v21 = vpop.f32.mrf.mxu2  ;;  %v5219_v18 = vor.u32 %v5599_v15, %v5216_v9 }
 0x46f   : > { %v4479_v13 = vadd.f32 %v4478_v21, %v4365_v53  ;;  %v5631_v53 = vld [vmem:[%s9366_s28 + $0x25c] sm:$0xf0] }
 0x471   : > { %v4593_v21 = vadd.f32 %v10194_v61, %v4479_v13 }
 0x473   : > { %4520 = vmatmul.bf16.gmra.mxu2 %v5255_v40  ;;  %4733 = vmatmul.bf16.gmra.mxu0 %v5191_v37  ;;  %v5279_v40 = vor.u32 %v5619_v1, %v5278_v41  ;;  %v10224_v37 = vpop.f32.mrf.mxu1  ;;  %v10234_v41 = vpop.f32.mrf.mxu0  ;;  %v5243_v1 = vor.u32 %v5605_v56, %v5240_v27  ;;  %v5239_v56 = vor.u32 %v5608_v50, %v5238_v35  ;;  %v5328_v50 = vld [vmem:[%s9366_s28 + $0x260] sm:$0xf0] }
 0x475   : > { %v10209_v8 = vpop.f32.mrf.mxu3 }
 0x476   : > { %v10211_v23 = vpop.f32.mrf.mxu2 }
 0x47a   : > { %4639 = vmatmul.bf16.gmra.mxu3 %v5283_v31  ;;  %v5304_v31 = vld [vmem:[%s9366_s28 + $0x230] sm:$0xf0] }
 0x47d   : > { %5539 = vmatmul.msk.bf16.gmra.mxu1 %vm4175_vm13, %v5219_v18  ;;  %v10220_v12 = vpop.f32.mrf.mxu3  ;;  %v5307_v18 = vor.u32 %v5622_v24, %v5304_v31  ;;  %v4591_v31 = vadd.f32 %v10186_v5, %v4477_v62  ;;  %v5628_v5 = vld [vmem:[%s9366_s28 + $0x24c] sm:$0xf]  ;;  %v5611_v62 = vld [vmem:[%s9366_s28 + $0x1c4] sm:$0xf] }
 0x47e   : > { %v10222_v16 = vpop.f32.mrf.mxu2  ;;  %v5331_v35 = vor.u32 %v5628_v5, %v5328_v50 }
 0x483   : > { %4525 = vmatmul.bf16.gmra.mxu2 %v5279_v40  ;;  %4738 = vmatmul.bf16.gmra.mxu0 %v5215_v63  ;;  %v5302_v40 = vld [vmem:[%s9366_s28 + $0x218] sm:$0xf]  ;;  %v5625_v63 = vld [vmem:[%s9366_s28 + $0x22c] sm:$0xf0] }
 0x484   : > { %v5303_v27 = vor.u32 %v5625_v63, %v5302_v40  ;;  %v5264_v40 = vld [vmem:[%s9366_s28 + $0x1d8] sm:$0xf0] }
 0x485   : > { %v10228_v15 = vpop.f32.mrf.mxu3 }
 0x486   : > { %v10230_v9 = vpop.f32.mrf.mxu2 }
 0x48a   : > { %v4818_v30 = vpop.f32.mrf.mxu1  ;;  %4644 = vmatmul.bf16.gmra.mxu3 %v5307_v18 }
 0x48d   : > { %5540 = vmatmul.msk.bf16.gmra.mxu1 %vm4175_vm13, %v5243_v1  ;;  %v10242_v22 = vpop.f32.mrf.mxu3 }
 0x48e   : > { %v10244_v24 = vpop.f32.mrf.mxu2 }
 0x490   : > { %v4704_v18 = vpop.f32.mrf.mxu0 }
 0x491   : > { %v4705_v11 = vadd.f32 %v4704_v18, %v4591_v31  ;;  %v5267_v31 = vor.u32 %v5611_v62, %v5264_v40  ;;  %v5326_v18 = vld [vmem:[%s9366_s28 + $0x248] sm:$0xf] }
 0x492   : > { %v4820_v1 = vpop.f32.mrf.mxu1  ;;  %v5327_v50 = vor.u32 %v5631_v53, %v5326_v18  ;;  %v4487_v53 = vadd.f32 %v10230_v9, %v10038_v36 }
 0x493   : > { %v4819_v32 = vadd.f32 %v4818_v30, %v4705_v11  ;;  %4530 = vmatmul.bf16.gmra.mxu2 %v5303_v27  ;;  %4743 = vmatmul.bf16.gmra.mxu0 %v5239_v56  ;;  %v5262_v11 = vld [vmem:[%s9366_s28 + $0x1c0] sm:$0xf] }
 0x495   : > { %4923 = vst.msk [vmem:[%s10253_s27] sm:$0xff] %vm289_vm0, %v4819_v32  ;;  %v10259_v46 = vpop.f32.mrf.mxu3  ;;  %v4482_v32 = vadd.f32 %v10211_v23, %v10012_v29  ;;  %v5263_v29 = vor.u32 %v5614_v28, %v5262_v11 }
 0x496   : > { %v10261_v10 = vpop.f32.mrf.mxu2 }
 0x497   : > { %v4596_v5 = vadd.f32 %v10205_v38, %v4482_v32 }
 0x498   : > { %v4706_v30 = vpop.f32.mrf.mxu0 }
 0x499   : > { %v4707_v63 = vadd.f32 %v4706_v30, %v4593_v21  ;;  %v5634_v30 = vld [vmem:[%s9366_s28 + $0x27c] sm:$0xf] }
 0x49a   : > { %v4823_v27 = vpop.f32.mrf.mxu1  ;;  %4649 = vmatmul.bf16.gmra.mxu3 %v5331_v35 }
 0x49b   : > { %v4821_v56 = vadd.f32 %v4820_v1, %v4707_v63  ;;  %v4370_v1 = vadd.f32 %v10024_v19, %v10017_v6  ;;  %v5352_v63 = vld [vmem:[%s9366_s28 + $0x290] sm:$0xf0] }
 0x49c   : > { %v5355_v6 = vor.u32 %v5634_v30, %v5352_v63  ;;  %v5617_v19 = vld [vmem:[%s9366_s28 + $0x1f4] sm:$0xf] }
 0x49d   : > { %4924 = vst.msk [vmem:[%s10253_s27 + $0x8] sm:$0xff] %vm289_vm0, %v4821_v56  ;;  %5541 = vmatmul.msk.bf16.gmra.mxu1 %vm4175_vm13, %v5267_v31  ;;  %v10275_v13 = vpop.f32.mrf.mxu3  ;;  %v4484_v40 = vadd.f32 %v10222_v16, %v4370_v1  ;;  %v5288_v31 = vld [vmem:[%s9366_s28 + $0x208] sm:$0xf0] }
 0x49e   : > { %v10277_v61 = vpop.f32.mrf.mxu2  ;;  %v5291_v56 = vor.u32 %v5617_v19, %v5288_v31  ;;  %v5640_v19 = vld [vmem:[%s9366_s28 + $0x2ac] sm:$0xf]  ;;  %v5376_v31 = vld [vmem:[%s9366_s28 + $0x2c0] sm:$0xf0] }
 0x49f   : > { %v4598_v16 = vadd.f32 %v10209_v8, %v4484_v40 }
 0x4a0   : > { %v4709_v23 = vpop.f32.mrf.mxu0 }
 0x4a1   : > { %v4710_v35 = vadd.f32 %v4709_v23, %v4596_v5  ;;  %v5350_v5 = vld [vmem:[%s9366_s28 + $0x278] sm:$0xf]  ;;  %v5620_v23 = vld [vmem:[%s9366_s28 + $0x204] sm:$0xf0] }
 0x4a2   : > { %v4825_v62 = vpop.f32.mrf.mxu1 }
 0x4a3   : > { %v4824_v21 = vadd.f32 %v4823_v27, %v4710_v35  ;;  %4535 = vmatmul.bf16.gmra.mxu2 %v5327_v50  ;;  %4748 = vmatmul.bf16.gmra.mxu0 %v5263_v29  ;;  %v5637_v50 = vld [vmem:[%s9366_s28 + $0x28c] sm:$0xf0]  ;;  %v4601_v35 = vadd.f32 %v10220_v12, %v4487_v53 }
 0x4a4   : > { %v5286_v29 = vld [vmem:[%s9366_s28 + $0x1f0] sm:$0xf]  ;;  %v5351_v40 = vor.u32 %v5637_v50, %v5350_v5  ;;  %v5374_v50 = vld [vmem:[%s9366_s28 + $0x2a8] sm:$0xf] }
 0x4a5   : > { %4925 = vst.msk [vmem:[%s10253_s27 + $0x10] sm:$0xff] %vm289_vm0, %v4824_v21  ;;  %v10287_v28 = vpop.f32.mrf.mxu3  ;;  %v5287_v36 = vor.u32 %v5620_v23, %v5286_v29  ;;  %v5643_v29 = vld [vmem:[%s9366_s28 + $0x2bc] sm:$0xf0] }
 0x4a6   : > { %v10289_v38 = vpop.f32.mrf.mxu2  ;;  %v5310_v23 = vld [vmem:[%s9366_s28 + $0x220] sm:$0xf] }
 0x4a8   : > { %v4711_v27 = vpop.f32.mrf.mxu0 }
 0x4a9   : > { %v4712_v32 = vadd.f32 %v4711_v27, %v4598_v16  ;;  %v5312_v27 = vld [vmem:[%s9366_s28 + $0x238] sm:$0xf0] }
 0x4aa   : > { %v4828_v18 = vpop.f32.mrf.mxu1  ;;  %4654 = vmatmul.bf16.gmra.mxu3 %v5355_v6 }
 0x4ab   : > { %v4826_v11 = vadd.f32 %v4825_v62, %v4712_v32  ;;  %v4375_v62 = vadd.f32 %v10049_v39, %v10043_v42  ;;  %v5379_v42 = vor.u32 %v5640_v19, %v5376_v31  ;;  %v5623_v39 = vld [vmem:[%s9366_s28 + $0x224] sm:$0xf]  ;;  %v5646_v19 = vld [vmem:[%s9366_s28 + $0x2dc] sm:$0xf]  ;;  %v5400_v31 = vld [vmem:[%s9366_s28 + $0x2f0] sm:$0xf0] }
 0x4ad   : > { %4926 = vst.msk [vmem:[%s10253_s27 + $0x18] sm:$0xff] %vm289_vm0, %v4826_v11  ;;  %5542 = vmatmul.msk.bf16.gmra.mxu1 %vm4175_vm13, %v5291_v56  ;;  %v10303_v8 = vpop.f32.mrf.mxu3  ;;  %v4489_v63 = vadd.f32 %v10244_v24, %v4375_v62  ;;  %v4492_v11 = vadd.f32 %v10261_v10, %v10057_v47  ;;  %v4380_v62 = vadd.f32 %v10067_v51, %v10061_v57  ;;  %v5629_v51 = vld [vmem:[%s9366_s28 + $0x254] sm:$0xf] }
 0x4ae   : > { %v10305_v1 = vpop.f32.mrf.mxu2  ;;  %v5403_v57 = vor.u32 %v5646_v19, %v5400_v31  ;;  %v5360_v19 = vld [vmem:[%s9366_s28 + $0x298] sm:$0xf0] }
 0x4af   : > { %v4603_v24 = vadd.f32 %v10228_v15, %v4489_v63  ;;  %v4494_v63 = vadd.f32 %v10277_v61, %v4380_v62 }
 0x4b0   : > { %v4714_v9 = vpop.f32.mrf.mxu0 }
 0x4b1   : > { %v4715_v21 = vadd.f32 %v4714_v9, %v4601_v35  ;;  %v5626_v35 = vld [vmem:[%s9366_s28 + $0x234] sm:$0xf0]  ;;  %v5375_v9 = vor.u32 %v5643_v29, %v5374_v50  ;;  %v4608_v61 = vadd.f32 %v10259_v46, %v4494_v63  ;;  %v5334_v50 = vld [vmem:[%s9366_s28 + $0x250] sm:$0xf]  ;;  %v5632_v29 = vld [vmem:[%s9366_s28 + $0x264] sm:$0xf0] }
 0x4b2   : > { %v4830_v30 = vpop.f32.mrf.mxu1  ;;  %v5311_v47 = vor.u32 %v5626_v35, %v5310_v23  ;;  %v5424_v63 = vld [vmem:[%s9366_s28 + $0x320] sm:$0xf0] }
 0x4b3   : > { %v4829_v6 = vadd.f32 %v4828_v18, %v4715_v21  ;;  %4540 = vmatmul.bf16.gmra.mxu2 %v5351_v40  ;;  %4753 = vmatmul.bf16.gmra.mxu0 %v5287_v36  ;;  %v5315_v18 = vor.u32 %v5623_v39, %v5312_v27  ;;  %v4606_v36 = vadd.f32 %v10242_v22, %v4492_v11  ;;  %v5336_v39 = vld [vmem:[%s9366_s28 + $0x268] sm:$0xf0]  ;;  %v5398_v11 = vld [vmem:[%s9366_s28 + $0x2d8] sm:$0xf] }
 0x4b5   : > { %4927 = vst.msk [vmem:[%s10253_s27 + $0x20] sm:$0xff] %vm289_vm0, %v4829_v6  ;;  %v10315_v12 = vpop.f32.mrf.mxu3 }
 0x4b6   : > { %v10317_v16 = vpop.f32.mrf.mxu2 }
 0x4b8   : > { %v4716_v32 = vpop.f32.mrf.mxu0 }
 0x4b9   : > { %v4717_v56 = vadd.f32 %v4716_v32, %v4603_v24  ;;  %v5339_v32 = vor.u32 %v5629_v51, %v5336_v39 }
 0x4ba   : > { %v4833_v53 = vpop.f32.mrf.mxu1  ;;  %4659 = vmatmul.bf16.gmra.mxu3 %v5379_v42 }
 0x4bb   : > { %v4831_v5 = vadd.f32 %v4830_v30, %v4717_v56 }
 0x4bd   : > { %4928 = vst.msk [vmem:[%s10253_s27 + $0x28] sm:$0xff] %vm289_vm0, %v4831_v5  ;;  %5543 = vmatmul.msk.bf16.gmra.mxu1 %vm4175_vm13, %v5315_v18  ;;  %v10331_v15 = vpop.f32.mrf.mxu3  ;;  %v4497_v18 = vadd.f32 %v10289_v38, %v10082_v44  ;;  %v5649_v5 = vld [vmem:[%s9366_s28 + $0x2ec] sm:$0xf0]  ;;  %v5335_v44 = vor.u32 %v5632_v29, %v5334_v50  ;;  %v4390_v50 = vadd.f32 %v10112_v54, %v10108_v52  ;;  %v5641_v54 = vld [vmem:[%s9366_s28 + $0x2b4] sm:$0xf] }
 0x4be   : > { %v10333_v40 = vpop.f32.mrf.mxu2 }
 0x4bf   : > { %v4611_v35 = vadd.f32 %v10275_v13, %v4497_v18  ;;  %v5638_v18 = vld [vmem:[%s9366_s28 + $0x294] sm:$0xf0] }
 0x4c0   : > { %v4719_v10 = vpop.f32.mrf.mxu0 }
 0x4c1   : > { %v4720_v21 = vadd.f32 %v4719_v10, %v4606_v36  ;;  %v5399_v36 = vor.u32 %v5649_v5, %v5398_v11 }
 0x4c2   : > { %v4835_v30 = vpop.f32.mrf.mxu1 }
 0x4c3   : > { %v4834_v6 = vadd.f32 %v4833_v53, %v4720_v21  ;;  %4545 = vmatmul.bf16.gmra.mxu2 %v5375_v9  ;;  %4758 = vmatmul.bf16.gmra.mxu0 %v5311_v47  ;;  %v4385_v9 = vadd.f32 %v10091_v55, %v10087_v60  ;;  %v5635_v55 = vld [vmem:[%s9366_s28 + $0x284] sm:$0xf] }
 0x4c4   : > { %v5363_v51 = vor.u32 %v5635_v55, %v5360_v19  ;;  %v5446_v19 = vld [vmem:[%s9366_s28 + $0x338] sm:$0xf] }
 0x4c5   : > { %4929 = vst.msk [vmem:[%s10253_s27 + $0x30] sm:$0xff] %vm289_vm0, %v4834_v6  ;;  %v10343_v22 = vpop.f32.mrf.mxu3  ;;  %v4499_v62 = vadd.f32 %v10305_v1, %v4385_v9  ;;  %v5448_v9 = vld [vmem:[%s9366_s28 + $0x350] sm:$0xf0] }
 0x4c6   : > { %v10345_v42 = vpop.f32.mrf.mxu2 }
 0x4c7   : > { %v4613_v1 = vadd.f32 %v10287_v28, %v4499_v62 }
 0x4c8   : > { %v4721_v27 = vpop.f32.mrf.mxu0 }
 0x4c9   : > { %v4722_v24 = vadd.f32 %v4721_v27, %v4608_v61  ;;  %v4502_v61 = vadd.f32 %v10317_v16, %v10103_v25 }
 0x4ca   : > { %v4838_v56 = vpop.f32.mrf.mxu1  ;;  %4664 = vmatmul.bf16.gmra.mxu3 %v5403_v57 }
 0x4cb   : > { %v4836_v53 = vadd.f32 %v4835_v30, %v4722_v24  ;;  %v5652_v30 = vld [vmem:[%s9366_s28 + $0x30c] sm:$0xf]  ;;  %v5422_v24 = vld [vmem:[%s9366_s28 + $0x308] sm:$0xf]  ;;  %v4616_v11 = vadd.f32 %v10303_v8, %v4502_v61 }
 0x4cc   : > { %v5427_v60 = vor.u32 %v5652_v30, %v5424_v63 }
 0x4cd   : > { %4930 = vst.msk [vmem:[%s10253_s27 + $0x38] sm:$0xff] %vm289_vm0, %v4836_v53  ;;  %5544 = vmatmul.msk.bf16.gmra.mxu1 %vm4175_vm13, %v5339_v32  ;;  %v10359_v46 = vpop.f32.mrf.mxu3  ;;  %v5655_v32 = vld [vmem:[%s9366_s28 + $0x31c] sm:$0xf0] }
 0x4ce   : > { %v10361_v23 = vpop.f32.mrf.mxu2  ;;  %v5423_v5 = vor.u32 %v5655_v32, %v5422_v24 }
 0x4d0   : > { %v4724_v38 = vpop.f32.mrf.mxu0 }
 0x4d1   : > { %v4725_v47 = vadd.f32 %v4724_v38, %v4611_v35  ;;  %v5658_v38 = vld [vmem:[%s9366_s28 + $0x33c] sm:$0xf] }
 0x4d2   : > { %v4840_v10 = vpop.f32.mrf.mxu1  ;;  %v5451_v52 = vor.u32 %v5658_v38, %v5448_v9  ;;  %v5470_v9 = vld [vmem:[%s9366_s28 + $0x368] sm:$0xf] }
 0x4d3   : > { %v4839_v21 = vadd.f32 %v4838_v56, %v4725_v47  ;;  %4550 = vmatmul.bf16.gmra.mxu2 %v5399_v36  ;;  %4763 = vmatmul.bf16.gmra.mxu0 %v5335_v44  ;;  %v5358_v56 = vld [vmem:[%s9366_s28 + $0x280] sm:$0xf]  ;;  %v4504_v36 = vadd.f32 %v10333_v40, %v4390_v50 }
 0x4d4   : > { %v5359_v25 = vor.u32 %v5638_v18, %v5358_v56 }
 0x4d5   : > { %4931 = vst.msk [vmem:[%s10253_s27 + $0x40] sm:$0xff] %vm289_vm0, %v4839_v21  ;;  %v10371_v13 = vpop.f32.mrf.mxu3  ;;  %v4618_v40 = vadd.f32 %v10315_v12, %v4504_v36 }
 0x4d6   : > { %v10373_v6 = vpop.f32.mrf.mxu2 }
 0x4d8   : > { %v4726_v31 = vpop.f32.mrf.mxu0 }
 0x4d9   : > { %v4727_v57 = vadd.f32 %v4726_v31, %v4613_v1  ;;  %v5661_v1 = vld [vmem:[%s9366_s28 + $0x34c] sm:$0xf0] }
 0x4da   : > { %v4843_v39 = vpop.f32.mrf.mxu1  ;;  %4669 = vmatmul.bf16.gmra.mxu3 %v5427_v60  ;;  %v4507_v60 = vadd.f32 %v10345_v42, %v10124_v7  ;;  %v5382_v31 = vld [vmem:[%s9366_s28 + $0x2b0] sm:$0xf]  ;;  %v5447_v7 = vor.u32 %v5661_v1, %v5446_v19  ;;  %v5670_v1 = vld [vmem:[%s9366_s28 + $0x39c] sm:$0xf] }
 0x4db   : > { %v4841_v27 = vadd.f32 %v4840_v10, %v4727_v57  ;;  %v5384_v10 = vld [vmem:[%s9366_s28 + $0x2c8] sm:$0xf0]  ;;  %v5644_v57 = vld [vmem:[%s9366_s28 + $0x2c4] sm:$0xf0] }
 0x4dc   : > { %v5387_v30 = vor.u32 %v5641_v54, %v5384_v10  ;;  %v5383_v42 = vor.u32 %v5644_v57, %v5382_v31  ;;  %v5406_v54 = vld [vmem:[%s9366_s28 + $0x2e0] sm:$0xf]  ;;  %v5650_v10 = vld [vmem:[%s9366_s28 + $0x2f4] sm:$0xf0]  ;;  %v5432_v57 = vld [vmem:[%s9366_s28 + $0x328] sm:$0xf0] }
 0x4dd   : > { %4932 = vst.msk [vmem:[%s10253_s27 + $0x48] sm:$0xff] %vm289_vm0, %v4841_v27  ;;  %5545 = vmatmul.msk.bf16.gmra.mxu1 %vm4175_vm13, %v5363_v51  ;;  %v10387_v28 = vpop.f32.mrf.mxu3  ;;  %v4395_v27 = vadd.f32 %v10133_v48, %v10129_v14  ;;  %v5647_v14 = vld [vmem:[%s9366_s28 + $0x2e4] sm:$0xf]  ;;  %v5408_v48 = vld [vmem:[%s9366_s28 + $0x2f8] sm:$0xf0] }
 0x4de   : > { %v10389_v53 = vpop.f32.mrf.mxu2 }
 0x4df   : > { %v4509_v56 = vadd.f32 %v10361_v23, %v4395_v27 }
 0x4e0   : > { %v4729_v16 = vpop.f32.mrf.mxu0 }
 0x4e1   : > { %v4730_v29 = vadd.f32 %v4729_v16, %v4616_v11  ;;  %v5664_v11 = vld [vmem:[%s9366_s28 + $0x36c] sm:$0xf]  ;;  %v4623_v16 = vadd.f32 %v10343_v22, %v4509_v56 }
 0x4e2   : > { %v4845_v35 = vpop.f32.mrf.mxu1 }
 0x4e3   : > { %v4844_v44 = vadd.f32 %v4843_v39, %v4730_v29  ;;  %4555 = vmatmul.bf16.gmra.mxu2 %v5423_v5  ;;  %4768 = vmatmul.bf16.gmra.mxu0 %v5359_v25  ;;  %v4621_v39 = vadd.f32 %v10331_v15, %v4507_v60  ;;  %v5472_v5 = vld [vmem:[%s9366_s28 + $0x380] sm:$0xf0] }
 0x4e4   : > { %v5475_v25 = vor.u32 %v5664_v11, %v5472_v5  ;;  %v5430_v11 = vld [vmem:[%s9366_s28 + $0x310] sm:$0xf]  ;;  %v5656_v5 = vld [vmem:[%s9366_s28 + $0x324] sm:$0xf0] }
 0x4e5   : > { %4933 = vst.msk [vmem:[%s10253_s27 + $0x50] sm:$0xff] %vm289_vm0, %v4844_v44  ;;  %v10399_v8 = vpop.f32.mrf.mxu3  ;;  %v4512_v44 = vadd.f32 %v10373_v6, %v10145_v34  ;;  %v4400_v6 = vadd.f32 %v10154_v45, %v10150_v49  ;;  %v5653_v45 = vld [vmem:[%s9366_s28 + $0x314] sm:$0xf] }
 0x4e6   : > { %v10401_v47 = vpop.f32.mrf.mxu2 }
 0x4e7   : > { %v4517_v27 = vadd.f32 %v10401_v47, %v10164_v17  ;;  %v5431_v17 = vor.u32 %v5656_v5, %v5430_v11  ;;  %v5668_v11 = vld [vmem:[%s9366_s28 + $0x384] sm:$0xf0] }
 0x4e8   : > { %v4731_v62 = vpop.f32.mrf.mxu0 }
 0x4e9   : > { %v4732_v21 = vadd.f32 %v4731_v62, %v4618_v40  ;;  %v4626_v40 = vadd.f32 %v10359_v46, %v4512_v44  ;;  %v5496_v46 = vld [vmem:[%s9366_s28 + $0x3b0] sm:$0xf0]  ;;  %v5520_v44 = vld [vmem:[%s9366_s28 + $0x3e0] sm:$0xf0] }
 0x4ea   : > { %v4848_v63 = vpop.f32.mrf.mxu1  ;;  %4674 = vmatmul.bf16.gmra.mxu3 %v5451_v52  ;;  %v5667_v52 = vld [vmem:[%s9366_s28 + $0x37c] sm:$0xf0]  ;;  %v5499_v49 = vor.u32 %v5670_v1, %v5496_v46 }
 0x4eb   : > { %v4846_v55 = vadd.f32 %v4845_v35, %v4732_v21  ;;  %v5411_v35 = vor.u32 %v5647_v14, %v5408_v48  ;;  %v5471_v62 = vor.u32 %v5667_v52, %v5470_v9  ;;  %v5407_v21 = vor.u32 %v5650_v10, %v5406_v54  ;;  %v5456_v9 = vld [vmem:[%s9366_s28 + $0x358] sm:$0xf0] }
 0x4ec   : > { %v4405_v48 = vadd.f32 %v10173_v2, %v10167_v20  ;;  %v5659_v2 = vld [vmem:[%s9366_s28 + $0x344] sm:$0xf] }
 0x4ed   : > { %4934 = vst.msk [vmem:[%s10253_s27 + $0x58] sm:$0xff] %vm289_vm0, %v4846_v55  ;;  %5546 = vmatmul.msk.bf16.gmra.mxu1 %vm4175_vm13, %v5387_v30  ;;  %v10417_v51 = vpop.f32.mrf.mxu3  ;;  %v4514_v55 = vadd.f32 %v10389_v53, %v4400_v6  ;;  %v5459_v10 = vor.u32 %v5659_v2, %v5456_v9  ;;  %v5679_v6 = vld [vmem:[%s9366_s28 + $0x3dc] sm:$0xf0]  ;;  %v5674_v9 = vld [vmem:[%s9366_s28 + $0x3b4] sm:$0xf0] }
 0x4ee   : > { %v10415_v12 = vpop.f32.mrf.mxu2  ;;  %v5502_v2 = vld [vmem:[%s9366_s28 + $0x3a0] sm:$0xf] }
 0x4f0   : > { %v4734_v61 = vpop.f32.mrf.mxu0 }
 0x4f1   : > { %v4735_v24 = vadd.f32 %v4734_v61, %v4621_v39  ;;  %v4628_v39 = vadd.f32 %v10371_v13, %v4514_v55 }
 0x4f2   : > { %v4850_v32 = vpop.f32.mrf.mxu1 }
 0x4f3   : > { %v4849_v18 = vadd.f32 %v4848_v63, %v4735_v24  ;;  %4560 = vmatmul.bf16.gmra.mxu2 %v5447_v7  ;;  %4773 = vmatmul.bf16.gmra.mxu0 %v5383_v42  ;;  %v5435_v42 = vor.u32 %v5653_v45, %v5432_v57 }
 0x4f5   : > { %4935 = vst.msk [vmem:[%s10253_s27 + $0x60] sm:$0xff] %vm289_vm0, %v4849_v18  ;;  %v10432_v50 = vpop.f32.mrf.mxu3  ;;  %v5673_v18 = vld [vmem:[%s9366_s28 + $0x3ac] sm:$0xf0] }
 0x4f6   : > { %v10427_v15 = vpop.f32.mrf.mxu2 }
 0x4f8   : > { %v4736_v23 = vpop.f32.mrf.mxu0 }
 0x4f9   : > { %v4737_v29 = vadd.f32 %v4736_v23, %v4623_v16 }
 0x4fa   : > { %v4853_v36 = vpop.f32.mrf.mxu1  ;;  %4679 = vmatmul.bf16.gmra.mxu3 %v5475_v25  ;;  %v4631_v25 = vadd.f32 %v10387_v28, %v4517_v27 }
 0x4fb   : > { %v4851_v38 = vadd.f32 %v4850_v32, %v4737_v29  ;;  %v5494_v32 = vld [vmem:[%s9366_s28 + $0x398] sm:$0xf]  ;;  %v4519_v29 = vadd.f32 %v10415_v12, %v4405_v48 }
 0x4fc   : > { %v5495_v14 = vor.u32 %v5673_v18, %v5494_v32  ;;  %v5478_v18 = vld [vmem:[%s9366_s28 + $0x370] sm:$0xf] }
 0x4fd   : > { %4936 = vst.msk [vmem:[%s10253_s27 + $0x68] sm:$0xff] %vm289_vm0, %v4851_v38  ;;  %5547 = vmatmul.msk.bf16.gmra.mxu1 %vm4175_vm13, %v5411_v35  ;;  %v10448_v63 = vpop.f32.mrf.mxu3  ;;  %v4633_v12 = vadd.f32 %v10399_v8, %v4519_v29 }
 0x4fe   : > { %v10443_v22 = vpop.f32.mrf.mxu2 }
 0x500   : > { %v4739_v34 = vpop.f32.mrf.mxu0 }
 0x501   : > { %v4740_v30 = vadd.f32 %v4739_v34, %v4626_v40  ;;  %v5518_v34 = vld [vmem:[%s9366_s28 + $0x3c8] sm:$0xf] }
 0x502   : > { %v4855_v60 = vpop.f32.mrf.mxu1 }
 0x503   : > { %v4854_v19 = vadd.f32 %v4853_v36, %v4740_v30  ;;  %4565 = vmatmul.bf16.gmra.mxu2 %v5471_v62  ;;  %4778 = vmatmul.bf16.gmra.mxu0 %v5407_v21  ;;  %v5676_v36 = vld [vmem:[%s9366_s28 + $0x3cc] sm:$0xf]  ;;  %v4522_v62 = vadd.f32 %v10427_v15, %v10183_v58  ;;  %v5454_v30 = vld [vmem:[%s9366_s28 + $0x340] sm:$0xf]  ;;  %v4410_v15 = vadd.f32 %v10192_v26, %v10188_v3 }
 0x504   : > { %v5523_v20 = vor.u32 %v5676_v36, %v5520_v44 }
 0x505   : > { %4937 = vst.msk [vmem:[%s10253_s27 + $0x70] sm:$0xff] %vm289_vm0, %v4854_v19  ;;  %v10463_v56 = vpop.f32.mrf.mxu3  ;;  %v4636_v55 = vadd.f32 %v10417_v51, %v4522_v62  ;;  %v5519_v19 = vor.u32 %v5679_v6, %v5518_v34  ;;  %v4524_v57 = vadd.f32 %v10443_v22, %v4410_v15  ;;  %v5677_v34 = vld [vmem:[%s9366_s28 + $0x3d4] sm:$0xf]  ;;  %v5528_v6 = vld [vmem:[%s9366_s28 + $0x3e8] sm:$0xf0] }
 0x506   : > { %v10455_v31 = vpop.f32.mrf.mxu2 }
 0x507   : > { %v4527_v22 = vadd.f32 %v10455_v31, %v10202_v0 }
 0x508   : > { %v4741_v53 = vpop.f32.mrf.mxu0 }
 0x509   : > { %v4742_v7 = vadd.f32 %v4741_v53, %v4628_v39  ;;  %v5665_v53 = vld [vmem:[%s9366_s28 + $0x374] sm:$0xf] }
 0x50a   : > { %v4858_v61 = vpop.f32.mrf.mxu1  ;;  %4684 = vmatmul.bf16.gmra.mxu3 %v5499_v49 }
 0x50b   : > { %v4856_v24 = vadd.f32 %v4855_v60, %v4742_v7  ;;  %v5662_v60 = vld [vmem:[%s9366_s28 + $0x354] sm:$0xf0]  ;;  %v5480_v7 = vld [vmem:[%s9366_s28 + $0x388] sm:$0xf0] }
 0x50c   : > { %v5455_v1 = vor.u32 %v5662_v60, %v5454_v30  ;;  %v5483_v26 = vor.u32 %v5665_v53, %v5480_v7 }
 0x50d   : > { %4938 = vst.msk [vmem:[%s10253_s27 + $0x78] sm:$0xff] %vm289_vm0, %v4856_v24  ;;  %5548 = vmatmul.msk.bf16.gmra.mxu1 %vm4175_vm13, %v5435_v42  ;;  %v10483_v38 = vpop.f32.mrf.mxu3  ;;  %v4638_v42 = vadd.f32 %v10432_v50, %v4524_v57  ;;  %v4641_v50 = vadd.f32 %v10448_v63, %v4527_v22  ;;  %v5504_v63 = vld [vmem:[%s9366_s28 + $0x3b8] sm:$0xf0] }
 0x50e   : > { %v10471_v13 = vpop.f32.mrf.mxu2 }
 0x510   : > { %v4744_v47 = vpop.f32.mrf.mxu0 }
 0x511   : > { %v4745_v16 = vadd.f32 %v4744_v47, %v4631_v25  ;;  %v5479_v25 = vor.u32 %v5668_v11, %v5478_v18 }
 0x512   : > { %v4860_v23 = vpop.f32.mrf.mxu1 }
 0x513   : > { %v4859_v35 = vadd.f32 %v4858_v61, %v4745_v16  ;;  %4570 = vmatmul.bf16.gmra.mxu2 %v5495_v14  ;;  %4783 = vmatmul.bf16.gmra.mxu0 %v5431_v17  ;;  %v4415_v17 = vadd.f32 %v10224_v37, %v10234_v41 }
 0x515   : > { %4939 = vst.msk [vmem:[%s10253_s27 + $0x80] sm:$0xff] %vm289_vm0, %v4859_v35  ;;  %v10498_v46 = vpop.f32.mrf.mxu3  ;;  %v4529_v31 = vadd.f32 %v10471_v13, %v4415_v17  ;;  %v11325_v17 = vld [vmem:[#allocation83_spill] sm:$0xff] }
 0x516   : > { %v10481_v28 = vpop.f32.mrf.mxu2 }
 0x517   : > { %v4643_v29 = vadd.f32 %v10463_v56, %v4529_v31 }
 0x518   : > { %v4746_v52 = vpop.f32.mrf.mxu0 }
 0x519   : > { %v4747_v54 = vadd.f32 %v4746_v52, %v4633_v12  ;;  %v5503_v52 = vor.u32 %v5674_v9, %v5502_v2 }
 0x51a   : > { %v4863_v40 = vpop.f32.mrf.mxu1  ;;  %4689 = vmatmul.bf16.gmra.mxu3 %v5523_v20  ;;  %v4532_v20 = vadd.f32 %v10481_v28, %v9957_v4 }
 0x51b   : > { %v4861_v21 = vadd.f32 %v4860_v23, %v4747_v54  ;;  %v5671_v23 = vld [vmem:[%s9366_s28 + $0x3a4] sm:$0xf] }
 0x51c   : > { %v5507_v37 = vor.u32 %v5671_v23, %v5504_v63  ;;  %v4646_v56 = vadd.f32 %v10483_v38, %v4532_v20 }
 0x51d   : > { %4940 = vst.msk [vmem:[%s10253_s27 + $0x88] sm:$0xff] %vm289_vm0, %v4861_v21  ;;  %5549 = vmatmul.msk.bf16.gmra.mxu1 %vm4175_vm13, %v5459_v10  ;;  %v4650_v3 = vpop.f32.mrf.mxu3  ;;  %v4420_v10 = vadd.f32 %v9966_v33, %v9955_v59 }
 0x51e   : > { %v4533_v8 = vpop.f32.mrf.mxu2 }
 0x51f   : > { %v4534_v28 = vadd.f32 %v4533_v8, %v4420_v10  ;;  %v5526_v8 = vld [vmem:[%s9366_s28 + $0x3d0] sm:$0xf] }
 0x520   : > { %v4749_v58 = vpop.f32.mrf.mxu0 }
 0x521   : > { %v4750_v49 = vadd.f32 %v4749_v58, %v4636_v55  ;;  %v4648_v38 = vadd.f32 %v10498_v46, %v4534_v28  ;;  %v5680_v58 = vld [vmem:[%s9366_s28 + $0x3e4] sm:$0xf0]  ;;  %v11322_v46 = vld [vmem:[#allocation4_spill] sm:$0xff] }
 0x522   : > { %v4865_v45 = vpop.f32.mrf.mxu1 }
 0x523   : > { %v4864_v39 = vadd.f32 %v4863_v40, %v4750_v49  ;;  %4575 = vmatmul.bf16.gmra.mxu2 %v5519_v19  ;;  %4788 = vmatmul.bf16.gmra.mxu0 %v5455_v1  ;;  %v5531_v19 = vor.u32 %v5677_v34, %v5528_v6 }
 0x525   : > { %4941 = vst.msk [vmem:[%s10253_s27 + $0x90] sm:$0xff] %vm289_vm0, %v4864_v39  ;;  %v4652_v16 = vpop.f32.mrf.mxu3  ;;  %v11323_v39 = vld [vmem:[#allocation5_spill] sm:$0xff] }
 0x526   : > { %v4536_v51 = vpop.f32.mrf.mxu2  ;;  %v4425_v53 = vadd.f32 %v11323_v39, %v11322_v46 }
 0x527   : > { %v4537_v33 = vadd.f32 %v4536_v51, %v9977_v43 }
 0x528   : > { %v4751_v61 = vpop.f32.mrf.mxu0 }
 0x529   : > { %v4752_v27 = vadd.f32 %v4751_v61, %v4638_v42  ;;  %v4651_v49 = vadd.f32 %v4650_v3, %v4537_v33 }
 0x52a   : > { %v4868_v24 = vpop.f32.mrf.mxu1 }
 0x52b   : > { %v4866_v32 = vadd.f32 %v4865_v45, %v4752_v27  ;;  %v5527_v45 = vor.u32 %v5680_v58, %v5526_v8  ;;  %v11331_v8 = vld [vmem:[#allocation51_spill] sm:$0xff]  ;;  %v11332_v58 = vld [vmem:[#allocation96_spill] sm:$0xff] }
 0x52d   : > { %4942 = vst.msk [vmem:[%s10253_s27 + $0x98] sm:$0xff] %vm289_vm0, %v4866_v32  ;;  %5550 = vmatmul.msk.bf16.gmra.mxu1 %vm4175_vm13, %v5483_v26  ;;  %v4655_v12 = vpop.f32.mrf.mxu3  ;;  %v11324_v32 = vld [vmem:[#allocation88_spill] sm:$0xff] }
 0x52e   : > { %v4538_v5 = vpop.f32.mrf.mxu2 }
 0x52f   : > { %v4539_v43 = vadd.f32 %v4538_v5, %v4425_v53  ;;  %v11326_v5 = vld [vmem:[#allocation84_spill] sm:$0xff] }
 0x530   : > { %v4754_v14 = vpop.f32.mrf.mxu0 }
 0x531   : > { %v4755_v47 = vadd.f32 %v4754_v14, %v4641_v50  ;;  %v4653_v27 = vadd.f32 %v4652_v16, %v4539_v43 }
 0x532   : > { %v4870_v0 = vpop.f32.mrf.mxu1 }
 0x533   : > { %v4869_v48 = vadd.f32 %v4868_v24, %v4755_v47  ;;  %4793 = vmatmul.bf16.gmra.mxu0 %v5479_v25  ;;  %v4430_v47 = vadd.f32 %v11326_v5, %v11325_v17 }
 0x535   : > { %4943 = vst.msk [vmem:[%s10253_s27 + $0xa0] sm:$0xff] %vm289_vm0, %v4869_v48  ;;  %v4657_v30 = vpop.f32.mrf.mxu3 }
 0x536   : > { %v4541_v36 = vpop.f32.mrf.mxu2 }
 0x537   : > { %v4542_v18 = vadd.f32 %v4541_v36, %v11324_v32  ;;  %v11334_v32 = vld [vmem:[#allocation53_spill] sm:$0xff] }
 0x538   : > { %v4756_v35 = vpop.f32.mrf.mxu0 }
 0x539   : > { %v4757_v44 = vadd.f32 %v4756_v35, %v4643_v29  ;;  %v4656_v25 = vadd.f32 %v4655_v12, %v4542_v18  ;;  %v11335_v18 = vld [vmem:[#allocation95_spill] sm:$0xff] }
 0x53a   : > { %v4873_v41 = vpop.f32.mrf.mxu1 }
 0x53b   : > { %v4871_v13 = vadd.f32 %v4870_v0, %v4757_v44 }
 0x53d   : > { %4944 = vst.msk [vmem:[%s10253_s27 + $0xa8] sm:$0xff] %vm289_vm0, %v4871_v13  ;;  %5551 = vmatmul.msk.bf16.gmra.mxu1 %vm4175_vm13, %v5507_v37  ;;  %v4660_v42 = vpop.f32.mrf.mxu3  ;;  %v11327_v37 = vld [vmem:[#allocation85_spill] sm:$0xff] }
 0x53e   : > { %v4543_v62 = vpop.f32.mrf.mxu2 }
 0x53f   : > { %v4544_v16 = vadd.f32 %v4543_v62, %v4430_v47 }
 0x540   : > { %v4759_v54 = vpop.f32.mrf.mxu0 }
 0x541   : > { %v4760_v40 = vadd.f32 %v4759_v54, %v4646_v56  ;;  %v4658_v29 = vadd.f32 %v4657_v30, %v4544_v16  ;;  %v11328_v56 = vld [vmem:[#allocation80_spill] sm:$0xff] }
 0x542   : > { %v4875_v4 = vpop.f32.mrf.mxu1 }
 0x543   : > { %v4874_v21 = vadd.f32 %v4873_v41, %v4760_v40  ;;  %4798 = vmatmul.bf16.gmra.mxu0 %v5503_v52  ;;  %v11329_v52 = vld [vmem:[#allocation81_spill] sm:$0xff] }
 0x544   : > { %v4435_v54 = vadd.f32 %v11329_v52, %v11328_v56 }
 0x545   : > { %4945 = vst.msk [vmem:[%s10253_s27 + $0xb0] sm:$0xff] %vm289_vm0, %v4874_v21  ;;  %v4662_v50 = vpop.f32.mrf.mxu3 }
 0x546   : > { %v4546_v15 = vpop.f32.mrf.mxu2 }
 0x547   : > { %v4547_v41 = vadd.f32 %v4546_v15, %v11327_v37  ;;  %v4440_v15 = vadd.f32 %v11332_v58, %v11331_v8  ;;  %v11337_v37 = vld [vmem:[#allocation77_spill] sm:$0xff] }
 0x548   : > { %v4761_v60 = vpop.f32.mrf.mxu0 }
 0x549   : > { %v4762_v55 = vadd.f32 %v4761_v60, %v4648_v38  ;;  %v4661_v2 = vadd.f32 %v4660_v42, %v4547_v41  ;;  %v11330_v60 = vld [vmem:[#allocation50_spill] sm:$0xff]  ;;  %v11338_v41 = vld [vmem:[#allocation52_spill] sm:$0xff] }
 0x54a   : > { %v4878_v59 = vpop.f32.mrf.mxu1 }
 0x54b   : > { %v4876_v1 = vadd.f32 %v4875_v4, %v4762_v55 }
 0x54d   : > { %4946 = vst.msk [vmem:[%s10253_s27 + $0xb8] sm:$0xff] %vm289_vm0, %v4876_v1  ;;  %5552 = vmatmul.msk.bf16.gmra.mxu1 %vm4175_vm13, %v5531_v19  ;;  %v4665_v63 = vpop.f32.mrf.mxu3 }
 0x54e   : > { %v4548_v26 = vpop.f32.mrf.mxu2 }
 0x54f   : > { %v4549_v4 = vadd.f32 %v4548_v26, %v4435_v54 }
 0x550   : > { %v4764_v57 = vpop.f32.mrf.mxu0 }
 0x551   : > { %v4765_v7 = vadd.f32 %v4764_v57, %v4651_v49  ;;  %v4663_v21 = vadd.f32 %v4662_v50, %v4549_v4 }
 0x552   : > { %v4880_v61 = vpop.f32.mrf.mxu1 }
 0x553   : > { %v4879_v51 = vadd.f32 %v4878_v59, %v4765_v7  ;;  %4803 = vmatmul.bf16.gmra.mxu0 %v5527_v45 }
 0x555   : > { %4947 = vst.msk [vmem:[%s10253_s27 + $0xc0] sm:$0xff] %vm289_vm0, %v4879_v51  ;;  %v4667_v9 = vpop.f32.mrf.mxu3  ;;  %v11333_v51 = vld [vmem:[#allocation2_spill] sm:$0xff] }
 0x556   : > { %v4551_v0 = vpop.f32.mrf.mxu2 }
 0x557   : > { %v4552_v55 = vadd.f32 %v4551_v0, %v11330_v60  ;;  %v11341_v60 = vld [vmem:[#allocation79_spill] sm:$0xff] }
 0x558   : > { %v4766_v24 = vpop.f32.mrf.mxu0 }
 0x559   : > { %v4767_v22 = vadd.f32 %v4766_v24, %v4653_v27  ;;  %v4666_v59 = vadd.f32 %v4665_v63, %v4552_v55 }
 0x55a   : > { %v4883_v3 = vpop.f32.mrf.mxu1 }
 0x55b   : > { %v4881_v11 = vadd.f32 %v4880_v61, %v4767_v22 }
 0x55d   : > { %4948 = vst.msk [vmem:[%s10253_s27 + $0xc8] sm:$0xff] %vm289_vm0, %v4881_v11  ;;  %v4670_v38 = vpop.f32.mrf.mxu3  ;;  %v4445_v11 = vadd.f32 %v11335_v18, %v11334_v32 }
 0x55e   : > { %v4553_v20 = vpop.f32.mrf.mxu2 }
 0x55f   : > { %v4554_v57 = vadd.f32 %v4553_v20, %v4440_v15  ;;  %v4450_v20 = vadd.f32 %v11338_v41, %v11337_v37 }
 0x560   : > { %v4769_v14 = vpop.f32.mrf.mxu0 }
 0x561   : > { %v4770_v31 = vadd.f32 %v4769_v14, %v4656_v25  ;;  %v4668_v53 = vadd.f32 %v4667_v9, %v4554_v57  ;;  %v11342_v57 = vld [vmem:[#allocation99_spill] sm:$0xff] }
 0x562   : > { %v4885_v48 = vpop.f32.mrf.mxu1 }
 0x563   : > { %v4884_v23 = vadd.f32 %v4883_v3, %v4770_v31 }
 0x565   : > { %4949 = vst.msk [vmem:[%s10253_s27 + $0xd0] sm:$0xff] %vm289_vm0, %v4884_v23  ;;  %v4672_v39 = vpop.f32.mrf.mxu3  ;;  %v11336_v23 = vld [vmem:[#allocation82_spill] sm:$0xff] }
 0x566   : > { %v4556_v62 = vpop.f32.mrf.mxu2 }
 0x567   : > { %v4557_v27 = vadd.f32 %v4556_v62, %v11333_v51  ;;  %v11343_v51 = vld [vmem:[#allocation74_spill] sm:$0xff] }
 0x568   : > { %v4771_v35 = vpop.f32.mrf.mxu0 }
 0x569   : > { %v4772_v36 = vadd.f32 %v4771_v35, %v4658_v29  ;;  %v4671_v22 = vadd.f32 %v4670_v38, %v4557_v27  ;;  %v11344_v27 = vld [vmem:[#allocation49_spill] sm:$0xff] }
 0x56a   : > { %v4888_v44 = vpop.f32.mrf.mxu1 }
 0x56b   : > { %v4886_v13 = vadd.f32 %v4885_v48, %v4772_v36 }
 0x56d   : > { %4950 = vst.msk [vmem:[%s10253_s27 + $0xd8] sm:$0xff] %vm289_vm0, %v4886_v13  ;;  %v4675_v24 = vpop.f32.mrf.mxu3 }
 0x56e   : > { %v4558_v33 = vpop.f32.mrf.mxu2 }
 0x56f   : > { %v4559_v14 = vadd.f32 %v4558_v33, %v4445_v11 }
 0x570   : > { %v4774_v12 = vpop.f32.mrf.mxu0 }
 0x571   : > { %v4775_v10 = vadd.f32 %v4774_v12, %v4661_v2  ;;  %v4673_v47 = vadd.f32 %v4672_v39, %v4559_v14 }
 0x572   : > { %v4890_v40 = vpop.f32.mrf.mxu1 }
 0x573   : > { %v4889_v28 = vadd.f32 %v4888_v44, %v4775_v10 }
 0x575   : > { %4951 = vst.msk [vmem:[%s10253_s27 + $0xe0] sm:$0xff] %vm289_vm0, %v4889_v28  ;;  %v4677_v0 = vpop.f32.mrf.mxu3  ;;  %v11339_v28 = vld [vmem:[#allocation78_spill] sm:$0xff] }
 0x576   : > { %v4561_v42 = vpop.f32.mrf.mxu2 }
 0x577   : > { %v4562_v63 = vadd.f32 %v4561_v42, %v11336_v23  ;;  %v11346_v23 = vld [vmem:[#allocation94_spill] sm:$0xff] }
 0x578   : > { %v4776_v34 = vpop.f32.mrf.mxu0 }
 0x579   : > { %v4777_v6 = vadd.f32 %v4776_v34, %v4663_v21  ;;  %v4676_v36 = vadd.f32 %v4675_v24, %v4562_v63  ;;  %v11347_v63 = vld [vmem:[#allocation92_spill] sm:$0xff] }
 0x57a   : > { %v4893_v30 = vpop.f32.mrf.mxu1 }
 0x57b   : > { %v4891_v19 = vadd.f32 %v4890_v40, %v4777_v6 }
 0x57d   : > { %4952 = vst.msk [vmem:[%s10253_s27 + $0xe8] sm:$0xff] %vm289_vm0, %v4891_v19  ;;  %v4680_v2 = vpop.f32.mrf.mxu3 }
 0x57e   : > { %v4563_v17 = vpop.f32.mrf.mxu2 }
 0x57f   : > { %v4564_v12 = vadd.f32 %v4563_v17, %v4450_v20  ;;  %v11345_v17 = vld [vmem:[#allocation93_spill] sm:$0xff] }
 0x580   : > { %v4779_v1 = vpop.f32.mrf.mxu0 }
 0x581   : > { %v4780_v49 = vadd.f32 %v4779_v1, %v4666_v59  ;;  %v4678_v52 = vadd.f32 %v4677_v0, %v4564_v12 }
 0x582   : > { %v4895_v45 = vpop.f32.mrf.mxu1 }
 0x583   : > { %v4894_v46 = vadd.f32 %v4893_v30, %v4780_v49  ;;  %v11340_v30 = vld [vmem:[#allocation75_spill] sm:$0xff] }
 0x584   : > { %v4455_v55 = vadd.f32 %v11341_v60, %v11340_v30 }
 0x585   : > { %4953 = vst.msk [vmem:[%s10253_s27 + $0xf0] sm:$0xff] %vm289_vm0, %v4894_v46  ;;  %v4682_v34 = vpop.f32.mrf.mxu3 }
 0x586   : > { %v4566_v35 = vpop.f32.mrf.mxu2 }
 0x587   : > { %v4567_v62 = vadd.f32 %v4566_v35, %v11339_v28 }
 0x588   : > { %v4781_v7 = vpop.f32.mrf.mxu0 }
 0x589   : > { %v4782_v61 = vadd.f32 %v4781_v7, %v4668_v53  ;;  %v4681_v6 = vadd.f32 %v4680_v2, %v4567_v62 }
 0x58a   : > { %v4898_v43 = vpop.f32.mrf.mxu1 }
 0x58b   : > { %v4896_v26 = vadd.f32 %v4895_v45, %v4782_v61 }
 0x58d   : > { %4954 = vst.msk [vmem:[%s10253_s27 + $0xf8] sm:$0xff] %vm289_vm0, %v4896_v26  ;;  %v4685_v58 = vpop.f32.mrf.mxu3  ;;  %v4460_v26 = vadd.f32 %v11344_v27, %v11343_v51 }
 0x58e   : > { %v4568_v54 = vpop.f32.mrf.mxu2 }
 0x58f   : > { %v4569_v1 = vadd.f32 %v4568_v54, %v4455_v55 }
 0x590   : > { %v4784_v3 = vpop.f32.mrf.mxu0 }
 0x591   : > { %v4785_v50 = vadd.f32 %v4784_v3, %v4671_v22  ;;  %v4683_v15 = vadd.f32 %v4682_v34, %v4569_v1 }
 0x592   : > { %v4900_v25 = vpop.f32.mrf.mxu1 }
 0x593   : > { %v4899_v5 = vadd.f32 %v4898_v43, %v4785_v50 }
 0x595   : > { %4955 = vst.msk [vmem:[%s10253_s27 + $0x100] sm:$0xff] %vm289_vm0, %v4899_v5  ;;  %v4687_v61 = vpop.f32.mrf.mxu3 }
 0x596   : > { %v4571_v19 = vpop.f32.mrf.mxu2 }
 0x597   : > { %v4572_v46 = vadd.f32 %v4571_v19, %v11342_v57 }
 0x598   : > { %v4786_v31 = vpop.f32.mrf.mxu0 }
 0x599   : > { %v4787_v48 = vadd.f32 %v4786_v31, %v4673_v47  ;;  %v4686_v42 = vadd.f32 %v4685_v58, %v4572_v46 }
 0x59a   : > { %v4903_v16 = vpop.f32.mrf.mxu1 }
 0x59b   : > { %v4901_v29 = vadd.f32 %v4900_v25, %v4787_v48 }
 0x59d   : > { %4956 = vst.msk [vmem:[%s10253_s27 + $0x108] sm:$0xff] %vm289_vm0, %v4901_v29  ;;  %v4690_v14 = vpop.f32.mrf.mxu3  ;;  %v4465_v29 = vadd.f32 %v11347_v63, %v11346_v23 }
 0x59e   : > { %v4573_v39 = vpop.f32.mrf.mxu2 }
 0x59f   : > { %v4574_v22 = vadd.f32 %v4573_v39, %v4460_v26 }
 0x5a0   : > { %v4789_v44 = vpop.f32.mrf.mxu0 }
 0x5a1   : > { %v4790_v13 = vadd.f32 %v4789_v44, %v4676_v36  ;;  %v4688_v11 = vadd.f32 %v4687_v61, %v4574_v22 }
 0x5a2   : > { %v4905_v9 = vpop.f32.mrf.mxu1 }
 0x5a3   : > { %v4904_v56 = vadd.f32 %v4903_v16, %v4790_v13 }
 0x5a5   : > { %4957 = vst.msk [vmem:[%s10253_s27 + $0x110] sm:$0xff] %vm289_vm0, %v4904_v56  ;;  %v4692_v37 = vpop.f32.mrf.mxu3 }
 0x5a6   : > { %v4576_v32 = vpop.f32.mrf.mxu2 }
 0x5a7   : > { %v4577_v5 = vadd.f32 %v4576_v32, %v11345_v17 }
 0x5a8   : > { %v4791_v10 = vpop.f32.mrf.mxu0 }
 0x5a9   : > { %v4792_v40 = vadd.f32 %v4791_v10, %v4678_v52  ;;  %v4691_v0 = vadd.f32 %v4690_v14, %v4577_v5 }
 0x5aa   : > { %v4908_v4 = vpop.f32.mrf.mxu1 }
 0x5ab   : > { %v4906_v21 = vadd.f32 %v4905_v9, %v4792_v40 }
 0x5ad   : > { %4958 = vst.msk [vmem:[%s10253_s27 + $0x118] sm:$0xff] %vm289_vm0, %v4906_v21 }
 0x5ae   : > { %v4578_v31 = vpop.f32.mrf.mxu2 }
 0x5af   : > { %v4579_v36 = vadd.f32 %v4578_v31, %v4465_v29 }
 0x5b0   : > { %v4794_v38 = vpop.f32.mrf.mxu0 }
 0x5b1   : > { %v4795_v59 = vadd.f32 %v4794_v38, %v4681_v6  ;;  %v4693_v41 = vadd.f32 %v4692_v37, %v4579_v36 }
 0x5b2   : > { %v4910_v33 = vpop.f32.mrf.mxu1 }
 0x5b3   : > { %v4909_v8 = vadd.f32 %v4908_v4, %v4795_v59 }
 0x5b5   : > { %4959 = vst.msk [vmem:[%s10253_s27 + $0x120] sm:$0xff] %vm289_vm0, %v4909_v8 }
 0x5b8   : > { %v4796_v49 = vpop.f32.mrf.mxu0 }
 0x5b9   : > { %v4797_v45 = vadd.f32 %v4796_v49, %v4683_v15 }
 0x5ba   : > { %v4913_v7 = vpop.f32.mrf.mxu1 }
 0x5bb   : > { %v4911_v53 = vadd.f32 %v4910_v33, %v4797_v45 }
 0x5bd   : > { %4960 = vst.msk [vmem:[%s10253_s27 + $0x128] sm:$0xff] %vm289_vm0, %v4911_v53 }
 0x5c0   : > { %v4799_v43 = vpop.f32.mrf.mxu0 }
 0x5c1   : > { %v4800_v24 = vadd.f32 %v4799_v43, %v4686_v42 }
 0x5c2   : > { %v4915_v18 = vpop.f32.mrf.mxu1 }
 0x5c3   : > { %v4914_v3 = vadd.f32 %v4913_v7, %v4800_v24 }
 0x5c5   : > { %4961 = vst.msk [vmem:[%s10253_s27 + $0x130] sm:$0xff] %vm289_vm0, %v4914_v3 }
 0x5c8   : > { %v4801_v50 = vpop.f32.mrf.mxu0 }
 0x5c9   : > { %v4802_v25 = vadd.f32 %v4801_v50, %v4688_v11 }
 0x5ca   : > { %v4918_v16 = vpop.f32.mrf.mxu1 }
 0x5cb   : > { %v4916_v47 = vadd.f32 %v4915_v18, %v4802_v25 }
 0x5cd   : > { %4962 = vst.msk [vmem:[%s10253_s27 + $0x138] sm:$0xff] %vm289_vm0, %v4916_v47 }
 0x5d0   : > { %v4804_v48 = vpop.f32.mrf.mxu0 }
 0x5d1   : > { %v4805_v35 = vadd.f32 %v4804_v48, %v4691_v0 }
 0x5d2   : > { %v4920_v2 = vpop.f32.mrf.mxu1 }
 0x5d3   : > { %v4919_v44 = vadd.f32 %v4918_v16, %v4805_v35 }
 0x5d5   : > { %4963 = vst.msk [vmem:[%s10253_s27 + $0x140] sm:$0xff] %vm289_vm0, %v4919_v44 }
 0x5d8   : > { %v4806_v20 = vpop.f32.mrf.mxu0 }
 0x5d9   : > { %v4807_v13 = vadd.f32 %v4806_v20, %v4693_v41 }
 0x5db   : > { %v4921_v9 = vadd.f32 %v4920_v2, %v4807_v13 }
 0x5dd   : > { %4964 = vst.msk [vmem:[%s10253_s27 + $0x148] sm:$0xff] %vm289_vm0, %v4921_v9 }
 0x5de PF: > { %s14_s15 = sadd.s32 1, %s5884_s15  }
 0x5df   : > { %p11_p4 = scmp.ge.s32.totalorder %s14_s15, 4  }
 0x5e1   :  { %13 = sbr.rel (!%p11_p4) target bundleno = 1 (0x1), region = 66 }

</bundles_post_ra>
